<compile_context>
chip_gen: v5e
topology: v5e:2x2
jax: 0.10.0
libtpu: 0.0.40
codegen_flags: <defaults>
</compile_context>

<pallas_src>
import jax
import jax.numpy as jnp
from jax.experimental import pallas as pl
from jax.experimental.pallas import tpu as pltpu


_TINY_C_MAX = 16                      # C <= this -> VPU outer-product path
_EINSUM_FALLBACK_BYTES = 32 * 1024    # levels smaller than this skip Pallas
_VMEM_PARAMS = None                   # cached (budget, limit, max_tile)


def _round_up(x: int, m: int) -> int:
    return (x + m - 1) // m * m


def _sublane_multiple(itemsize: int) -> int:
    # 8 sublanes of 32-bit words per vreg; sub-32-bit dtypes pack along sublanes.
    return max(8, 32 // max(itemsize, 1))


def _vmem_params():
    """Generation-aware (tile budget bytes, scoped-vmem limit bytes, max lane tile)."""
    global _VMEM_PARAMS
    if _VMEM_PARAMS is None:
        cap = 64 * 1024 * 1024  # conservative default (v7x-sized)
        try:
            cap = int(getattr(pltpu.get_tpu_info(), "vmem_capacity_bytes", cap))
        except Exception:
            pass
        if cap >= 128 * 1024 * 1024:          # v5e / v6e: 128 MiB VMEM
            _VMEM_PARAMS = (64 << 20, 96 << 20, 65536)
        else:                                  # v7x: 64 MiB per TensorCore
            _VMEM_PARAMS = (24 << 20, 48 << 20, 32768)
    return _VMEM_PARAMS


def _pick_pixel_tile(m: int, c: int, stack: int, itemsize: int,
                     budget: int, max_tile: int) -> int:
    """Largest lane tile (multiple of 128) whose real VMEM footprint fits budget.

    Accounts for sublane padding of the channel dims, double-buffered input and
    per-group output tiles, the f32 matmul/accumulator temporaries, and the
    resident (double-buffered) weight block.
    """
    sub = _sublane_multiple(itemsize)
    c_pad = _round_up(c, sub)
    c_pad_f32 = _round_up(c, 8)
    per_pix = (2 * (c_pad + stack * c_pad) * itemsize   # double-buffered I/O tiles
               + stack * c_pad_f32 * 4)                 # f32 dot/acc temporaries
    w_bytes = 2 * stack * _round_up(c, 8) * _round_up(c, 128) * 4  # resident weight
    avail = max(budget - w_bytes, 1 << 20)
    t = avail // max(per_pix, 1)
    t = max(128, (t // 128) * 128)
    return min(t, max_tile)


def _make_sep_kernel(stack: int, c: int, fuse: bool):
    """Kernel factory; `stack`, `c`, `fuse` are trace-time constants."""
    if c <= _TINY_C_MAX:
        # Tiny contraction: unrolled VPU broadcast-FMA (outer-product form).
        # A (4..16)-wide contraction pads terribly on the MXU; this stays in the
        # vld/valu/vst slots that already bind this streaming kernel.
        def kernel(x_ref, w_ref, *out_refs):
            x = x_ref[0].astype(jnp.float32)        # (C, T)
            w = w_ref[...].astype(jnp.float32)      # (stack, C, C)
            rows = [x[i:i + 1, :] for i in range(c)]   # hoisted out of z loop
            for z, o_ref in enumerate(out_refs):
                acc = w[z, :, 0:1] * rows[0]
                for i in range(1, c):
                    acc = acc + w[z, :, i:i + 1] * rows[i]
                o_ref[0] = acc.astype(o_ref.dtype)
        return kernel

    if fuse:
        # One MXU push/drain per tile; row slices are sublane-aligned (c % 8 == 0).
        def kernel(x_ref, w_ref, *out_refs):
            x = x_ref[0]                             # (C, T)
            y = jnp.dot(w_ref[...], x, preferred_element_type=jnp.float32)
            for z, o_ref in enumerate(out_refs):
                o_ref[0] = y[z * c:(z + 1) * c, :].astype(o_ref.dtype)
        return kernel

    def kernel(x_ref, w_ref, *out_refs):
        x = x_ref[0]                                 # (C, T)
        for z, o_ref in enumerate(out_refs):
            o_ref[0] = jnp.dot(
                w_ref[z], x, preferred_element_type=jnp.float32
            ).astype(o_ref.dtype)
    return kernel


def _sep_conv1x1(x: jax.Array, w_stacked: jax.Array, w_flat: jax.Array,
                 *, max_pixel_tile=None):
    """Per-feature 1x1 conv + channel split via Pallas.

    x:         (N, C, H, W) NCHW feature map.
    w_stacked: (stack, C, C) weight.
    w_flat:    (stack*C, C) weight (same values, fused-matmul layout).
    Returns a tuple of `stack` arrays, each (N, C, H, W).
    """
    n, c, h, w = x.shape
    stack = w_stacked.shape[0]
    m = h * w
    x3 = x.reshape(n, c, m)  # free reshape; pixels land on the lane axis

    budget, vmem_limit, max_tile = _vmem_params()
    itemsize = jnp.dtype(x.dtype).itemsize
    t = _pick_pixel_tile(m, c, stack, itemsize, budget, max_tile)
    if max_pixel_tile is not None:
        t = min(t, int(max_pixel_tile))
    if t >= m:
        t = m  # single full-extent pixel block (valid even when m % 128 != 0)
    # else: t stays a multiple of 128; the ragged last tile is boundary-masked
    # (each output pixel depends only on its own input column -> still exact).

    fuse = (c > _TINY_C_MAX) and (c % 8 == 0)
    w_arg = w_flat if fuse else w_stacked
    w_spec = (pl.BlockSpec((stack * c, c), lambda j, i: (0, 0)) if fuse
              else pl.BlockSpec((stack, c, c), lambda j, i: (0, 0, 0)))

    # Large pixel axis first -> even 2-way megacore split on v7x even at N=1.
    grid = (pl.cdiv(m, t), n)

    outs = pl.pallas_call(
        _make_sep_kernel(stack, c, fuse),
        out_shape=tuple(
            jax.ShapeDtypeStruct((n, c, m), x.dtype) for _ in range(stack)
        ),
        grid_spec=pltpu.PrefetchScalarGridSpec(
            num_scalar_prefetch=0,
            grid=grid,
            in_specs=[
                pl.BlockSpec((1, c, t), lambda j, i: (i, 0, j)),
                w_spec,  # tiny weight, constant index_map -> resident in VMEM
            ],
            out_specs=[
                pl.BlockSpec((1, c, t), lambda j, i: (i, 0, j))
                for _ in range(stack)
            ],
        ),
        compiler_params=pltpu.CompilerParams(
            dimension_semantics=("parallel", "parallel"),
            vmem_limit_bytes=vmem_limit,
        ),
    )(x3, w_arg)

    if not isinstance(outs, (tuple, list)):
        outs = (outs,)
    return tuple(y.reshape(n, c, h, w) for y in outs)


def _sep_conv1x1_xla(x: jax.Array, w_flat: jax.Array, stack: int):
    """Plain XLA path for tiny levels where pallas_call launch cost dominates."""
    c = x.shape[1]
    y = jnp.einsum("oc,nchw->nohw", w_flat, x, precision="highest").astype(x.dtype)
    return tuple(y[:, z * c:(z + 1) * c] for z in range(stack))


class ConvSeperatorPallas:
    """JAX/Pallas re-implementation of ConvSeperator.forward.

    One 1x1 conv (no bias) per feature, mapping C_f -> C_f * stack_size,
    then a channel split into stack_size groups.
    """

    def __init__(self, feature_channels, stack_size, key):
        self.feature_channels = dict(feature_channels)
        self.in_features = list(feature_channels.keys())
        self._out_features = self.in_features
        self._stack_size = stack_size

        self.weights = {}      # Conv2d-shaped: (C*stack, C, 1, 1)
        self._w_flat = {}      # (C*stack, C)   kernel-ready, hoisted out of __call__
        self._w_stacked = {}   # (stack, C, C)  kernel-ready, hoisted out of __call__
        keys = jax.random.split(key, len(self.in_features))
        for k, f in zip(keys, self.in_features):
            c = self.feature_channels[f]
            out_c = c * stack_size
            bound = 1.0 / (c ** 0.5)  # Conv2d default init, fan_in = c (1x1 kernel)
            w = jax.random.uniform(k, (out_c, c, 1, 1), jnp.float32, -bound, bound)
            self.weights[f] = w
            w2d = w[:, :, 0, 0]
            self._w_flat[f] = w2d
            self._w_stacked[f] = w2d.reshape(stack_size, c, c)

    def __call__(self, features):
        z_features = []
        for f in self.in_features:
            x = features[f]  # NCHW
            assert x.shape[1] == self.feature_channels[f]
            n_bytes = x.size * jnp.dtype(x.dtype).itemsize
            if n_bytes < _EINSUM_FALLBACK_BYTES:
                z_features.append(
                    _sep_conv1x1_xla(x, self._w_flat[f], self._stack_size))
            else:
                z_features.append(
                    _sep_conv1x1(x, self._w_stacked[f], self._w_flat[f]))

        z_results = [[None] * len(self.in_features) for _ in range(self._stack_size)]
        for z in range(self._stack_size):
            for i in range(len(self.in_features)):
                z_results[z][i] = z_features[i][z]
            assert len(self._out_features) == len(z_results[z])
        return [
            dict(zip(self._out_features, z_results[z]))
            for z in range(self._stack_size)
        ]


if __name__ == "__main__":
    key = jax.random.PRNGKey(0)
    k_w, k2, k3, k4, k5 = jax.random.split(key, 5)

    stack_size = 2
    # p2: Pallas VPU path (tiny C).  p3: Pallas fused MXU path (C % 8 == 0).
    # p4: Pallas per-group MXU path (C not a multiple of 8).  p5: XLA fallback.
    feature_channels = {"p2": 8, "p3": 32, "p4": 20, "p5": 4}

    sep = ConvSeperatorPallas(feature_channels, stack_size, k_w)

    features = {
        "p2": jax.random.normal(k2, (2, 8, 64, 64), jnp.float32),
        "p3": jax.random.normal(k3, (2, 32, 24, 24), jnp.float32),
        "p4": jax.random.normal(k4, (2, 20, 24, 24), jnp.float32),
        "p5": jax.random.normal(k5, (2, 4, 8, 8), jnp.float32),
    }

    outs = sep(features)
    outs = jax.tree_util.tree_map(jax.block_until_ready, outs)

    # Reference check: 1x1 conv == einsum over channels, then channel split.
    ok = True
    for f in sep.in_features:
        c = feature_channels[f]
        w2d = sep.weights[f][:, :, 0, 0]  # (C*stack, C)
        ref_full = jnp.einsum("oc,nchw->nohw", w2d, features[f], precision="highest")
        for z in range(stack_size):
            ref = ref_full[:, z * c:(z + 1) * c]
            got = outs[z][f]
            if got.shape != ref.shape or not jnp.allclose(got, ref, atol=1e-5, rtol=1e-5):
                ok = False

    # Extra check: force a multi-tile pixel grid with a ragged (masked) last tile.
    ragged = _sep_conv1x1(features["p3"], sep._w_stacked["p3"], sep._w_flat["p3"],
                          max_pixel_tile=128)
    ragged = jax.tree_util.tree_map(jax.block_until_ready, ragged)
    c = feature_channels["p3"]
    ref_full = jnp.einsum("oc,nchw->nohw", sep.weights["p3"][:, :, 0, 0],
                          features["p3"], precision="highest")
    for z in range(stack_size):
        if not jnp.allclose(ragged[z], ref_full[:, z * c:(z + 1) * c],
                            atol=1e-5, rtol=1e-5):
            ok = False

    if ok:
        print("KERNEL_OK")
    else:
        raise SystemExit("mismatch vs reference")
</pallas_src>

<mosaic_0001>
module attributes {stable_mosaic.version = 11 : i64} {
  func.func @kernel(%arg0: i32, %arg1: i32, %arg2: memref<1x8x4096xf32, #tpu.memory_space<vmem>>, %arg3: memref<2x8x8xf32, #tpu.memory_space<vmem>>, %arg4: memref<1x8x4096xf32, #tpu.memory_space<vmem>>, %arg5: memref<1x8x4096xf32, #tpu.memory_space<vmem>>) attributes {dimension_semantics = [#tpu.dimension_semantics<parallel>, #tpu.dimension_semantics<parallel>], iteration_bounds = array<i64: 1, 2>, scalar_prefetch = 0 : i64, scratch_operands = 0 : i64, tpu.core_type = #tpu.core_type<tc>, window_params = [{transform_indices = @transform_0, window_bounds = array<i64: 1, 8, 4096>}, {pipeline_mode = #tpu.pipeline_mode<synchronous>, transform_indices = @transform_1, window_bounds = array<i64: 2, 8, 8>}, {transform_indices = @transform_2, window_bounds = array<i64: 1, 8, 4096>}, {transform_indices = @transform_3, window_bounds = array<i64: 1, 8, 4096>}]} {
    %c0 = arith.constant 0 : index
    %c0_0 = arith.constant 0 : index
    %c0_1 = arith.constant 0 : index
    %0 = vector.load %arg2[%c0, %c0_0, %c0_1] : memref<1x8x4096xf32, #tpu.memory_space<vmem>>, vector<1x8x4096xf32>
    %1 = vector.shape_cast %0 : vector<1x8x4096xf32> to vector<8x4096xf32>
    %c0_2 = arith.constant 0 : index
    %c0_3 = arith.constant 0 : index
    %c0_4 = arith.constant 0 : index
    %2 = vector.load %arg3[%c0_2, %c0_3, %c0_4] : memref<2x8x8xf32, #tpu.memory_space<vmem>>, vector<2x8x8xf32>
    %3 = vector.extract_strided_slice %1 {offsets = [0, 0], sizes = [1, 4096], strides = [1, 1]} : vector<8x4096xf32> to vector<1x4096xf32>
    %4 = vector.extract_strided_slice %1 {offsets = [1, 0], sizes = [1, 4096], strides = [1, 1]} : vector<8x4096xf32> to vector<1x4096xf32>
    %5 = vector.extract_strided_slice %1 {offsets = [2, 0], sizes = [1, 4096], strides = [1, 1]} : vector<8x4096xf32> to vector<1x4096xf32>
    %6 = vector.extract_strided_slice %1 {offsets = [3, 0], sizes = [1, 4096], strides = [1, 1]} : vector<8x4096xf32> to vector<1x4096xf32>
    %7 = vector.extract_strided_slice %1 {offsets = [4, 0], sizes = [1, 4096], strides = [1, 1]} : vector<8x4096xf32> to vector<1x4096xf32>
    %8 = vector.extract_strided_slice %1 {offsets = [5, 0], sizes = [1, 4096], strides = [1, 1]} : vector<8x4096xf32> to vector<1x4096xf32>
    %9 = vector.extract_strided_slice %1 {offsets = [6, 0], sizes = [1, 4096], strides = [1, 1]} : vector<8x4096xf32> to vector<1x4096xf32>
    %10 = vector.extract_strided_slice %1 {offsets = [7, 0], sizes = [1, 4096], strides = [1, 1]} : vector<8x4096xf32> to vector<1x4096xf32>
    %11 = vector.extract_strided_slice %2 {offsets = [0, 0, 0], sizes = [1, 8, 1], strides = [1, 1, 1]} : vector<2x8x8xf32> to vector<1x8x1xf32>
    %12 = vector.shape_cast %11 : vector<1x8x1xf32> to vector<8x1xf32>
    %13 = vector.broadcast %12 : vector<8x1xf32> to vector<8x4096xf32>
    %14 = vector.broadcast %3 : vector<1x4096xf32> to vector<8x4096xf32>
    %15 = arith.mulf %13, %14 : vector<8x4096xf32>
    %16 = vector.extract_strided_slice %2 {offsets = [0, 0, 1], sizes = [1, 8, 1], strides = [1, 1, 1]} : vector<2x8x8xf32> to vector<1x8x1xf32>
    %17 = vector.shape_cast %16 : vector<1x8x1xf32> to vector<8x1xf32>
    %18 = vector.broadcast %17 : vector<8x1xf32> to vector<8x4096xf32>
    %19 = vector.broadcast %4 : vector<1x4096xf32> to vector<8x4096xf32>
    %20 = arith.mulf %18, %19 : vector<8x4096xf32>
    %21 = arith.addf %15, %20 : vector<8x4096xf32>
    %22 = vector.extract_strided_slice %2 {offsets = [0, 0, 2], sizes = [1, 8, 1], strides = [1, 1, 1]} : vector<2x8x8xf32> to vector<1x8x1xf32>
    %23 = vector.shape_cast %22 : vector<1x8x1xf32> to vector<8x1xf32>
    %24 = vector.broadcast %23 : vector<8x1xf32> to vector<8x4096xf32>
    %25 = vector.broadcast %5 : vector<1x4096xf32> to vector<8x4096xf32>
    %26 = arith.mulf %24, %25 : vector<8x4096xf32>
    %27 = arith.addf %21, %26 : vector<8x4096xf32>
    %28 = vector.extract_strided_slice %2 {offsets = [0, 0, 3], sizes = [1, 8, 1], strides = [1, 1, 1]} : vector<2x8x8xf32> to vector<1x8x1xf32>
    %29 = vector.shape_cast %28 : vector<1x8x1xf32> to vector<8x1xf32>
    %30 = vector.broadcast %29 : vector<8x1xf32> to vector<8x4096xf32>
    %31 = vector.broadcast %6 : vector<1x4096xf32> to vector<8x4096xf32>
    %32 = arith.mulf %30, %31 : vector<8x4096xf32>
    %33 = arith.addf %27, %32 : vector<8x4096xf32>
    %34 = vector.extract_strided_slice %2 {offsets = [0, 0, 4], sizes = [1, 8, 1], strides = [1, 1, 1]} : vector<2x8x8xf32> to vector<1x8x1xf32>
    %35 = vector.shape_cast %34 : vector<1x8x1xf32> to vector<8x1xf32>
    %36 = vector.broadcast %35 : vector<8x1xf32> to vector<8x4096xf32>
    %37 = vector.broadcast %7 : vector<1x4096xf32> to vector<8x4096xf32>
    %38 = arith.mulf %36, %37 : vector<8x4096xf32>
    %39 = arith.addf %33, %38 : vector<8x4096xf32>
    %40 = vector.extract_strided_slice %2 {offsets = [0, 0, 5], sizes = [1, 8, 1], strides = [1, 1, 1]} : vector<2x8x8xf32> to vector<1x8x1xf32>
    %41 = vector.shape_cast %40 : vector<1x8x1xf32> to vector<8x1xf32>
    %42 = vector.broadcast %41 : vector<8x1xf32> to vector<8x4096xf32>
    %43 = vector.broadcast %8 : vector<1x4096xf32> to vector<8x4096xf32>
    %44 = arith.mulf %42, %43 : vector<8x4096xf32>
    %45 = arith.addf %39, %44 : vector<8x4096xf32>
    %46 = vector.extract_strided_slice %2 {offsets = [0, 0, 6], sizes = [1, 8, 1], strides = [1, 1, 1]} : vector<2x8x8xf32> to vector<1x8x1xf32>
    %47 = vector.shape_cast %46 : vector<1x8x1xf32> to vector<8x1xf32>
    %48 = vector.broadcast %47 : vector<8x1xf32> to vector<8x4096xf32>
    %49 = vector.broadcast %9 : vector<1x4096xf32> to vector<8x4096xf32>
    %50 = arith.mulf %48, %49 : vector<8x4096xf32>
    %51 = arith.addf %45, %50 : vector<8x4096xf32>
    %52 = vector.extract_strided_slice %2 {offsets = [0, 0, 7], sizes = [1, 8, 1], strides = [1, 1, 1]} : vector<2x8x8xf32> to vector<1x8x1xf32>
    %53 = vector.shape_cast %52 : vector<1x8x1xf32> to vector<8x1xf32>
    %54 = vector.broadcast %53 : vector<8x1xf32> to vector<8x4096xf32>
    %55 = vector.broadcast %10 : vector<1x4096xf32> to vector<8x4096xf32>
    %56 = arith.mulf %54, %55 : vector<8x4096xf32>
    %57 = arith.addf %51, %56 : vector<8x4096xf32>
    %c0_5 = arith.constant 0 : index
    %c0_6 = arith.constant 0 : index
    %c0_7 = arith.constant 0 : index
    %58 = vector.load %arg4[%c0_5, %c0_6, %c0_7] : memref<1x8x4096xf32, #tpu.memory_space<vmem>>, vector<1x8x4096xf32>
    %59 = vector.shape_cast %58 : vector<1x8x4096xf32> to vector<8x4096xf32>
    %60 = vector.shape_cast %57 : vector<8x4096xf32> to vector<1x8x4096xf32>
    tpu.vector_store %arg4[%c0_5, %c0_6, %c0_7], %60 {strides = array<i32>} : memref<1x8x4096xf32, #tpu.memory_space<vmem>>, vector<1x8x4096xf32>,
    %61 = vector.extract_strided_slice %2 {offsets = [1, 0, 0], sizes = [1, 8, 1], strides = [1, 1, 1]} : vector<2x8x8xf32> to vector<1x8x1xf32>
    %62 = vector.shape_cast %61 : vector<1x8x1xf32> to vector<8x1xf32>
    %63 = vector.broadcast %62 : vector<8x1xf32> to vector<8x4096xf32>
    %64 = vector.broadcast %3 : vector<1x4096xf32> to vector<8x4096xf32>
    %65 = arith.mulf %63, %64 : vector<8x4096xf32>
    %66 = vector.extract_strided_slice %2 {offsets = [1, 0, 1], sizes = [1, 8, 1], strides = [1, 1, 1]} : vector<2x8x8xf32> to vector<1x8x1xf32>
    %67 = vector.shape_cast %66 : vector<1x8x1xf32> to vector<8x1xf32>
    %68 = vector.broadcast %67 : vector<8x1xf32> to vector<8x4096xf32>
    %69 = vector.broadcast %4 : vector<1x4096xf32> to vector<8x4096xf32>
    %70 = arith.mulf %68, %69 : vector<8x4096xf32>
    %71 = arith.addf %65, %70 : vector<8x4096xf32>
    %72 = vector.extract_strided_slice %2 {offsets = [1, 0, 2], sizes = [1, 8, 1], strides = [1, 1, 1]} : vector<2x8x8xf32> to vector<1x8x1xf32>
    %73 = vector.shape_cast %72 : vector<1x8x1xf32> to vector<8x1xf32>
    %74 = vector.broadcast %73 : vector<8x1xf32> to vector<8x4096xf32>
    %75 = vector.broadcast %5 : vector<1x4096xf32> to vector<8x4096xf32>
    %76 = arith.mulf %74, %75 : vector<8x4096xf32>
    %77 = arith.addf %71, %76 : vector<8x4096xf32>
    %78 = vector.extract_strided_slice %2 {offsets = [1, 0, 3], sizes = [1, 8, 1], strides = [1, 1, 1]} : vector<2x8x8xf32> to vector<1x8x1xf32>
    %79 = vector.shape_cast %78 : vector<1x8x1xf32> to vector<8x1xf32>
    %80 = vector.broadcast %79 : vector<8x1xf32> to vector<8x4096xf32>
    %81 = vector.broadcast %6 : vector<1x4096xf32> to vector<8x4096xf32>
    %82 = arith.mulf %80, %81 : vector<8x4096xf32>
    %83 = arith.addf %77, %82 : vector<8x4096xf32>
    %84 = vector.extract_strided_slice %2 {offsets = [1, 0, 4], sizes = [1, 8, 1], strides = [1, 1, 1]} : vector<2x8x8xf32> to vector<1x8x1xf32>
    %85 = vector.shape_cast %84 : vector<1x8x1xf32> to vector<8x1xf32>
    %86 = vector.broadcast %85 : vector<8x1xf32> to vector<8x4096xf32>
    %87 = vector.broadcast %7 : vector<1x4096xf32> to vector<8x4096xf32>
    %88 = arith.mulf %86, %87 : vector<8x4096xf32>
    %89 = arith.addf %83, %88 : vector<8x4096xf32>
    %90 = vector.extract_strided_slice %2 {offsets = [1, 0, 5], sizes = [1, 8, 1], strides = [1, 1, 1]} : vector<2x8x8xf32> to vector<1x8x1xf32>
    %91 = vector.shape_cast %90 : vector<1x8x1xf32> to vector<8x1xf32>
    %92 = vector.broadcast %91 : vector<8x1xf32> to vector<8x4096xf32>
    %93 = vector.broadcast %8 : vector<1x4096xf32> to vector<8x4096xf32>
    %94 = arith.mulf %92, %93 : vector<8x4096xf32>
    %95 = arith.addf %89, %94 : vector<8x4096xf32>
    %96 = vector.extract_strided_slice %2 {offsets = [1, 0, 6], sizes = [1, 8, 1], strides = [1, 1, 1]} : vector<2x8x8xf32> to vector<1x8x1xf32>
    %97 = vector.shape_cast %96 : vector<1x8x1xf32> to vector<8x1xf32>
    %98 = vector.broadcast %97 : vector<8x1xf32> to vector<8x4096xf32>
    %99 = vector.broadcast %9 : vector<1x4096xf32> to vector<8x4096xf32>
    %100 = arith.mulf %98, %99 : vector<8x4096xf32>
    %101 = arith.addf %95, %100 : vector<8x4096xf32>
    %102 = vector.extract_strided_slice %2 {offsets = [1, 0, 7], sizes = [1, 8, 1], strides = [1, 1, 1]} : vector<2x8x8xf32> to vector<1x8x1xf32>
    %103 = vector.shape_cast %102 : vector<1x8x1xf32> to vector<8x1xf32>
    %104 = vector.broadcast %103 : vector<8x1xf32> to vector<8x4096xf32>
    %105 = vector.broadcast %10 : vector<1x4096xf32> to vector<8x4096xf32>
    %106 = arith.mulf %104, %105 : vector<8x4096xf32>
    %107 = arith.addf %101, %106 : vector<8x4096xf32>
    %c0_8 = arith.constant 0 : index
    %c0_9 = arith.constant 0 : index
    %c0_10 = arith.constant 0 : index
    %108 = vector.load %arg5[%c0_8, %c0_9, %c0_10] : memref<1x8x4096xf32, #tpu.memory_space<vmem>>, vector<1x8x4096xf32>
    %109 = vector.shape_cast %108 : vector<1x8x4096xf32> to vector<8x4096xf32>
    %110 = vector.shape_cast %107 : vector<8x4096xf32> to vector<1x8x4096xf32>
    tpu.vector_store %arg5[%c0_8, %c0_9, %c0_10], %110 {strides = array<i32>} : memref<1x8x4096xf32, #tpu.memory_space<vmem>>, vector<1x8x4096xf32>,
    return
  }
  func.func @transform_0(%arg0: i32, %arg1: i32) -> (i32, i32, i32) {
    %c0_i32 = arith.constant 0 : i32
    %c0_i32_0 = arith.constant 0 : i32
    return %arg1, %c0_i32, %arg0 : i32, i32, i32
  }
  func.func @transform_1(%arg0: i32, %arg1: i32) -> (i32, i32, i32) {
    %c0_i32 = arith.constant 0 : i32
    %c0_i32_0 = arith.constant 0 : i32
    %c0_i32_1 = arith.constant 0 : i32
    %c0_i32_2 = arith.constant 0 : i32
    return %c0_i32, %c0_i32_0, %c0_i32_1 : i32, i32, i32
  }
  func.func @transform_2(%arg0: i32, %arg1: i32) -> (i32, i32, i32) {
    %c0_i32 = arith.constant 0 : i32
    %c0_i32_0 = arith.constant 0 : i32
    return %arg1, %c0_i32, %arg0 : i32, i32, i32
  }
  func.func @transform_3(%arg0: i32, %arg1: i32) -> (i32, i32, i32) {
    %c0_i32 = arith.constant 0 : i32
    %c0_i32_0 = arith.constant 0 : i32
    return %arg1, %c0_i32, %arg0 : i32, i32, i32
  }
}

</mosaic_0001>

<bundles_post_ra>
// kernel: tpu_custom_call.1
= control target key start
LH: loop header
LB: loop body
LE: loop exit
PB: predicated region body
PF: predicated region fallthrough
CT: control target
= control target key end

     0   :  { %9 = vsyncpa [#allocation3], 0  ;;  %s5167_s0 = inlined_call_operand.hbm [shape: f32[2,8,4096], index: 0, kind: input, shape index: {}]   ;;  %s5168_s1 = inlined_call_operand.hbm [shape: f32[2,8,8], index: 1, kind: input, shape index: {}]   ;;  %s5169_s2 = inlined_call_operand.hbm [shape: f32[2,8,4096], index: 2, kind: output, shape index: {0}]   ;;  %s5170_s3 = inlined_call_operand.hbm [shape: f32[2,8,4096], index: 3, kind: output, shape index: {1}]  }
   0x1   :  { %11 = vsyncpa [#allocation3 + $0x1], 0 }
   0x2   :  { %12 = vsyncpa [#allocation6], 0 }
   0x3   :  { %13 = vsyncpa [#allocation4], 0 }
   0x4   :  { %15 = vsyncpa [#allocation4 + $0x1], 0 }
   0x5   :  { %16 = vsyncpa [#allocation9], 0 }
   0x6   :  { %18 = vsyncpa [#allocation9 + $0x1], 0  ;;  %s2162_s12 = smov 0   ;;  %s2164_s13 = smov 0  }
   0x7   :  { %s2166_s14 = smov 0   ;;  %s2168_s15 = smov 0  }
   0x8   :  { %s2170_s16 = smov 0   ;;  %s2172_s17 = smov 0  }
   0x9 LB: > { %s1791_s18 = sadd.s32 4294967295, %s2129_s17   ;;  %p1793_p0 = scmp.ge.s32.totalorder %s2129_s17, 1  ;;  %s2129_s17 = sphi %s2172_s17, %s24_s17   ;;  %s2125_s16 = sphi %s2170_s16, %s6586_s16   ;;  %s2121_s15 = sphi %s2168_s15, %s6585_s15   ;;  %s2117_s14 = sphi %s2166_s14, %s6584_s14   ;;  %s2113_s13 = sphi %s2164_s13, %s6583_s13   ;;  %s2109_s12 = sphi %s2162_s12, %s6582_s12  }
   0xa   : > { %p2194_p1 = scmp.eq.s32.totalorder %s1791_s18, 0  ;;  %p146_p2 = scmp.lt.s32.totalorder %s2129_s17, 3 }
   0xb   : > { %s157_s22 = sshll.u32 %s5168_s1, 4  ;;  %s2131_s24 = smov [#allocation5]   ;;  %s158_s22 = int_to_ptr.hbm [resolvable:$true] %s157_s22 }
   0xc   : > { %p2202_p3 = pnand %p1793_p0, %p146_p2  ;;  %s159_s25 = sshll.u32 %s2131_s24, 4  ;;  %s160_s25 = int_to_ptr.vmem [resolvable:$true] %s159_s25 }
   0xd   : > { %p1795_p6 = scmp.ge.s32.totalorder %s2129_s17, 2  ;;  %s2132_s26 = smov 128  }
   0xe   : > { %p1825_p4 = pneg %p2202_p3  ;;  %s2133_s27 = smov 8  }
   0xf   : > { %s1792_s28 = sadd.s32 4294967294, %s2129_s17   ;;  %s33_s29 = sadd.s32 1, %s2125_s16 }
  0x10   : > { %p1826_p5 = pnand %p1825_p4, %p2194_p1  ;;  %s45_s30 = sadd.s32 1, %s2117_s14 }
  0x11   : > { %p34_p7 = scmp.ge.s32.totalorder %s33_s29, 2  ;;  %p52_p8 = scmp.ne.s32.totalorder %s2117_s14, %s2113_s13 }
  0x12   : > { %1828 = dma.hbm_to_vmem [thread:$0]  (!%p1826_p5), %s158_s22, 256, %s160_s25, [#allocation6], %s2132_s26, %s2132_s26, %s2133_s27  }
  0x13   : > { %p53_p9 = scmp.eq.s32.totalorder %s2129_s17, 0  ;;  %p58_p10 = scmp.ne.s32.totalorder %s2113_s13, %s2109_s12 }
  0x14   : > { %s6588_s29 = smov (%p34_p7, %s33_s29), 0  ;;  %p105_p13 = scmp.eq.s32.totalorder %s1791_s18, 1 }
  0x15   : > { %p2221_p11 = por %p53_p9, %p52_p8  ;;  %p2227_p12 = por %p2194_p1, %p58_p10 }
  0x16   : > { %s40_s6 = ssub.s32 %s2125_s16, %s6588_s29  ;;  %p111_p2 = scmp.eq.s32.totalorder %s1792_s28, 1 }
  0x17   : > { %p43_p0 = scmp.eq.s32.totalorder %s40_s6, 0  ;;  %p2233_p4 = por %p105_p13, %p52_p8 }
  0x18   : > { %p1841_p5 = scmp.lt.s32.totalorder %s2129_s17, 2  ;;  %p2241_p7 = por %p111_p2, %p58_p10 }
  0x19   : > { %s2239_s8 = scalar_select %p43_p0, %s2117_s14, %s45_s30  }
  0x1a   : > { %s173_s10 = sand.u32 1, %s2117_s14   ;;  %s1812_s20 = sshll.u32 %s2125_s16, 8 }
  0x1b   : > { %s1796_s11 = sshll.u32 %s173_s10, 8  ;;  %s184_s18 = scalar_lea.hbm %s5167_s0, %s1812_s20 }
  0x1c   : > { %s177_s24 = scalar_lea.vmem [#allocation2], %s1796_s11  ;;  %s186_s26 = sshll.u32 %s184_s18, 4  ;;  %s187_s26 = int_to_ptr.hbm [resolvable:$true] %s186_s26 }
  0x1d   : > { %s188_s25 = sshll.u32 %s177_s24, 4  ;;  %p1830_p8 = pnand %p1841_p5, %p2221_p11  ;;  %s189_s25 = int_to_ptr.vmem [resolvable:$true] %s188_s25 }
  0x1e   : > { %s174_s27 = scalar_lea.sflag [#allocation3], %s173_s10  ;;  %197 = sbr.rel (%p2202_p3) target bundleno = 589 (0x24d), region = 28 }
  0x1f   : > { %1832 = dma.hbm_to_vmem [thread:$0]  (!%p1830_p8), %s187_s26, 4096, %s189_s25, %s174_s27  }
  0x23   : > { %s2255_s28 = sand.u32 1, %s2113_s13  }
  0x24   : > { %s2258_s30 = sshll.u32 %s2255_s28, 8  ;;  %s200_s6 = scalar_lea.sflag [#allocation3], %s2255_s28 }
  0x25   : > { %s2262_s11 = scalar_lea.vmem [#allocation2], %s2258_s30 }
  0x26   : > { %2092 = dma.done.wait (%p2227_p12), %s200_s6, 4096  }
  0x27   : > { %2094 = vsyncadd (%p2227_p12), %s200_s6, 4294963200 }
  0x28   : > { %2096 = dma.done.wait (%p2194_p1), [#allocation6], 256  }
  0x29   : > { %2098 = vsyncadd (%p2194_p1), [#allocation6], 4294967040  ;;  %v2134_v0 = vmov 2   ;;  %v2135_v1 = vmov 0   ;;  %v2136_v2 = vmov 4   ;;  %v272_v3 = vld [vmem:[#allocation5] sm:$0xff] }
  0x2a   : > { %1905 = vset.pattern.permute.xlu1 %v2134_v0  ;;  %1903 = vset.pattern.permute.xlu0 %v2135_v1  ;;  %v2137_v4 = vmov 3   ;;  %v2138_v5 = vmov 1   ;;  %v2139_v6 = vmov 5   ;;  %v273_v7 = vld [vmem:[#allocation5 + $0x8] sm:$0xff]  ;;  %v2140_v8 = vmov 6   ;;  %v2273_v10 = vld [vmem:[%s2262_s11] sm:$0xff] }
  0x2b   : > { %1907 = vset.pattern.permute.xlu2 %v2136_v2  ;;  %444 = vperm.xlu1 %1905, %v272_v3   ;;  %v2141_v9 = vmov 7   ;;  %5435 = vst [vmem:[#allocation14_spill] sm:$0xff] %v2273_v10  ;;  %v2276_v11 = vld [vmem:[%s2262_s11 + $0x8] sm:$0xff]  ;;  %v2279_v12 = vld [vmem:[%s2262_s11 + $0x10] sm:$0xff]  ;;  %v2282_v13 = vld [vmem:[%s2262_s11 + $0x18] sm:$0xff]  ;;  %v5171_v26 = vperm.slane %v2273_v10, 0 }
  0x2c   : > { %276 = vperm.xlu0 %1903, %v272_v3   ;;  %644 = vperm.xlu2 %1907, %v272_v3   ;;  %5436 = vst [vmem:[#allocation15_spill] sm:$0xff] %v2276_v11  ;;  %v2285_v14 = vld [vmem:[%s2262_s11 + $0x20] sm:$0xff]  ;;  %v2288_v15 = vld [vmem:[%s2262_s11 + $0x28] sm:$0xff]  ;;  %v2291_v16 = vld [vmem:[%s2262_s11 + $0x30] sm:$0xff]  ;;  %v5172_v27 = vperm.slane %v2276_v11, 0  ;;  %v5173_v28 = vperm.slane %v2279_v12, 0 }
  0x2d   : > { %5437 = vst [vmem:[#allocation16_spill] sm:$0xff] %v2279_v12  ;;  %v2294_v17 = vld [vmem:[%s2262_s11 + $0x38] sm:$0xff]  ;;  %v2297_v18 = vld [vmem:[%s2262_s11 + $0x40] sm:$0xff]  ;;  %v2300_v19 = vld [vmem:[%s2262_s11 + $0x48] sm:$0xff]  ;;  %v5174_v29 = vperm.slane %v2282_v13, 0  ;;  %v5175_v34 = vperm.slane %v2285_v14, 0 }
  0x2e   : > { %5438 = vst [vmem:[#allocation17_spill] sm:$0xff] %v2282_v13  ;;  %v2303_v20 = vld [vmem:[%s2262_s11 + $0x50] sm:$0xff]  ;;  %v2306_v21 = vld [vmem:[%s2262_s11 + $0x58] sm:$0xff]  ;;  %v2309_v22 = vld [vmem:[%s2262_s11 + $0x60] sm:$0xff]  ;;  %v5176_v35 = vperm.slane %v2288_v15, 0  ;;  %v5177_v36 = vperm.slane %v2291_v16, 0 }
  0x2f   : > { %5439 = vst [vmem:[#allocation18_spill] sm:$0xff] %v2285_v14  ;;  %v2312_v23 = vld [vmem:[%s2262_s11 + $0x68] sm:$0xff]  ;;  %v2315_v24 = vld [vmem:[%s2262_s11 + $0x70] sm:$0xff]  ;;  %v2318_v25 = vld [vmem:[%s2262_s11 + $0x78] sm:$0xff]  ;;  %v5178_v37 = vperm.slane %v2294_v17, 0  ;;  %v5179_v42 = vperm.slane %v2297_v18, 0 }
  0x30   : > { %5440 = vst [vmem:[#allocation19_spill] sm:$0xff] %v2288_v15  ;;  %v2325_v30 = vld [vmem:[%s2262_s11 + $0x80] sm:$0xff]  ;;  %v2328_v31 = vld [vmem:[%s2262_s11 + $0x88] sm:$0xff]  ;;  %v2331_v32 = vld [vmem:[%s2262_s11 + $0x90] sm:$0xff]  ;;  %v5180_v43 = vperm.slane %v2300_v19, 0  ;;  %v5181_v44 = vperm.slane %v2303_v20, 0 }
  0x31   : > { %5441 = vst [vmem:[#allocation20_spill] sm:$0xff] %v2291_v16  ;;  %v2334_v33 = vld [vmem:[%s2262_s11 + $0x98] sm:$0xff]  ;;  %v2341_v38 = vld [vmem:[%s2262_s11 + $0xa0] sm:$0xff]  ;;  %v2344_v39 = vld [vmem:[%s2262_s11 + $0xa8] sm:$0xff]  ;;  %v5182_v45 = vperm.slane %v2306_v21, 0  ;;  %v5183_v48 = vperm.slane %v2309_v22, 0 }
  0x32   : > { %5442 = vst [vmem:[#allocation21_spill] sm:$0xff] %v2294_v17  ;;  %v2347_v40 = vld [vmem:[%s2262_s11 + $0xb0] sm:$0xff]  ;;  %v2350_v41 = vld [vmem:[%s2262_s11 + $0xb8] sm:$0xff]  ;;  %v2357_v46 = vld [vmem:[%s2262_s11 + $0xc0] sm:$0xff]  ;;  %v5184_v49 = vperm.slane %v2312_v23, 0  ;;  %v5185_v50 = vperm.slane %v2315_v24, 0 }
  0x33   : > { %1906 = vset.pattern.permute.xlu1 %v2137_v4  ;;  %5443 = vst [vmem:[#allocation22_spill] sm:$0xff] %v2297_v18  ;;  %v2360_v47 = vld [vmem:[%s2262_s11 + $0xc8] sm:$0xff]  ;;  %v5186_v51 = vperm.slane %v2318_v25, 0  ;;  %v2367_v52 = vld [vmem:[%s2262_s11 + $0xd0] sm:$0xff]  ;;  %v2370_v53 = vld [vmem:[%s2262_s11 + $0xd8] sm:$0xff]  ;;  %v5187_v54 = vperm.slane %v2325_v30, 0 }
  0x34   : > { %1904 = vset.pattern.permute.xlu0 %v2138_v5  ;;  %544 = vperm.xlu1 %1906, %v272_v3   ;;  %5444 = vst [vmem:[#allocation23_spill] sm:$0xff] %v2300_v19  ;;  %v5188_v55 = vperm.slane %v2328_v31, 0  ;;  %v5189_v56 = vperm.slane %v2331_v32, 0  ;;  %v5190_v57 = vperm.slane %v2334_v33, 0  ;;  %v2377_v58 = vld [vmem:[%s2262_s11 + $0xe0] sm:$0xff]  ;;  %v2380_v59 = vld [vmem:[%s2262_s11 + $0xe8] sm:$0xff] }
  0x35   : > { %344 = vperm.xlu0 %1904, %v272_v3   ;;  %1908 = vset.pattern.permute.xlu2 %v2139_v6  ;;  %5445 = vst [vmem:[#allocation24_spill] sm:$0xff] %v2303_v20  ;;  %v5191_v60 = vperm.slane %v2341_v38, 0  ;;  %s4466_s19 = scalar_lea.vmem [#allocation8], %s2258_s30  ;;  %s1813_s23 = sshll.u32 %s2121_s15, 8 }
  0x36   : > { %744 = vperm.xlu2 %1908, %v272_v3   ;;  %5446 = vst [vmem:[#allocation25_spill] sm:$0xff] %v2306_v21  ;;  %s4668_s10 = scalar_lea.hbm %s5170_s3, %s1813_s23  ;;  %s1658_s20 = sshll.u32 %s4466_s19, 4  ;;  %s4738_s20 = int_to_ptr.vmem [resolvable:$true] %s1658_s20 }
  0x37   : > { %5447 = vst [vmem:[#allocation26_spill] sm:$0xff] %v2309_v22  ;;  %s1660_s21 = sshll.u32 %s4668_s10, 4  ;;  %s1626_s22 = scalar_lea.sflag [#allocation9], %s2255_s28  ;;  %s4740_s21 = int_to_ptr.hbm [resolvable:$true] %s1660_s21 }
  0x38   : > { %5448 = vst [vmem:[#allocation27_spill] sm:$0xff] %v2312_v23  ;;  %s2025_s18 = sshra.s32 %s4740_s21, 4  ;;  %s2031_s27 = scalar_lea.hbm %s5170_s3, 512  ;;  %s2026_s18 = int_to_ptr.hbm [resolvable:$true] %s2025_s18 }
  0x39   : > { %5449 = vst [vmem:[#allocation28_spill] sm:$0xff] %v2315_v24  ;;  %s2027_s24 = scalar_lea.hbm %s2026_s18, 256  ;;  %p2032_p10 = scmp.lt.s32.totalorder %s2026_s18, %s5170_s3 }
  0x3a   : > { %5450 = vst [vmem:[#allocation29_spill] sm:$0xff] %v2318_v25  ;;  %p2028_p1 = scmp.ne.s32.totalorder %s2026_s18, %s2027_s24  ;;  %p2033_p11 = scmp.lt.s32.totalorder %s2031_s27, %s2027_s24 }
  0x3b   : > { %5451 = vst [vmem:[#allocation30_spill] sm:$0xff] %v2325_v30 }
  0x3c   : > { %1909 = vset.pattern.permute.xlu1 %v2140_v8  ;;  %5452 = vst [vmem:[#allocation31_spill] sm:$0xff] %v2328_v31  ;;  %p2029_p3 = pnand %p2028_p1, %p2233_p4  ;;  %p2034_p12 = por %p2033_p11, %p2032_p10 }
  0x3d   : > { %1113 = vperm.xlu0 %1904, %v273_v7   ;;  %844 = vperm.xlu1 %1909, %v272_v3   ;;  %5453 = vst [vmem:[#allocation32_spill] sm:$0xff] %v2331_v32 }
  0x3e   : > { %1910 = vset.pattern.permute.xlu2 %v2135_v1  ;;  %5454 = vst [vmem:[#allocation33_spill] sm:$0xff] %v2334_v33  ;;  %v2390_v1 = vld [vmem:[%s2262_s11 + $0xf8] sm:$0xff]  ;;  %p2030_p9 = pneg %p2029_p3 }
  0x3f   : > { %1077 = vperm.xlu2 %1910, %v273_v7   ;;  %5455 = vst [vmem:[#allocation34_spill] sm:$0xff] %v2341_v38 }
  0x40   : > { %5456 = vst [vmem:[#allocation35_spill] sm:$0xff] %v2344_v39  ;;  %p2035_p13 = pnand %p2034_p12, %p2030_p9 }
  0x41   : > { %5457 = vst [vmem:[#allocation36_spill] sm:$0xff] %v2347_v40 }
  0x42   : > { %5458 = vst [vmem:[#allocation37_spill] sm:$0xff] %v2350_v41 }
  0x43   : > { %5459 = vst [vmem:[#allocation38_spill] sm:$0xff] %v2357_v46 }
  0x44   : > { %5460 = vst [vmem:[#allocation39_spill] sm:$0xff] %v2360_v47 }
  0x45   : > { %1913 = vset.pattern.permute.xlu0 %v2136_v2  ;;  %1911 = vset.pattern.permute.xlu1 %v2134_v0  ;;  %5461 = vst [vmem:[#allocation40_spill] sm:$0xff] %v2367_v52  ;;  %v2387_v0 = vld [vmem:[%s2262_s11 + $0xf0] sm:$0xff] }
  0x46   : > { %1317 = vperm.xlu0 %1913, %v273_v7   ;;  %1181 = vperm.xlu1 %1911, %v273_v7   ;;  %5462 = vst [vmem:[#allocation41_spill] sm:$0xff] %v2370_v53 }
  0x47   : > { %1912 = vset.pattern.permute.xlu2 %v2137_v4  ;;  %5463 = vst [vmem:[#allocation42_spill] sm:$0xff] %v2377_v58 }
  0x48   : > { %1249 = vperm.xlu2 %1912, %v273_v7   ;;  %5464 = vst [vmem:[#allocation43_spill] sm:$0xff] %v2380_v59 }
  0x49   : > { %5465 = vst [vmem:[#allocation44_spill] sm:$0xff] %v2387_v0 }
  0x4a   : > { %5466 = vst [vmem:[#allocation45_spill] sm:$0xff] %v2390_v1 }
  0x4e   : > { %1918 = vset.pattern.permute.xlu0 %v2141_v9  ;;  %1914 = vset.pattern.permute.xlu1 %v2139_v6 }
  0x4f   : > { %1385 = vperm.xlu1 %1914, %v273_v7  }
  0x50   : > { %1915 = vset.pattern.permute.xlu2 %v2140_v8 }
  0x51   : > { %1453 = vperm.xlu2 %1915, %v273_v7  }
  0x57   : > { %1916 = vset.pattern.permute.xlu1 %v2141_v9 }
  0x58   : > { %944 = vperm.xlu1 %1916, %v272_v3  }
  0x59   : > { %1917 = vset.pattern.permute.xlu2 %v2141_v9 }
  0x5a   : > { %1521 = vperm.xlu2 %1917, %v273_v7  }
  0x9d   : > { %v2544_v3 = vpop.permute.xlu1 %444 }
  0x9e   : > { %v277_v61 = vpop.permute.xlu0 %276 }
  0x9f   : > { %v2466_v5 = vmul.f32 %v5171_v26, %v277_v61  ;;  %v2470_v7 = vmul.f32 %v5172_v27, %v277_v61  ;;  %v2474_v9 = vmul.f32 %v5173_v28, %v277_v61  ;;  %v2478_v63 = vmul.f32 %v5174_v29, %v277_v61 }
  0xa0   : > { %v2482_v2 = vmul.f32 %v5175_v34, %v277_v61  ;;  %v2486_v26 = vmul.f32 %v5176_v35, %v277_v61  ;;  %v2490_v27 = vmul.f32 %v5177_v36, %v277_v61  ;;  %v2494_v28 = vmul.f32 %v5178_v37, %v277_v61 }
  0xa1   : > { %v2498_v29 = vmul.f32 %v5179_v42, %v277_v61  ;;  %v2502_v34 = vmul.f32 %v5180_v43, %v277_v61  ;;  %v2506_v35 = vmul.f32 %v5181_v44, %v277_v61  ;;  %v2510_v36 = vmul.f32 %v5182_v45, %v277_v61 }
  0xa2   : > { %v2514_v37 = vmul.f32 %v5183_v48, %v277_v61  ;;  %v2518_v42 = vmul.f32 %v5184_v49, %v277_v61  ;;  %v2522_v43 = vmul.f32 %v5185_v50, %v277_v61  ;;  %v2526_v44 = vmul.f32 %v5186_v51, %v277_v61 }
  0xa3   : > { %v2530_v45 = vmul.f32 %v5187_v54, %v277_v61  ;;  %v2534_v48 = vmul.f32 %v5188_v55, %v277_v61  ;;  %v2538_v49 = vmul.f32 %v5189_v56, %v277_v61  ;;  %v2542_v50 = vmul.f32 %v5190_v57, %v277_v61 }
  0xa4   : > { %v2548_v51 = vmul.f32 %v5191_v60, %v277_v61  ;;  %v5472_v54 = vperm.slane %v2344_v39, 0  ;;  %v5474_v55 = vperm.slane %v2347_v40, 0  ;;  %v5476_v56 = vperm.slane %v2350_v41, 0 }
  0xa5   : > { %5467 = vst [vmem:[#allocation46_spill] sm:$0xff] %v2530_v45  ;;  %v5478_v57 = vperm.slane %v2357_v46, 0 }
  0xa6   : > { %5468 = vst [vmem:[#allocation47_spill] sm:$0xff] %v2534_v48  ;;  %v2552_v62 = vmul.f32 %v5472_v54, %v277_v61  ;;  %v2556_v8 = vmul.f32 %v5474_v55, %v277_v61  ;;  %v2560_v6 = vmul.f32 %v5476_v56, %v277_v61  ;;  %v5507_v48 = vperm.slane %v2288_v15, 1 }
  0xa7   : > { %5469 = vst [vmem:[#allocation48_spill] sm:$0xff] %v2538_v49  ;;  %v2564_v4 = vmul.f32 %v5478_v57, %v277_v61 }
  0xa8   : > { %5470 = vst [vmem:[#allocation49_spill] sm:$0xff] %v2542_v50  ;;  %v5480_v50 = vperm.slane %v2360_v47, 0 }
  0xa9   : > { %5471 = vst [vmem:[#allocation50_spill] sm:$0xff] %v2548_v51  ;;  %v5482_v51 = vperm.slane %v2367_v52, 0 }
  0xaa   : > { %5473 = vst [vmem:[#allocation51_spill] sm:$0xff] %v2552_v62  ;;  %v2568_v60 = vmul.f32 %v5480_v50, %v277_v61  ;;  %v5484_v62 = vperm.slane %v2370_v53, 0 }
  0xab   : > { %5475 = vst [vmem:[#allocation52_spill] sm:$0xff] %v2556_v8  ;;  %v2572_v54 = vmul.f32 %v5482_v51, %v277_v61  ;;  %v5486_v8 = vperm.slane %v2377_v58, 0 }
  0xac   : > { %5477 = vst [vmem:[#allocation53_spill] sm:$0xff] %v2560_v6  ;;  %v2576_v55 = vmul.f32 %v5484_v62, %v277_v61  ;;  %v5488_v6 = vperm.slane %v2380_v59, 0  ;;  %v5494_v62 = vperm.slane %v2273_v10, 2 }
  0xad   : > { %5479 = vst [vmem:[#allocation54_spill] sm:$0xff] %v2564_v4  ;;  %v2580_v56 = vmul.f32 %v5486_v8, %v277_v61  ;;  %v5490_v4 = vperm.slane %v2387_v0, 0  ;;  %v5496_v8 = vperm.slane %v2276_v11, 2 }
  0xae   : > { %5481 = vst [vmem:[#allocation55_spill] sm:$0xff] %v2568_v60  ;;  %v2584_v57 = vmul.f32 %v5488_v6, %v277_v61  ;;  %v5492_v60 = vperm.slane %v2390_v1, 0  ;;  %v5498_v6 = vperm.slane %v2279_v12, 2 }
  0xaf   : > { %5483 = vst [vmem:[#allocation56_spill] sm:$0xff] %v2572_v54  ;;  %v2588_v50 = vmul.f32 %v5490_v4, %v277_v61  ;;  %v345_v54 = vpop.permute.xlu0 %344 }
  0xb0   : > { %5485 = vst [vmem:[#allocation57_spill] sm:$0xff] %v2576_v55  ;;  %v2592_v51 = vmul.f32 %v5492_v60, %v277_v61  ;;  %v2597_v55 = vmul.f32 %v5494_v62, %v2544_v3  ;;  %v2607_v4 = vmul.f32 %v5498_v6, %v2544_v3  ;;  %v5500_v60 = vperm.slane %v2282_v13, 2 }
  0xb1   : > { %5487 = vst [vmem:[#allocation58_spill] sm:$0xff] %v2580_v56  ;;  %v2602_v56 = vmul.f32 %v5496_v8, %v2544_v3  ;;  %v5503_v62 = vperm.slane %v2276_v11, 1  ;;  %v5506_v6 = vperm.slane %v2285_v14, 1  ;;  %v384_v45 = vmul.f32 %v5507_v48, %v345_v54 }
  0xb2   : > { %5489 = vst [vmem:[#allocation59_spill] sm:$0xff] %v2584_v57  ;;  %v2612_v61 = vmul.f32 %v5500_v60, %v2544_v3  ;;  %v5504_v57 = vperm.slane %v2279_v12, 1  ;;  %v5508_v60 = vperm.slane %v2291_v16, 1  ;;  %v5514_v48 = vperm.slane %v2309_v22, 1 }
  0xb3   : > { %5491 = vst [vmem:[#allocation60_spill] sm:$0xff] %v2588_v50 }
  0xb4   : > { %5493 = vst [vmem:[#allocation61_spill] sm:$0xff] %v2592_v51  ;;  %v5502_v51 = vperm.slane %v2273_v10, 1  ;;  %v381_v8 = vmul.f32 %v5504_v57, %v345_v54  ;;  %v5511_v57 = vperm.slane %v2300_v19, 1  ;;  %v391_v15 = vmul.f32 %v5514_v48, %v345_v54 }
  0xb5   : > { %5495 = vst [vmem:[#allocation62_spill] sm:$0xff] %v2597_v55  ;;  %v380_v55 = vmul.f32 %v5503_v62, %v345_v54  ;;  %v5510_v62 = vperm.slane %v2297_v18, 1  ;;  %v5521_v48 = vperm.slane %v2334_v33, 1 }
  0xb6   : > { %5497 = vst [vmem:[#allocation63_spill] sm:$0xff] %v2602_v56  ;;  %v379_v50 = vmul.f32 %v5502_v51, %v345_v54  ;;  %v5505_v56 = vperm.slane %v2282_v13, 1  ;;  %v5509_v51 = vperm.slane %v2294_v17, 1  ;;  %v388_v12 = vmul.f32 %v5511_v57, %v345_v54 }
  0xb7   : > { %5499 = vst [vmem:[#allocation64_spill] sm:$0xff] %v2607_v4  ;;  %v383_v4 = vmul.f32 %v5506_v6, %v345_v54  ;;  %v387_v11 = vmul.f32 %v5510_v62, %v345_v54  ;;  %v5513_v6 = vperm.slane %v2306_v21, 1  ;;  %v5517_v62 = vperm.slane %v2318_v25, 1 }
  0xb8   : > { %5501 = vst [vmem:[#allocation65_spill] sm:$0xff] %v2612_v61  ;;  %v382_v49 = vmul.f32 %v5505_v56, %v345_v54  ;;  %v385_v61 = vmul.f32 %v5508_v60, %v345_v54  ;;  %v386_v10 = vmul.f32 %v5509_v51, %v345_v54  ;;  %v5512_v56 = vperm.slane %v2303_v20, 1 }
  0xb9   : > { %v390_v14 = vmul.f32 %v5513_v6, %v345_v54  ;;  %v5515_v60 = vperm.slane %v2312_v23, 1  ;;  %v5516_v51 = vperm.slane %v2315_v24, 1  ;;  %v394_v18 = vmul.f32 %v5517_v62, %v345_v54 }
  0xba   : > { %v389_v13 = vmul.f32 %v5512_v56, %v345_v54  ;;  %v5518_v57 = vperm.slane %v2325_v30, 1  ;;  %v5519_v56 = vperm.slane %v2328_v31, 1  ;;  %v5520_v6 = vperm.slane %v2331_v32, 1 }
  0xbb   : > { %v392_v16 = vmul.f32 %v5515_v60, %v345_v54  ;;  %v393_v17 = vmul.f32 %v5516_v51, %v345_v54  ;;  %v398_v22 = vmul.f32 %v5521_v48, %v345_v54  ;;  %v5522_v60 = vperm.slane %v2341_v38, 1 }
  0xbc   : > { %v395_v19 = vmul.f32 %v5518_v57, %v345_v54  ;;  %v396_v20 = vmul.f32 %v5519_v56, %v345_v54  ;;  %v397_v21 = vmul.f32 %v5520_v6, %v345_v54  ;;  %v5523_v51 = vperm.slane %v2344_v39, 1 }
  0xbd   : > { %v399_v23 = vmul.f32 %v5522_v60, %v345_v54  ;;  %v5524_v62 = vperm.slane %v2347_v40, 1  ;;  %v5525_v57 = vperm.slane %v2350_v41, 1  ;;  %v5526_v56 = vperm.slane %v2357_v46, 1 }
  0xbe   : > { %v400_v24 = vmul.f32 %v5523_v51, %v345_v54  ;;  %v5527_v6 = vperm.slane %v2360_v47, 1  ;;  %v5528_v48 = vperm.slane %v2367_v52, 1  ;;  %v5529_v60 = vperm.slane %v2370_v53, 1  ;;  %v5588_v53 = vld [vmem:[#allocation37_spill] sm:$0xff]  ;;  %v5590_v47 = vld [vmem:[#allocation38_spill] sm:$0xff] }
  0xbf   : > { %v401_v25 = vmul.f32 %v5524_v62, %v345_v54  ;;  %v402_v30 = vmul.f32 %v5525_v57, %v345_v54  ;;  %v403_v31 = vmul.f32 %v5526_v56, %v345_v54  ;;  %v5530_v51 = vperm.slane %v2377_v58, 1 }
  0xc0   : > { %v404_v32 = vmul.f32 %v5527_v6, %v345_v54  ;;  %v405_v33 = vmul.f32 %v5528_v48, %v345_v54  ;;  %v406_v38 = vmul.f32 %v5529_v60, %v345_v54  ;;  %v5531_v62 = vperm.slane %v2380_v59, 1  ;;  %v5586_v59 = vld [vmem:[#allocation36_spill] sm:$0xff] }
  0xc1   : > { %v407_v39 = vmul.f32 %v5530_v51, %v345_v54  ;;  %v5532_v57 = vperm.slane %v2387_v0, 1  ;;  %v5533_v56 = vperm.slane %v2390_v1, 1  ;;  %v411_v6 = vadd.f32 %v379_v50, %v2466_v5  ;;  %v5546_v50 = vld [vmem:[#allocation58_spill] sm:$0xff]  ;;  %v5584_v1 = vld [vmem:[#allocation35_spill] sm:$0xff] }
  0xc2   : > { %v408_v40 = vmul.f32 %v5531_v62, %v345_v54  ;;  %v412_v52 = vadd.f32 %v380_v55, %v2470_v7  ;;  %v413_v48 = vadd.f32 %v381_v8, %v2474_v9  ;;  %v414_v60 = vadd.f32 %v382_v49, %v2478_v63  ;;  %v5545_v55 = vld [vmem:[#allocation57_spill] sm:$0xff] }
  0xc3   : > { %v409_v41 = vmul.f32 %v5532_v57, %v345_v54  ;;  %v410_v46 = vmul.f32 %v5533_v56, %v345_v54  ;;  %v415_v58 = vadd.f32 %v383_v4, %v2482_v2  ;;  %v416_v51 = vadd.f32 %v384_v45, %v2486_v26  ;;  %v5534_v45 = vld [vmem:[#allocation46_spill] sm:$0xff]  ;;  %v5535_v2 = vld [vmem:[#allocation47_spill] sm:$0xff]  ;;  %v5549_v8 = vld [vmem:[#allocation61_spill] sm:$0xff] }
  0xc4   : > { %v417_v62 = vadd.f32 %v385_v61, %v2490_v27  ;;  %v418_v0 = vadd.f32 %v386_v10, %v2494_v28  ;;  %v419_v57 = vadd.f32 %v387_v11, %v2498_v29  ;;  %v420_v54 = vadd.f32 %v388_v12, %v2502_v34  ;;  %v5536_v28 = vld [vmem:[#allocation48_spill] sm:$0xff]  ;;  %v5537_v29 = vld [vmem:[#allocation49_spill] sm:$0xff]  ;;  %v5538_v34 = vld [vmem:[#allocation50_spill] sm:$0xff] }
  0xc5   : > { %v421_v5 = vadd.f32 %v389_v13, %v2506_v35  ;;  %v422_v7 = vadd.f32 %v390_v14, %v2510_v36  ;;  %v423_v9 = vadd.f32 %v391_v15, %v2514_v37  ;;  %v424_v49 = vadd.f32 %v392_v16, %v2518_v42  ;;  %v5539_v35 = vld [vmem:[#allocation51_spill] sm:$0xff]  ;;  %v5540_v36 = vld [vmem:[#allocation52_spill] sm:$0xff]  ;;  %v5541_v37 = vld [vmem:[#allocation53_spill] sm:$0xff] }
  0xc6   : > { %v425_v63 = vadd.f32 %v393_v17, %v2522_v43  ;;  %v426_v26 = vadd.f32 %v394_v18, %v2526_v44  ;;  %v427_v27 = vadd.f32 %v395_v19, %v5534_v45  ;;  %v428_v10 = vadd.f32 %v396_v20, %v5535_v2  ;;  %v5542_v42 = vld [vmem:[#allocation54_spill] sm:$0xff]  ;;  %v5543_v43 = vld [vmem:[#allocation55_spill] sm:$0xff]  ;;  %v5544_v44 = vld [vmem:[#allocation56_spill] sm:$0xff] }
  0xc7   : > { %v429_v11 = vadd.f32 %v397_v21, %v5536_v28  ;;  %v430_v12 = vadd.f32 %v398_v22, %v5537_v29  ;;  %v431_v13 = vadd.f32 %v399_v23, %v5538_v34  ;;  %v432_v14 = vadd.f32 %v400_v24, %v5539_v35  ;;  %v5547_v4 = vld [vmem:[#allocation59_spill] sm:$0xff]  ;;  %v5548_v61 = vld [vmem:[#allocation60_spill] sm:$0xff] }
  0xc8   : > { %v433_v15 = vadd.f32 %v401_v25, %v5540_v36  ;;  %v434_v16 = vadd.f32 %v402_v30, %v5541_v37  ;;  %v435_v17 = vadd.f32 %v403_v31, %v5542_v42  ;;  %v436_v18 = vadd.f32 %v404_v32, %v5543_v43  ;;  %v5550_v25 = vld [vmem:[#allocation18_spill] sm:$0xff]  ;;  %v5552_v31 = vld [vmem:[#allocation19_spill] sm:$0xff]  ;;  %v5562_v37 = vld [vmem:[#allocation24_spill] sm:$0xff] }
  0xc9   : > { %v437_v19 = vadd.f32 %v405_v33, %v5544_v44  ;;  %v438_v20 = vadd.f32 %v406_v38, %v5545_v55  ;;  %v439_v21 = vadd.f32 %v407_v39, %v5546_v50  ;;  %v440_v22 = vadd.f32 %v408_v40, %v5547_v4  ;;  %v5554_v33 = vld [vmem:[#allocation20_spill] sm:$0xff]  ;;  %v5556_v39 = vld [vmem:[#allocation21_spill] sm:$0xff]  ;;  %v5560_v34 = vld [vmem:[#allocation23_spill] sm:$0xff] }
  0xca   : > { %v441_v23 = vadd.f32 %v409_v41, %v5548_v61  ;;  %v442_v24 = vadd.f32 %v410_v46, %v5549_v8  ;;  %v5551_v56 = vperm.slane %v5550_v25, 2  ;;  %v5553_v45 = vperm.slane %v5552_v31, 2  ;;  %v5558_v41 = vld [vmem:[#allocation22_spill] sm:$0xff]  ;;  %v5564_v44 = vld [vmem:[#allocation25_spill] sm:$0xff] }
  0xcb   : > { %v5555_v2 = vperm.slane %v5554_v33, 2  ;;  %v5557_v28 = vperm.slane %v5556_v39, 2  ;;  %v5559_v29 = vperm.slane %v5558_v41, 2  ;;  %v5561_v35 = vperm.slane %v5560_v34, 2  ;;  %v5566_v4 = vld [vmem:[#allocation26_spill] sm:$0xff]  ;;  %v5572_v34 = vld [vmem:[#allocation29_spill] sm:$0xff] }
  0xcc   : > { %v483_v30 = vmul.f32 %v5551_v56, %v2544_v3  ;;  %v484_v32 = vmul.f32 %v5553_v45, %v2544_v3  ;;  %v5563_v42 = vperm.slane %v5562_v37, 2  ;;  %v5565_v55 = vperm.slane %v5564_v44, 2  ;;  %v5568_v56 = vld [vmem:[#allocation27_spill] sm:$0xff]  ;;  %v5574_v41 = vld [vmem:[#allocation30_spill] sm:$0xff]  ;;  %v5578_v33 = vld [vmem:[#allocation32_spill] sm:$0xff] }
  0xcd   : > { %v485_v38 = vmul.f32 %v5555_v2, %v2544_v3  ;;  %v486_v40 = vmul.f32 %v5557_v28, %v2544_v3  ;;  %v487_v46 = vmul.f32 %v5559_v29, %v2544_v3  ;;  %v488_v36 = vmul.f32 %v5561_v35, %v2544_v3  ;;  %v5570_v28 = vld [vmem:[#allocation28_spill] sm:$0xff]  ;;  %v5576_v39 = vld [vmem:[#allocation31_spill] sm:$0xff]  ;;  %v5580_v31 = vld [vmem:[#allocation33_spill] sm:$0xff] }
  0xce   : > { %v489_v43 = vmul.f32 %v5563_v42, %v2544_v3  ;;  %v490_v50 = vmul.f32 %v5565_v55, %v2544_v3  ;;  %v5567_v61 = vperm.slane %v5566_v4, 2  ;;  %v5569_v45 = vperm.slane %v5568_v56, 2  ;;  %v5582_v25 = vld [vmem:[#allocation34_spill] sm:$0xff] }
  0xcf   : > { %v5571_v29 = vperm.slane %v5570_v28, 2  ;;  %v5573_v37 = vperm.slane %v5572_v34, 2  ;;  %v5575_v44 = vperm.slane %v5574_v41, 2  ;;  %v5577_v4 = vperm.slane %v5576_v39, 2 }
  0xd0   : > { %v491_v8 = vmul.f32 %v5567_v61, %v2544_v3  ;;  %v492_v2 = vmul.f32 %v5569_v45, %v2544_v3  ;;  %v5579_v56 = vperm.slane %v5578_v33, 2  ;;  %v5581_v28 = vperm.slane %v5580_v31, 2 }
  0xd1   : > { %v493_v35 = vmul.f32 %v5571_v29, %v2544_v3  ;;  %v494_v42 = vmul.f32 %v5573_v37, %v2544_v3  ;;  %v495_v55 = vmul.f32 %v5575_v44, %v2544_v3  ;;  %v496_v61 = vmul.f32 %v5577_v4, %v2544_v3 }
  0xd2   : > { %v497_v45 = vmul.f32 %v5579_v56, %v2544_v3  ;;  %v498_v29 = vmul.f32 %v5581_v28, %v2544_v3  ;;  %v5583_v34 = vperm.slane %v5582_v25, 2  ;;  %v5585_v41 = vperm.slane %v5584_v1, 2  ;;  %v5592_v25 = vld [vmem:[#allocation39_spill] sm:$0xff] }
  0xd3   : > { %v5587_v39 = vperm.slane %v5586_v59, 2  ;;  %v5589_v33 = vperm.slane %v5588_v53, 2  ;;  %v5591_v31 = vperm.slane %v5590_v47, 2  ;;  %v5596_v53 = vld [vmem:[#allocation41_spill] sm:$0xff] }
  0xd4   : > { %v499_v37 = vmul.f32 %v5583_v34, %v2544_v3  ;;  %v500_v44 = vmul.f32 %v5585_v41, %v2544_v3  ;;  %v5593_v34 = vperm.slane %v5592_v25, 2  ;;  %v5594_v41 = vld [vmem:[#allocation40_spill] sm:$0xff] }
  0xd5   : > { %v501_v4 = vmul.f32 %v5587_v39, %v2544_v3  ;;  %v502_v56 = vmul.f32 %v5589_v33, %v2544_v3  ;;  %v503_v28 = vmul.f32 %v5591_v31, %v2544_v3  ;;  %v5595_v59 = vperm.slane %v5594_v41, 2  ;;  %v5598_v31 = vld [vmem:[#allocation42_spill] sm:$0xff]  ;;  %v5600_v41 = vld [vmem:[#allocation43_spill] sm:$0xff] }
  0xd6   : > { %v504_v1 = vmul.f32 %v5593_v34, %v2544_v3  ;;  %v5597_v33 = vperm.slane %v5596_v53, 2  ;;  %v5599_v25 = vperm.slane %v5598_v31, 2 }
  0xd7   : > { %v505_v39 = vmul.f32 %v5595_v59, %v2544_v3  ;;  %v5601_v59 = vperm.slane %v5600_v41, 2  ;;  %v5604_v41 = vld [vmem:[#allocation45_spill] sm:$0xff] }
  0xd8   : > { %v506_v47 = vmul.f32 %v5597_v33, %v2544_v3  ;;  %v507_v34 = vmul.f32 %v5599_v25, %v2544_v3  ;;  %v5602_v33 = vld [vmem:[#allocation44_spill] sm:$0xff] }
  0xd9   : > { %v508_v53 = vmul.f32 %v5601_v59, %v2544_v3  ;;  %v5603_v31 = vperm.slane %v5602_v33, 2  ;;  %v5605_v59 = vperm.slane %v5604_v41, 2 }
  0xdb   : > { %v509_v25 = vmul.f32 %v5603_v31, %v2544_v3  ;;  %v510_v33 = vmul.f32 %v5605_v59, %v2544_v3  ;;  %v5606_v31 = vld [vmem:[#allocation62_spill] sm:$0xff]  ;;  %v5608_v3 = vld [vmem:[#allocation63_spill] sm:$0xff] }
  0xdc   : > { %v2795_v41 = vadd.f32 %v5606_v31, %v411_v6  ;;  %v2798_v59 = vadd.f32 %v5608_v3, %v412_v52  ;;  %v5610_v6 = vld [vmem:[#allocation64_spill] sm:$0xff]  ;;  %v2806_v52 = vadd.f32 %v483_v30, %v415_v58  ;;  %v2822_v30 = vadd.f32 %v491_v8, %v423_v9 }
  0xdd   : > { %v2801_v31 = vadd.f32 %v5610_v6, %v413_v48  ;;  %v2810_v6 = vadd.f32 %v485_v38, %v417_v62  ;;  %v2812_v48 = vadd.f32 %v486_v40, %v418_v0  ;;  %v2824_v58 = vadd.f32 %v492_v2, %v424_v49  ;;  %v5635_v8 = vld [vmem:[#allocation24_spill] sm:$0xff]  ;;  %v5645_v2 = vld [vmem:[#allocation34_spill] sm:$0xff] }
  0xde   : > { %5607 = vst [vmem:[#allocation46_spill] sm:$0xff] %v2795_v41  ;;  %v5612_v41 = vld [vmem:[#allocation65_spill] sm:$0xff]  ;;  %v2830_v62 = vadd.f32 %v495_v55, %v427_v27  ;;  %v2832_v0 = vadd.f32 %v496_v61, %v428_v10  ;;  %v2842_v9 = vadd.f32 %v501_v4, %v433_v15  ;;  %v2844_v49 = vadd.f32 %v502_v56, %v434_v16  ;;  %v5625_v15 = vld [vmem:[#allocation14_spill] sm:$0xff]  ;;  %v5626_v16 = vld [vmem:[#allocation15_spill] sm:$0xff] }
  0xdf   : > { %5609 = vst [vmem:[#allocation47_spill] sm:$0xff] %v2798_v59  ;;  %v2804_v3 = vadd.f32 %v5612_v41, %v414_v60  ;;  %v2808_v59 = vadd.f32 %v484_v32, %v416_v51  ;;  %v2816_v41 = vadd.f32 %v488_v36, %v420_v54  ;;  %v2818_v60 = vadd.f32 %v489_v43, %v421_v5  ;;  %v5637_v55 = vld [vmem:[#allocation26_spill] sm:$0xff]  ;;  %v5640_v4 = vld [vmem:[#allocation29_spill] sm:$0xff]  ;;  %v545_v36 = vpop.permute.xlu1 %544  ;;  %v5647_v61 = vld [vmem:[#allocation36_spill] sm:$0xff] }
  0xe0   : > { %5611 = vst [vmem:[#allocation48_spill] sm:$0xff] %v2801_v31  ;;  %v2814_v31 = vadd.f32 %v487_v46, %v419_v57  ;;  %v2828_v51 = vadd.f32 %v494_v42, %v426_v26  ;;  %v2834_v57 = vadd.f32 %v497_v45, %v429_v11  ;;  %v2836_v54 = vadd.f32 %v498_v29, %v430_v12  ;;  %v5638_v45 = vld [vmem:[#allocation27_spill] sm:$0xff]  ;;  %v5648_v29 = vld [vmem:[#allocation37_spill] sm:$0xff]  ;;  %v5653_v43 = vld [vmem:[#allocation42_spill] sm:$0xff] }
  0xe1   : > { %5613 = vst [vmem:[#allocation49_spill] sm:$0xff] %v2804_v3  ;;  %v2820_v3 = vadd.f32 %v490_v50, %v422_v7  ;;  %v2838_v5 = vadd.f32 %v499_v37, %v431_v13  ;;  %v2840_v7 = vadd.f32 %v500_v44, %v432_v14  ;;  %v2848_v26 = vadd.f32 %v504_v1, %v436_v18  ;;  %v5628_v1 = vld [vmem:[#allocation17_spill] sm:$0xff]  ;;  %v5639_v37 = vld [vmem:[#allocation28_spill] sm:$0xff]  ;;  %v5646_v42 = vld [vmem:[#allocation35_spill] sm:$0xff] }
  0xe2   : > { %5614 = vst [vmem:[#allocation50_spill] sm:$0xff] %v2806_v52  ;;  %v2826_v52 = vadd.f32 %v493_v35, %v425_v63  ;;  %v2846_v63 = vadd.f32 %v503_v28, %v435_v17  ;;  %v2850_v27 = vadd.f32 %v505_v39, %v437_v19  ;;  %v2852_v10 = vadd.f32 %v506_v47, %v438_v20  ;;  %v5627_v17 = vld [vmem:[#allocation16_spill] sm:$0xff]  ;;  %v5629_v19 = vld [vmem:[#allocation18_spill] sm:$0xff]  ;;  %v5630_v47 = vld [vmem:[#allocation19_spill] sm:$0xff] }
  0xe3   : > { %5615 = vst [vmem:[#allocation51_spill] sm:$0xff] %v2842_v9  ;;  %v2854_v11 = vadd.f32 %v507_v34, %v439_v21  ;;  %v2856_v12 = vadd.f32 %v508_v53, %v440_v22  ;;  %v2858_v13 = vadd.f32 %v509_v25, %v441_v23  ;;  %v2860_v14 = vadd.f32 %v510_v33, %v442_v24  ;;  %v5631_v21 = vld [vmem:[#allocation20_spill] sm:$0xff]  ;;  %v5632_v53 = vld [vmem:[#allocation21_spill] sm:$0xff]  ;;  %v5633_v23 = vld [vmem:[#allocation22_spill] sm:$0xff] }
  0xe4   : > { %5616 = vst [vmem:[#allocation52_spill] sm:$0xff] %v2844_v49  ;;  %v5634_v24 = vld [vmem:[#allocation23_spill] sm:$0xff]  ;;  %v5636_v35 = vld [vmem:[#allocation25_spill] sm:$0xff]  ;;  %v5641_v28 = vld [vmem:[#allocation30_spill] sm:$0xff]  ;;  %v5657_v18 = vperm.slane %v5625_v15, 3  ;;  %v5658_v40 = vperm.slane %v5626_v16, 3 }
  0xe5   : > { %5617 = vst [vmem:[#allocation53_spill] sm:$0xff] %v2846_v63  ;;  %v5642_v34 = vld [vmem:[#allocation31_spill] sm:$0xff]  ;;  %v5643_v25 = vld [vmem:[#allocation32_spill] sm:$0xff]  ;;  %v5644_v22 = vld [vmem:[#allocation33_spill] sm:$0xff]  ;;  %v5659_v32 = vperm.slane %v5627_v17, 3  ;;  %v5663_v46 = vperm.slane %v5631_v21, 3 }
  0xe6   : > { %5618 = vst [vmem:[#allocation54_spill] sm:$0xff] %v2848_v26  ;;  %v5649_v44 = vld [vmem:[#allocation38_spill] sm:$0xff]  ;;  %v5650_v56 = vld [vmem:[#allocation39_spill] sm:$0xff]  ;;  %v5651_v39 = vld [vmem:[#allocation40_spill] sm:$0xff]  ;;  %v579_v26 = vmul.f32 %v5657_v18, %v545_v36  ;;  %v580_v38 = vmul.f32 %v5658_v40, %v545_v36  ;;  %v5664_v18 = vperm.slane %v5632_v53, 3  ;;  %v5665_v40 = vperm.slane %v5633_v23, 3 }
  0xe7   : > { %5619 = vst [vmem:[#allocation55_spill] sm:$0xff] %v2850_v27  ;;  %v5652_v33 = vld [vmem:[#allocation41_spill] sm:$0xff]  ;;  %v5654_v50 = vld [vmem:[#allocation43_spill] sm:$0xff]  ;;  %v581_v63 = vmul.f32 %v5659_v32, %v545_v36  ;;  %v585_v9 = vmul.f32 %v5663_v46, %v545_v36  ;;  %v5666_v32 = vperm.slane %v5634_v24, 3  ;;  %v5670_v46 = vperm.slane %v5638_v45, 3 }
  0xe8   : > { %5620 = vst [vmem:[#allocation56_spill] sm:$0xff] %v2852_v10  ;;  %v5655_v10 = vld [vmem:[#allocation44_spill] sm:$0xff]  ;;  %v5656_v27 = vld [vmem:[#allocation45_spill] sm:$0xff]  ;;  %v586_v15 = vmul.f32 %v5664_v18, %v545_v36  ;;  %v587_v16 = vmul.f32 %v5665_v40, %v545_v36  ;;  %v5671_v18 = vperm.slane %v5639_v37, 3  ;;  %v5672_v40 = vperm.slane %v5640_v4, 3 }
  0xe9   : > { %5621 = vst [vmem:[#allocation57_spill] sm:$0xff] %v2854_v11  ;;  %v5662_v11 = vperm.slane %v5630_v47, 3  ;;  %v588_v17 = vmul.f32 %v5666_v32, %v545_v36  ;;  %v592_v21 = vmul.f32 %v5670_v46, %v545_v36  ;;  %v5673_v32 = vperm.slane %v5641_v28, 3 }
  0xea   : > { %5622 = vst [vmem:[#allocation58_spill] sm:$0xff] %v2856_v12  ;;  %v5661_v12 = vperm.slane %v5629_v19, 3  ;;  %v593_v53 = vmul.f32 %v5671_v18, %v545_v36  ;;  %v594_v23 = vmul.f32 %v5672_v40, %v545_v36  ;;  %v5677_v46 = vperm.slane %v5645_v2, 3 }
  0xeb   : > { %5623 = vst [vmem:[#allocation59_spill] sm:$0xff] %v2858_v13  ;;  %v584_v20 = vmul.f32 %v5662_v11, %v545_v36  ;;  %v5669_v11 = vperm.slane %v5637_v55, 3  ;;  %v595_v24 = vmul.f32 %v5673_v32, %v545_v36  ;;  %v5678_v18 = vperm.slane %v5646_v42, 3 }
  0xec   : > { %5624 = vst [vmem:[#allocation60_spill] sm:$0xff] %v2860_v14  ;;  %v5660_v14 = vperm.slane %v5628_v1, 3  ;;  %v583_v49 = vmul.f32 %v5661_v12, %v545_v36  ;;  %v5668_v12 = vperm.slane %v5636_v35, 3  ;;  %v599_v45 = vmul.f32 %v5677_v46, %v545_v36 }
  0xed   : > { %v591_v47 = vmul.f32 %v5669_v11, %v545_v36  ;;  %v5676_v11 = vperm.slane %v5644_v22, 3  ;;  %v600_v37 = vmul.f32 %v5678_v18, %v545_v36  ;;  %v5679_v40 = vperm.slane %v5647_v61, 3 }
  0xee   : > { %v582_v13 = vmul.f32 %v5660_v14, %v545_v36  ;;  %v5667_v14 = vperm.slane %v5635_v8, 3  ;;  %v590_v19 = vmul.f32 %v5668_v12, %v545_v36  ;;  %v5675_v12 = vperm.slane %v5643_v25, 3 }
  0xef   : > { %v598_v55 = vmul.f32 %v5676_v11, %v545_v36  ;;  %v601_v4 = vmul.f32 %v5679_v40, %v545_v36  ;;  %v5680_v32 = vperm.slane %v5648_v29, 3  ;;  %v5683_v11 = vperm.slane %v5651_v39, 3  ;;  %v5690_v39 = vld [vmem:[#allocation47_spill] sm:$0xff] }
  0xf0   : > { %v589_v1 = vmul.f32 %v5667_v14, %v545_v36  ;;  %v5674_v14 = vperm.slane %v5642_v34, 3  ;;  %v597_v35 = vmul.f32 %v5675_v12, %v545_v36  ;;  %v5682_v12 = vperm.slane %v5650_v56, 3  ;;  %v5689_v56 = vld [vmem:[#allocation46_spill] sm:$0xff] }
  0xf1   : > { %v602_v28 = vmul.f32 %v5680_v32, %v545_v36  ;;  %v605_v22 = vmul.f32 %v5683_v11, %v545_v36  ;;  %v5684_v46 = vperm.slane %v5652_v33, 3  ;;  %v5685_v18 = vperm.slane %v5653_v43, 3  ;;  %v5691_v33 = vld [vmem:[#allocation48_spill] sm:$0xff]  ;;  %v5692_v43 = vld [vmem:[#allocation49_spill] sm:$0xff] }
  0xf2   : > { %v596_v8 = vmul.f32 %v5674_v14, %v545_v36  ;;  %v5681_v14 = vperm.slane %v5649_v44, 3  ;;  %v604_v25 = vmul.f32 %v5682_v12, %v545_v36  ;;  %v5686_v40 = vperm.slane %v5654_v50, 3  ;;  %v5693_v50 = vld [vmem:[#allocation50_spill] sm:$0xff] }
  0xf3   : > { %v606_v2 = vmul.f32 %v5684_v46, %v545_v36  ;;  %v607_v42 = vmul.f32 %v5685_v18, %v545_v36  ;;  %v5687_v32 = vperm.slane %v5655_v10, 3  ;;  %v2959_v12 = vadd.f32 %v579_v26, %v5689_v56 }
  0xf4   : > { %v603_v34 = vmul.f32 %v5681_v14, %v545_v36  ;;  %v608_v61 = vmul.f32 %v5686_v40, %v545_v36  ;;  %v5688_v14 = vperm.slane %v5656_v27, 3  ;;  %v2962_v11 = vadd.f32 %v580_v38, %v5690_v39  ;;  %v5722_v39 = vld [vmem:[#allocation20_spill] sm:$0xff] }
  0xf5   : > { %v609_v29 = vmul.f32 %v5687_v32, %v545_v36  ;;  %v2965_v46 = vadd.f32 %v581_v63, %v5691_v33  ;;  %v2968_v18 = vadd.f32 %v582_v13, %v5692_v43  ;;  %v2971_v40 = vadd.f32 %v583_v49, %v5693_v50  ;;  %v5714_v43 = vld [vmem:[#allocation60_spill] sm:$0xff]  ;;  %v3054_v50 = vpop.permute.xlu2 %644 }
  0xf6   : > { %v610_v44 = vmul.f32 %v5688_v14, %v545_v36  ;;  %v2974_v32 = vadd.f32 %v584_v20, %v2808_v59  ;;  %v2977_v36 = vadd.f32 %v585_v9, %v2810_v6  ;;  %v2980_v26 = vadd.f32 %v586_v15, %v2812_v48  ;;  %v5710_v20 = vld [vmem:[#allocation58_spill] sm:$0xff]  ;;  %v5725_v14 = vld [vmem:[#allocation23_spill] sm:$0xff] }
  0xf7   : > { %v2983_v38 = vadd.f32 %v587_v16, %v2814_v31  ;;  %v2986_v63 = vadd.f32 %v588_v17, %v2816_v41  ;;  %v2989_v13 = vadd.f32 %v589_v1, %v2818_v60  ;;  %v2992_v49 = vadd.f32 %v590_v19, %v2820_v3 }
  0xf8   : > { %v2995_v59 = vadd.f32 %v591_v47, %v2822_v30  ;;  %v2998_v6 = vadd.f32 %v592_v21, %v2824_v58  ;;  %v3001_v48 = vadd.f32 %v593_v53, %v2826_v52  ;;  %v3004_v31 = vadd.f32 %v594_v23, %v2828_v51  ;;  %v5696_v51 = vld [vmem:[#allocation51_spill] sm:$0xff] }
  0xf9   : > { %v3007_v41 = vadd.f32 %v595_v24, %v2830_v62  ;;  %v3010_v60 = vadd.f32 %v596_v8, %v2832_v0  ;;  %v3013_v3 = vadd.f32 %v597_v35, %v2834_v57  ;;  %v3016_v30 = vadd.f32 %v598_v55, %v2836_v54  ;;  %v5698_v62 = vld [vmem:[#allocation52_spill] sm:$0xff]  ;;  %v5700_v0 = vld [vmem:[#allocation53_spill] sm:$0xff]  ;;  %v5702_v57 = vld [vmem:[#allocation54_spill] sm:$0xff] }
  0xfa   : > { %v3019_v58 = vadd.f32 %v599_v45, %v2838_v5  ;;  %v3022_v52 = vadd.f32 %v600_v37, %v2840_v7  ;;  %v3025_v9 = vadd.f32 %v601_v4, %v5696_v51  ;;  %v3028_v15 = vadd.f32 %v602_v28, %v5698_v62  ;;  %v5704_v54 = vld [vmem:[#allocation55_spill] sm:$0xff]  ;;  %v5706_v5 = vld [vmem:[#allocation56_spill] sm:$0xff]  ;;  %v5708_v7 = vld [vmem:[#allocation57_spill] sm:$0xff] }
  0xfb   : > { %v3031_v16 = vadd.f32 %v603_v34, %v5700_v0  ;;  %v3034_v17 = vadd.f32 %v604_v25, %v5702_v57  ;;  %v3037_v1 = vadd.f32 %v605_v22, %v5704_v54  ;;  %v3040_v19 = vadd.f32 %v606_v2, %v5706_v5  ;;  %v5712_v53 = vld [vmem:[#allocation59_spill] sm:$0xff]  ;;  %v5716_v8 = vld [vmem:[#allocation14_spill] sm:$0xff]  ;;  %v5718_v2 = vld [vmem:[#allocation16_spill] sm:$0xff] }
  0xfc   : > { %5694 = vst [vmem:[#allocation61_spill] sm:$0xff] %v3019_v58  ;;  %v3043_v47 = vadd.f32 %v607_v42, %v5708_v7  ;;  %v3046_v21 = vadd.f32 %v608_v61, %v5710_v20  ;;  %v3049_v23 = vadd.f32 %v609_v29, %v5712_v53  ;;  %v3052_v24 = vadd.f32 %v610_v44, %v5714_v43  ;;  %v5717_v35 = vld [vmem:[#allocation15_spill] sm:$0xff]  ;;  %v5719_v37 = vld [vmem:[#allocation17_spill] sm:$0xff]  ;;  %v5720_v4 = vld [vmem:[#allocation18_spill] sm:$0xff] }
  0xfd   : > { %5695 = vst [vmem:[#allocation62_spill] sm:$0xff] %v3022_v52  ;;  %v5721_v61 = vld [vmem:[#allocation19_spill] sm:$0xff]  ;;  %v5723_v34 = vld [vmem:[#allocation21_spill] sm:$0xff]  ;;  %v5724_v44 = vld [vmem:[#allocation22_spill] sm:$0xff]  ;;  %v5746_v7 = vperm.slane %v5716_v8, 4  ;;  %v5747_v56 = vperm.slane %v5717_v35, 4  ;;  %v3112_v58 = vpop.permute.xlu2 %744 }
  0xfe   : > { %5697 = vst [vmem:[#allocation63_spill] sm:$0xff] %v3025_v9  ;;  %v5726_v62 = vld [vmem:[#allocation24_spill] sm:$0xff]  ;;  %v5727_v57 = vld [vmem:[#allocation25_spill] sm:$0xff]  ;;  %v5728_v5 = vld [vmem:[#allocation26_spill] sm:$0xff]  ;;  %v5748_v29 = vperm.slane %v5718_v2, 4  ;;  %v5749_v25 = vperm.slane %v5719_v37, 4 }
  0xff   : > { %5699 = vst [vmem:[#allocation64_spill] sm:$0xff] %v3028_v15  ;;  %v5729_v20 = vld [vmem:[#allocation27_spill] sm:$0xff]  ;;  %v5730_v43 = vld [vmem:[#allocation28_spill] sm:$0xff]  ;;  %v5731_v42 = vld [vmem:[#allocation29_spill] sm:$0xff]  ;;  %v679_v53 = vmul.f32 %v5746_v7, %v3054_v50  ;;  %v680_v28 = vmul.f32 %v5747_v56, %v3054_v50  ;;  %v5750_v0 = vperm.slane %v5720_v4, 4  ;;  %v5751_v8 = vperm.slane %v5721_v61, 4 }
 0x100   : > { %5701 = vst [vmem:[#allocation65_spill] sm:$0xff] %v3031_v16  ;;  %v5732_v45 = vld [vmem:[#allocation30_spill] sm:$0xff]  ;;  %v5733_v55 = vld [vmem:[#allocation31_spill] sm:$0xff]  ;;  %v5734_v22 = vld [vmem:[#allocation32_spill] sm:$0xff]  ;;  %v681_v33 = vmul.f32 %v5748_v29, %v3054_v50  ;;  %v682_v51 = vmul.f32 %v5749_v25, %v3054_v50  ;;  %v5752_v35 = vperm.slane %v5722_v39, 4  ;;  %v5753_v2 = vperm.slane %v5723_v34, 4 }
 0x101   : > { %5703 = vst [vmem:[#allocation44_spill] sm:$0xff] %v3034_v17  ;;  %v5741_v17 = vld [vmem:[#allocation39_spill] sm:$0xff]  ;;  %v5742_v16 = vld [vmem:[#allocation40_spill] sm:$0xff]  ;;  %v5743_v15 = vld [vmem:[#allocation41_spill] sm:$0xff]  ;;  %v683_v54 = vmul.f32 %v5750_v0, %v3054_v50  ;;  %v684_v7 = vmul.f32 %v5751_v8, %v3054_v50  ;;  %v5755_v25 = vperm.slane %v5724_v44, 4  ;;  %v5756_v0 = vperm.slane %v5725_v14, 4 }
 0x102   : > { %5705 = vst [vmem:[#allocation45_spill] sm:$0xff] %v3037_v1  ;;  %v5740_v1 = vld [vmem:[#allocation38_spill] sm:$0xff]  ;;  %v5745_v52 = vld [vmem:[#allocation43_spill] sm:$0xff]  ;;  %v685_v56 = vmul.f32 %v5752_v35, %v3054_v50  ;;  %v686_v29 = vmul.f32 %v5753_v2, %v3054_v50  ;;  %v5757_v8 = vperm.slane %v5726_v62, 4  ;;  %v5758_v35 = vperm.slane %v5727_v57, 4 }
 0x103   : > { %5707 = vst [vmem:[#allocation46_spill] sm:$0xff] %v3040_v19  ;;  %v5739_v19 = vld [vmem:[#allocation37_spill] sm:$0xff]  ;;  %v5744_v9 = vld [vmem:[#allocation42_spill] sm:$0xff]  ;;  %v687_v37 = vmul.f32 %v5755_v25, %v3054_v50  ;;  %v688_v4 = vmul.f32 %v5756_v0, %v3054_v50  ;;  %v5759_v2 = vperm.slane %v5728_v5, 4  ;;  %v5760_v44 = vperm.slane %v5729_v20, 4 }
 0x104   : > { %5709 = vst [vmem:[#allocation47_spill] sm:$0xff] %v3043_v47  ;;  %v5738_v47 = vld [vmem:[#allocation36_spill] sm:$0xff]  ;;  %v689_v61 = vmul.f32 %v5757_v8, %v3054_v50  ;;  %v690_v39 = vmul.f32 %v5758_v35, %v3054_v50  ;;  %v5761_v14 = vperm.slane %v5730_v43, 4  ;;  %v5762_v62 = vperm.slane %v5731_v42, 4 }
 0x105   : > { %5711 = vst [vmem:[#allocation48_spill] sm:$0xff] %v3046_v21  ;;  %v5737_v21 = vld [vmem:[#allocation35_spill] sm:$0xff]  ;;  %v692_v25 = vmul.f32 %v5760_v44, %v3054_v50  ;;  %v5763_v57 = vperm.slane %v5732_v45, 4  ;;  %v5764_v5 = vperm.slane %v5733_v55, 4  ;;  %v5765_v20 = vperm.slane %v5734_v22, 4 }
 0x106   : > { %5713 = vst [vmem:[#allocation49_spill] sm:$0xff] %v3049_v23  ;;  %v5736_v23 = vld [vmem:[#allocation34_spill] sm:$0xff]  ;;  %v693_v0 = vmul.f32 %v5761_v14, %v3054_v50  ;;  %v694_v8 = vmul.f32 %v5762_v62, %v3054_v50  ;;  %v5768_v45 = vperm.slane %v5737_v21, 4  ;;  %v5769_v55 = vperm.slane %v5738_v47, 4 }
 0x107   : > { %5715 = vst [vmem:[#allocation50_spill] sm:$0xff] %v3052_v24  ;;  %v5735_v24 = vld [vmem:[#allocation33_spill] sm:$0xff]  ;;  %v695_v35 = vmul.f32 %v5763_v57, %v3054_v50  ;;  %v697_v44 = vmul.f32 %v5765_v20, %v3054_v50  ;;  %v5767_v42 = vperm.slane %v5736_v23, 4  ;;  %v5770_v22 = vperm.slane %v5739_v19, 4 }
 0x108   : > { %5754 = vst [vmem:[#allocation51_spill] sm:$0xff] %v3112_v58  ;;  %v691_v58 = vmul.f32 %v5759_v2, %v3054_v50  ;;  %v696_v2 = vmul.f32 %v5764_v5, %v3054_v50  ;;  %v5766_v43 = vperm.slane %v5735_v24, 4  ;;  %v700_v57 = vmul.f32 %v5768_v45, %v3054_v50 }
 0x109   : > { %v699_v62 = vmul.f32 %v5767_v42, %v3054_v50  ;;  %v701_v5 = vmul.f32 %v5769_v55, %v3054_v50  ;;  %v3162_v20 = vmul.f32 %v5770_v22, %v3054_v50  ;;  %v5774_v42 = vperm.slane %v5741_v17, 4 }
 0x10a   : > { %v698_v14 = vmul.f32 %v5766_v43, %v3054_v50  ;;  %v5772_v43 = vperm.slane %v5740_v1, 4  ;;  %v5776_v45 = vperm.slane %v5742_v16, 4  ;;  %v5778_v55 = vperm.slane %v5743_v15, 4 }
 0x10b   : > { %5771 = vst [vmem:[#allocation52_spill] sm:$0xff] %v3162_v20  ;;  %v3172_v23 = vmul.f32 %v5774_v42, %v3054_v50  ;;  %v5780_v20 = vperm.slane %v5744_v9, 4 }
 0x10c   : > { %v3167_v24 = vmul.f32 %v5772_v43, %v3054_v50  ;;  %v3177_v47 = vmul.f32 %v5776_v45, %v3054_v50  ;;  %v3182_v22 = vmul.f32 %v5778_v55, %v3054_v50 }
 0x10d   : > { %5775 = vst [vmem:[#allocation54_spill] sm:$0xff] %v3172_v23  ;;  %v3187_v43 = vmul.f32 %v5780_v20, %v3054_v50  ;;  %v5784_v23 = vperm.slane %v5655_v10, 4  ;;  %v3208_v20 = vadd.f32 %v680_v28, %v2962_v11  ;;  %v3229_v11 = vadd.f32 %v687_v37, %v2983_v38 }
 0x10e   : > { %5773 = vst [vmem:[#allocation53_spill] sm:$0xff] %v3167_v24  ;;  %v5782_v24 = vperm.slane %v5745_v52, 4  ;;  %v3250_v38 = vadd.f32 %v694_v8, %v3004_v31  ;;  %v5812_v31 = vld [vmem:[#allocation63_spill] sm:$0xff] }
 0x10f   : > { %5777 = vst [vmem:[#allocation55_spill] sm:$0xff] %v3177_v47  ;;  %v3197_v45 = vmul.f32 %v5784_v23, %v3054_v50  ;;  %v5786_v47 = vperm.slane %v5656_v27, 4  ;;  %v3217_v23 = vadd.f32 %v683_v54, %v2971_v40  ;;  %v3238_v40 = vadd.f32 %v690_v39, %v2992_v49  ;;  %v5820_v54 = vld [vmem:[#allocation17_spill] sm:$0xff] }
 0x110   : > { %5779 = vst [vmem:[#allocation56_spill] sm:$0xff] %v3182_v22  ;;  %v3192_v42 = vmul.f32 %v5782_v24, %v3054_v50  ;;  %v3205_v22 = vadd.f32 %v679_v53, %v2959_v12  ;;  %v3214_v24 = vadd.f32 %v682_v51, %v2968_v18  ;;  %v3226_v12 = vadd.f32 %v686_v29, %v2980_v26 }
 0x111   : > { %5781 = vst [vmem:[#allocation57_spill] sm:$0xff] %v3187_v43  ;;  %v3202_v55 = vmul.f32 %v5786_v47, %v3054_v50  ;;  %v3211_v43 = vadd.f32 %v681_v33, %v2965_v46  ;;  %v3223_v47 = vadd.f32 %v685_v56, %v2977_v36  ;;  %v3232_v46 = vadd.f32 %v688_v4, %v2986_v63  ;;  %v1078_v63 = vpop.permute.xlu2 %1077  ;;  %v5818_v33 = vld [vmem:[#allocation16_spill] sm:$0xff]  ;;  %v5822_v56 = vld [vmem:[#allocation18_spill] sm:$0xff] }
 0x112   : > { %5783 = vst [vmem:[#allocation58_spill] sm:$0xff] %v3192_v42  ;;  %v3235_v18 = vadd.f32 %v689_v61, %v2989_v13  ;;  %v3244_v36 = vadd.f32 %v692_v25, %v2998_v6  ;;  %v3247_v26 = vadd.f32 %v693_v0, %v3001_v48  ;;  %v3253_v50 = vadd.f32 %v695_v35, %v3007_v41  ;;  %v5808_v6 = vld [vmem:[#allocation61_spill] sm:$0xff]  ;;  %v5810_v48 = vld [vmem:[#allocation62_spill] sm:$0xff]  ;;  %v5824_v0 = vld [vmem:[#allocation19_spill] sm:$0xff] }
 0x113   : > { %5785 = vst [vmem:[#allocation59_spill] sm:$0xff] %v3197_v45  ;;  %v3220_v45 = vadd.f32 %v684_v7, %v2974_v32  ;;  %v3241_v32 = vadd.f32 %v691_v58, %v2995_v59  ;;  %v3256_v13 = vadd.f32 %v696_v2, %v3010_v60  ;;  %v3259_v49 = vadd.f32 %v697_v44, %v3013_v3  ;;  %v5814_v41 = vld [vmem:[#allocation14_spill] sm:$0xff]  ;;  %v5816_v60 = vld [vmem:[#allocation15_spill] sm:$0xff]  ;;  %v5826_v2 = vld [vmem:[#allocation20_spill] sm:$0xff] }
 0x114   : > { %5787 = vst [vmem:[#allocation60_spill] sm:$0xff] %v3202_v55  ;;  %v3262_v59 = vadd.f32 %v698_v14, %v3016_v30  ;;  %v3265_v58 = vadd.f32 %v699_v62, %v5808_v6  ;;  %v3268_v37 = vadd.f32 %v700_v57, %v5810_v48  ;;  %v3271_v4 = vadd.f32 %v701_v5, %v5812_v31  ;;  %v5829_v5 = vld [vmem:[#allocation22_spill] sm:$0xff]  ;;  %v5831_v31 = vld [vmem:[#allocation23_spill] sm:$0xff] }
 0x115   : > { %5788 = vst [vmem:[#allocation39_spill] sm:$0xff] %v3205_v22  ;;  %v5815_v61 = vperm.slane %v5814_v41, 0  ;;  %v5817_v39 = vperm.slane %v5816_v60, 0  ;;  %v5819_v30 = vperm.slane %v5818_v33, 0  ;;  %v5821_v53 = vperm.slane %v5820_v54, 0 }
 0x116   : > { %5789 = vst [vmem:[#allocation40_spill] sm:$0xff] %v3208_v20  ;;  %v5823_v29 = vperm.slane %v5822_v56, 0  ;;  %v5825_v8 = vperm.slane %v5824_v0, 0  ;;  %v5827_v44 = vperm.slane %v5826_v2, 0  ;;  %v5828_v62 = vperm.slane %v5723_v34, 0  ;;  %v5862_v20 = vld [vmem:[#allocation36_spill] sm:$0xff] }
 0x117   : > { %5790 = vst [vmem:[#allocation41_spill] sm:$0xff] %v3211_v43  ;;  %v3275_v28 = vmul.f32 %v1078_v63, %v5815_v61  ;;  %v3279_v3 = vmul.f32 %v1078_v63, %v5817_v39  ;;  %v3283_v51 = vmul.f32 %v1078_v63, %v5819_v30  ;;  %v3287_v7 = vmul.f32 %v1078_v63, %v5821_v53  ;;  %v5833_v30 = vld [vmem:[#allocation24_spill] sm:$0xff] }
 0x118   : > { %5791 = vst [vmem:[#allocation42_spill] sm:$0xff] %v3214_v24  ;;  %v3291_v25 = vmul.f32 %v1078_v63, %v5823_v29  ;;  %v3295_v35 = vmul.f32 %v1078_v63, %v5825_v8  ;;  %v3299_v14 = vmul.f32 %v1078_v63, %v5827_v44  ;;  %v3303_v57 = vmul.f32 %v1078_v63, %v5828_v62  ;;  %v5835_v8 = vld [vmem:[#allocation25_spill] sm:$0xff] }
 0x119   : > { %5792 = vst [vmem:[#allocation43_spill] sm:$0xff] %v3217_v23  ;;  %v5830_v6 = vperm.slane %v5829_v5, 0  ;;  %v5832_v61 = vperm.slane %v5831_v31, 0  ;;  %v5834_v53 = vperm.slane %v5833_v30, 0  ;;  %v5857_v23 = vld [vmem:[#allocation34_spill] sm:$0xff]  ;;  %v5863_v22 = vperm.slane %v5862_v20, 0 }
 0x11a   : > { %5793 = vst [vmem:[#allocation66_spill] sm:$0xff] %v3220_v45  ;;  %v5865_v55 = vperm.slane %v5739_v19, 0  ;;  %v5867_v42 = vperm.slane %v5740_v1, 0 }
 0x11b   : > { %5794 = vst [vmem:[#allocation67_spill] sm:$0xff] %v3223_v47  ;;  %v3307_v48 = vmul.f32 %v1078_v63, %v5830_v6  ;;  %v3311_v39 = vmul.f32 %v1078_v63, %v5832_v61  ;;  %v3315_v29 = vmul.f32 %v1078_v63, %v5834_v53  ;;  %v5854_v47 = vld [vmem:[#allocation33_spill] sm:$0xff] }
 0x11c   : > { %5795 = vst [vmem:[#allocation68_spill] sm:$0xff] %v3226_v12 }
 0x11d   : > { %5796 = vst [vmem:[#allocation69_spill] sm:$0xff] %v3229_v11  ;;  %v5851_v11 = vld [vmem:[#allocation32_spill] sm:$0xff] }
 0x11e   : > { %5797 = vst [vmem:[#allocation70_spill] sm:$0xff] %v3232_v46 }
 0x11f   : > { %5798 = vst [vmem:[#allocation71_spill] sm:$0xff] %v3235_v18  ;;  %v5848_v18 = vld [vmem:[#allocation31_spill] sm:$0xff] }
 0x120   : > { %5799 = vst [vmem:[#allocation72_spill] sm:$0xff] %v3238_v40  ;;  %v1114_v40 = vpop.permute.xlu0 %1113 }
 0x121   : > { %5800 = vst [vmem:[#allocation73_spill] sm:$0xff] %v3241_v32 }
 0x122   : > { %5801 = vst [vmem:[#allocation74_spill] sm:$0xff] %v3244_v36  ;;  %v5845_v36 = vld [vmem:[#allocation30_spill] sm:$0xff] }
 0x123   : > { %5802 = vst [vmem:[#allocation75_spill] sm:$0xff] %v3247_v26  ;;  %v5846_v32 = vperm.slane %v5845_v36, 0 }
 0x124   : > { %5803 = vst [vmem:[#allocation76_spill] sm:$0xff] %v3250_v38  ;;  %v5843_v38 = vld [vmem:[#allocation29_spill] sm:$0xff] }
 0x125   : > { %5804 = vst [vmem:[#allocation77_spill] sm:$0xff] %v3253_v50  ;;  %v5844_v26 = vperm.slane %v5843_v38, 0 }
 0x126   : > { %5805 = vst [vmem:[#allocation78_spill] sm:$0xff] %v3256_v13  ;;  %v5841_v13 = vld [vmem:[#allocation28_spill] sm:$0xff] }
 0x127   : > { %5806 = vst [vmem:[#allocation79_spill] sm:$0xff] %v3259_v49  ;;  %v5842_v50 = vperm.slane %v5841_v13, 0  ;;  %v3335_v53 = vmul.f32 %v1078_v63, %v5844_v26  ;;  %v5858_v26 = vperm.slane %v5857_v23, 0 }
 0x128   : > { %5807 = vst [vmem:[#allocation80_spill] sm:$0xff] %v3262_v59  ;;  %v5839_v59 = vld [vmem:[#allocation27_spill] sm:$0xff] }
 0x129   : > { %5809 = vst [vmem:[#allocation61_spill] sm:$0xff] %v3265_v58  ;;  %v5840_v49 = vperm.slane %v5839_v59, 0  ;;  %v3331_v61 = vmul.f32 %v1078_v63, %v5842_v50  ;;  %v5855_v50 = vperm.slane %v5854_v47, 0  ;;  %v3355_v24 = vmul.f32 %v1078_v63, %v5858_v26 }
 0x12a   : > { %5811 = vst [vmem:[#allocation62_spill] sm:$0xff] %v3268_v37  ;;  %v5837_v37 = vld [vmem:[#allocation26_spill] sm:$0xff] }
 0x12b   : > { %5813 = vst [vmem:[#allocation63_spill] sm:$0xff] %v3271_v4  ;;  %v5836_v4 = vperm.slane %v5835_v8, 0  ;;  %v5838_v58 = vperm.slane %v5837_v37, 0  ;;  %v3327_v6 = vmul.f32 %v1078_v63, %v5840_v49  ;;  %v5852_v49 = vperm.slane %v5851_v11, 0 }
 0x12c   : > { %v3351_v45 = vmul.f32 %v1078_v63, %v5855_v50  ;;  %5859 = vst [vmem:[#allocation85_spill] sm:$0xff] %v3355_v24  ;;  %v3371_v50 = vmul.f32 %v1078_v63, %v5867_v42  ;;  %v5871_v24 = vperm.slane %v5742_v16, 0 }
 0x12d   : > { %v3319_v44 = vmul.f32 %v1078_v63, %v5836_v4  ;;  %v3323_v62 = vmul.f32 %v1078_v63, %v5838_v58  ;;  %v3339_v4 = vmul.f32 %v1078_v63, %v5846_v32  ;;  %v5849_v58 = vperm.slane %v5848_v18, 0 }
 0x12e   : > { %v3347_v12 = vmul.f32 %v1078_v63, %v5852_v49  ;;  %5856 = vst [vmem:[#allocation84_spill] sm:$0xff] %v3351_v45  ;;  %v5860_v32 = vperm.slane %v5737_v21, 0  ;;  %v3367_v49 = vmul.f32 %v1078_v63, %v5865_v55  ;;  %v5869_v45 = vperm.slane %v5741_v17, 0 }
 0x12f   : > { %5847 = vst [vmem:[#allocation81_spill] sm:$0xff] %v3339_v4  ;;  %v3343_v46 = vmul.f32 %v1078_v63, %v5849_v58  ;;  %v3363_v58 = vmul.f32 %v1078_v63, %v5863_v22 }
 0x130   : > { %5853 = vst [vmem:[#allocation83_spill] sm:$0xff] %v3347_v12  ;;  %v3359_v43 = vmul.f32 %v1078_v63, %v5860_v32  ;;  %v3375_v26 = vmul.f32 %v1078_v63, %v5869_v45  ;;  %v3379_v32 = vmul.f32 %v1078_v63, %v5871_v24 }
 0x131   : > { %5850 = vst [vmem:[#allocation82_spill] sm:$0xff] %v3343_v46  ;;  %v5886_v46 = vperm.slane %v5822_v56, 1  ;;  %v5893_v56 = vperm.slane %v5833_v30, 1 }
 0x132   : > { %5861 = vst [vmem:[#allocation86_spill] sm:$0xff] %v3359_v43  ;;  %v5873_v43 = vperm.slane %v5743_v15, 0 }
 0x133   : > { %5864 = vst [vmem:[#allocation87_spill] sm:$0xff] %v3363_v58  ;;  %v5875_v58 = vperm.slane %v5744_v9, 0 }
 0x134   : > { %5866 = vst [vmem:[#allocation88_spill] sm:$0xff] %v3367_v49  ;;  %v3383_v22 = vmul.f32 %v1078_v63, %v5873_v43  ;;  %v5877_v49 = vperm.slane %v5745_v52, 0 }
 0x135   : > { %5868 = vst [vmem:[#allocation89_spill] sm:$0xff] %v3371_v50  ;;  %v3387_v55 = vmul.f32 %v1078_v63, %v5875_v58  ;;  %v5879_v50 = vperm.slane %v5655_v10, 0  ;;  %v5884_v58 = vperm.slane %v5818_v33, 1  ;;  %v3419_v33 = vpop.permute.xlu1 %844 }
 0x136   : > { %5870 = vst [vmem:[#allocation90_spill] sm:$0xff] %v3375_v26  ;;  %v3391_v42 = vmul.f32 %v1078_v63, %v5877_v49  ;;  %v5881_v26 = vperm.slane %v5656_v27, 0  ;;  %v5885_v49 = vperm.slane %v5820_v54, 1 }
 0x137   : > { %5872 = vst [vmem:[#allocation91_spill] sm:$0xff] %v3379_v32  ;;  %v3395_v45 = vmul.f32 %v1078_v63, %v5879_v50  ;;  %v5882_v32 = vperm.slane %v5814_v41, 1  ;;  %v1120_v50 = vmul.f32 %v1114_v40, %v5886_v46  ;;  %v1126_v46 = vmul.f32 %v1114_v40, %v5893_v56 }
 0x138   : > { %5874 = vst [vmem:[#allocation92_spill] sm:$0xff] %v3383_v22  ;;  %v3399_v24 = vmul.f32 %v1078_v63, %v5881_v26  ;;  %v5883_v22 = vperm.slane %v5816_v60, 1  ;;  %v5888_v63 = vperm.slane %v5826_v2, 1  ;;  %v5895_v2 = vperm.slane %v5837_v37, 1 }
 0x139   : > { %5876 = vst [vmem:[#allocation93_spill] sm:$0xff] %v3387_v55  ;;  %v1116_v43 = vmul.f32 %v1114_v40, %v5882_v32  ;;  %v1118_v55 = vmul.f32 %v1114_v40, %v5884_v58  ;;  %v5889_v32 = vperm.slane %v5723_v34, 1  ;;  %v5892_v58 = vperm.slane %v5831_v31, 1 }
 0x13a   : > { %5878 = vst [vmem:[#allocation94_spill] sm:$0xff] %v3391_v42  ;;  %v1117_v12 = vmul.f32 %v1114_v40, %v5883_v22  ;;  %v1119_v42 = vmul.f32 %v1114_v40, %v5885_v49  ;;  %v1122_v26 = vmul.f32 %v1114_v40, %v5888_v63  ;;  %v5890_v22 = vperm.slane %v5829_v5, 1 }
 0x13b   : > { %5880 = vst [vmem:[#allocation95_spill] sm:$0xff] %v3395_v45  ;;  %v5887_v45 = vperm.slane %v5824_v0, 1  ;;  %v1123_v41 = vmul.f32 %v1114_v40, %v5889_v32  ;;  %v1125_v49 = vmul.f32 %v1114_v40, %v5892_v58  ;;  %v5894_v0 = vperm.slane %v5835_v8, 1 }
 0x13c   : > { %v1124_v60 = vmul.f32 %v1114_v40, %v5890_v22  ;;  %5891 = vst [vmem:[#allocation96_spill] sm:$0xff] %v3419_v33  ;;  %v1128_v63 = vmul.f32 %v1114_v40, %v5895_v2  ;;  %v5896_v34 = vperm.slane %v5839_v59, 1  ;;  %v5897_v5 = vperm.slane %v5841_v13, 1 }
 0x13d   : > { %v1121_v4 = vmul.f32 %v1114_v40, %v5887_v45  ;;  %v1127_v45 = vmul.f32 %v1114_v40, %v5894_v0  ;;  %v5898_v33 = vperm.slane %v5843_v38, 1  ;;  %v5899_v58 = vperm.slane %v5845_v36, 1 }
 0x13e   : > { %v1129_v32 = vmul.f32 %v1114_v40, %v5896_v34  ;;  %v1130_v22 = vmul.f32 %v1114_v40, %v5897_v5  ;;  %v5900_v56 = vperm.slane %v5848_v18, 1  ;;  %v5901_v0 = vperm.slane %v5851_v11, 1 }
 0x13f   : > { %v1131_v54 = vmul.f32 %v1114_v40, %v5898_v33  ;;  %v1132_v31 = vmul.f32 %v1114_v40, %v5899_v58  ;;  %v5902_v2 = vperm.slane %v5854_v47, 1  ;;  %v5903_v34 = vperm.slane %v5857_v23, 1 }
 0x140   : > { %v1133_v30 = vmul.f32 %v1114_v40, %v5900_v56  ;;  %v1134_v8 = vmul.f32 %v1114_v40, %v5901_v0  ;;  %v5904_v5 = vperm.slane %v5737_v21, 1  ;;  %v5905_v33 = vperm.slane %v5862_v20, 1 }
 0x141   : > { %v1135_v37 = vmul.f32 %v1114_v40, %v5902_v2  ;;  %v1136_v59 = vmul.f32 %v1114_v40, %v5903_v34  ;;  %v5906_v58 = vperm.slane %v5739_v19, 1  ;;  %v5907_v56 = vperm.slane %v5740_v1, 1 }
 0x142   : > { %v1137_v13 = vmul.f32 %v1114_v40, %v5904_v5  ;;  %v1138_v38 = vmul.f32 %v1114_v40, %v5905_v33  ;;  %v5908_v0 = vperm.slane %v5741_v17, 1  ;;  %v5909_v2 = vperm.slane %v5742_v16, 1 }
 0x143   : > { %v1139_v36 = vmul.f32 %v1114_v40, %v5906_v58  ;;  %v1140_v18 = vmul.f32 %v1114_v40, %v5907_v56  ;;  %v5910_v34 = vperm.slane %v5743_v15, 1  ;;  %v5911_v5 = vperm.slane %v5744_v9, 1 }
 0x144   : > { %v1141_v11 = vmul.f32 %v1114_v40, %v5908_v0  ;;  %v1142_v47 = vmul.f32 %v1114_v40, %v5909_v2  ;;  %v5912_v33 = vperm.slane %v5745_v52, 1  ;;  %v5913_v58 = vperm.slane %v5655_v10, 1 }
 0x145   : > { %v1143_v23 = vmul.f32 %v1114_v40, %v5910_v34  ;;  %v1144_v21 = vmul.f32 %v1114_v40, %v5911_v5  ;;  %v5914_v56 = vperm.slane %v5656_v27, 1  ;;  %v3468_v0 = vadd.f32 %v1116_v43, %v3275_v28 }
 0x146   : > { %v1145_v20 = vmul.f32 %v1114_v40, %v5912_v33  ;;  %v1146_v19 = vmul.f32 %v1114_v40, %v5913_v58  ;;  %v3471_v2 = vadd.f32 %v1117_v12, %v3279_v3  ;;  %v3474_v34 = vadd.f32 %v1118_v55, %v3283_v51 }
 0x147   : > { %v1147_v1 = vmul.f32 %v1114_v40, %v5914_v56  ;;  %v3477_v5 = vadd.f32 %v1119_v42, %v3287_v7  ;;  %v3480_v33 = vadd.f32 %v1120_v50, %v3291_v25  ;;  %v3483_v58 = vadd.f32 %v1121_v4, %v3295_v35 }
 0x148   : > { %v3486_v40 = vadd.f32 %v1122_v26, %v3299_v14  ;;  %v3489_v28 = vadd.f32 %v1123_v41, %v3303_v57  ;;  %v3492_v12 = vadd.f32 %v1124_v60, %v3307_v48  ;;  %v3495_v3 = vadd.f32 %v1125_v49, %v3311_v39  ;;  %v5915_v14 = vld [vmem:[#allocation81_spill] sm:$0xff]  ;;  %v1182_v48 = vpop.permute.xlu1 %1181  ;;  %v5916_v39 = vld [vmem:[#allocation82_spill] sm:$0xff] }
 0x149   : > { %v3498_v51 = vadd.f32 %v1126_v46, %v3315_v29  ;;  %v3501_v7 = vadd.f32 %v1127_v45, %v3319_v44  ;;  %v3504_v25 = vadd.f32 %v1128_v63, %v3323_v62  ;;  %v3507_v35 = vadd.f32 %v1129_v32, %v3327_v6  ;;  %v5918_v44 = vld [vmem:[#allocation83_spill] sm:$0xff]  ;;  %v5920_v62 = vld [vmem:[#allocation84_spill] sm:$0xff]  ;;  %v5922_v6 = vld [vmem:[#allocation85_spill] sm:$0xff] }
 0x14a   : > { %v3510_v41 = vadd.f32 %v1130_v22, %v3331_v61  ;;  %v3513_v60 = vadd.f32 %v1131_v54, %v3335_v53  ;;  %v3516_v57 = vadd.f32 %v1132_v31, %v5915_v14  ;;  %v3519_v29 = vadd.f32 %v1133_v30, %v5916_v39  ;;  %v5924_v61 = vld [vmem:[#allocation86_spill] sm:$0xff]  ;;  %v5926_v54 = vld [vmem:[#allocation87_spill] sm:$0xff]  ;;  %v5928_v31 = vld [vmem:[#allocation88_spill] sm:$0xff] }
 0x14b   : > { %v3522_v4 = vadd.f32 %v1134_v8, %v5918_v44  ;;  %v3525_v55 = vadd.f32 %v1135_v37, %v5920_v62  ;;  %v3528_v42 = vadd.f32 %v1136_v59, %v5922_v6  ;;  %v3531_v43 = vadd.f32 %v1137_v13, %v5924_v61  ;;  %v5930_v30 = vld [vmem:[#allocation89_spill] sm:$0xff]  ;;  %v5932_v8 = vld [vmem:[#allocation90_spill] sm:$0xff]  ;;  %v5934_v37 = vld [vmem:[#allocation91_spill] sm:$0xff] }
 0x14c   : > { %5917 = vst [vmem:[#allocation81_spill] sm:$0xff] %v3519_v29  ;;  %v3534_v53 = vadd.f32 %v1138_v38, %v5926_v54  ;;  %v3537_v50 = vadd.f32 %v1139_v36, %v5928_v31  ;;  %v3540_v26 = vadd.f32 %v1140_v18, %v5930_v30  ;;  %v3543_v49 = vadd.f32 %v1141_v11, %v5932_v8  ;;  %v5936_v59 = vld [vmem:[#allocation92_spill] sm:$0xff]  ;;  %v5938_v13 = vld [vmem:[#allocation93_spill] sm:$0xff]  ;;  %v5940_v38 = vld [vmem:[#allocation94_spill] sm:$0xff] }
 0x14d   : > { %5919 = vst [vmem:[#allocation82_spill] sm:$0xff] %v3522_v4  ;;  %v3546_v46 = vadd.f32 %v1142_v47, %v5934_v37  ;;  %v3549_v45 = vadd.f32 %v1143_v23, %v5936_v59  ;;  %v3552_v63 = vadd.f32 %v1144_v21, %v5938_v13  ;;  %v3555_v32 = vadd.f32 %v1145_v20, %v5940_v38  ;;  %v5942_v36 = vld [vmem:[#allocation95_spill] sm:$0xff]  ;;  %v5945_v11 = vld [vmem:[#allocation14_spill] sm:$0xff]  ;;  %v5949_v23 = vld [vmem:[#allocation16_spill] sm:$0xff] }
 0x14e   : > { %5921 = vst [vmem:[#allocation83_spill] sm:$0xff] %v3525_v55  ;;  %v3558_v22 = vadd.f32 %v1146_v19, %v5942_v36  ;;  %v3561_v18 = vadd.f32 %v1147_v1, %v3399_v24  ;;  %v5946_v56 = vperm.slane %v5945_v11, 2  ;;  %v5947_v47 = vld [vmem:[#allocation15_spill] sm:$0xff]  ;;  %v5950_v62 = vperm.slane %v5949_v23, 2  ;;  %v5951_v21 = vld [vmem:[#allocation17_spill] sm:$0xff]  ;;  %v5953_v20 = vld [vmem:[#allocation18_spill] sm:$0xff] }
 0x14f   : > { %5923 = vst [vmem:[#allocation84_spill] sm:$0xff] %v3528_v42  ;;  %v5948_v39 = vperm.slane %v5947_v47, 2  ;;  %v5952_v61 = vperm.slane %v5951_v21, 2  ;;  %v5954_v31 = vperm.slane %v5953_v20, 2  ;;  %v5955_v19 = vld [vmem:[#allocation19_spill] sm:$0xff]  ;;  %v5957_v1 = vld [vmem:[#allocation20_spill] sm:$0xff] }
 0x150   : > { %5925 = vst [vmem:[#allocation85_spill] sm:$0xff] %v3531_v43  ;;  %v1184_v14 = vmul.f32 %v1182_v48, %v5946_v56  ;;  %v1186_v6 = vmul.f32 %v1182_v48, %v5950_v62  ;;  %v5956_v8 = vperm.slane %v5955_v19, 2  ;;  %v5958_v24 = vperm.slane %v5957_v1, 2  ;;  %v5959_v13 = vld [vmem:[#allocation21_spill] sm:$0xff]  ;;  %v5961_v56 = vld [vmem:[#allocation22_spill] sm:$0xff]  ;;  %v5963_v23 = vld [vmem:[#allocation23_spill] sm:$0xff] }
 0x151   : > { %5927 = vst [vmem:[#allocation86_spill] sm:$0xff] %v3534_v53  ;;  %v1185_v44 = vmul.f32 %v1182_v48, %v5948_v39  ;;  %v1187_v54 = vmul.f32 %v1182_v48, %v5952_v61  ;;  %v1188_v30 = vmul.f32 %v1182_v48, %v5954_v31  ;;  %v5960_v38 = vperm.slane %v5959_v13, 2  ;;  %v5965_v21 = vld [vmem:[#allocation24_spill] sm:$0xff]  ;;  %v5967_v20 = vld [vmem:[#allocation25_spill] sm:$0xff]  ;;  %v5969_v19 = vld [vmem:[#allocation26_spill] sm:$0xff] }
 0x152   : > { %5929 = vst [vmem:[#allocation87_spill] sm:$0xff] %v3537_v50  ;;  %v1189_v37 = vmul.f32 %v1182_v48, %v5956_v8  ;;  %v1190_v59 = vmul.f32 %v1182_v48, %v5958_v24  ;;  %v5962_v39 = vperm.slane %v5961_v56, 2  ;;  %v5964_v62 = vperm.slane %v5963_v23, 2  ;;  %v5971_v1 = vld [vmem:[#allocation27_spill] sm:$0xff]  ;;  %v5973_v13 = vld [vmem:[#allocation28_spill] sm:$0xff]  ;;  %v5975_v56 = vld [vmem:[#allocation29_spill] sm:$0xff] }
 0x153   : > { %5931 = vst [vmem:[#allocation88_spill] sm:$0xff] %v3540_v26  ;;  %v1191_v36 = vmul.f32 %v1182_v48, %v5960_v38  ;;  %v5966_v61 = vperm.slane %v5965_v21, 2  ;;  %v5968_v31 = vperm.slane %v5967_v20, 2  ;;  %v5970_v8 = vperm.slane %v5969_v19, 2  ;;  %v5977_v23 = vld [vmem:[#allocation30_spill] sm:$0xff]  ;;  %v5979_v21 = vld [vmem:[#allocation31_spill] sm:$0xff] }
 0x154   : > { %5933 = vst [vmem:[#allocation89_spill] sm:$0xff] %v3543_v49  ;;  %v1192_v47 = vmul.f32 %v1182_v48, %v5962_v39  ;;  %v1193_v11 = vmul.f32 %v1182_v48, %v5964_v62  ;;  %v5972_v24 = vperm.slane %v5971_v1, 2  ;;  %v5974_v38 = vperm.slane %v5973_v13, 2  ;;  %v5981_v20 = vld [vmem:[#allocation32_spill] sm:$0xff]  ;;  %v5983_v19 = vld [vmem:[#allocation33_spill] sm:$0xff]  ;;  %v5985_v1 = vld [vmem:[#allocation34_spill] sm:$0xff] }
 0x155   : > { %5935 = vst [vmem:[#allocation90_spill] sm:$0xff] %v3546_v46  ;;  %v5976_v39 = vperm.slane %v5975_v56, 2  ;;  %v5978_v62 = vperm.slane %v5977_v23, 2  ;;  %v5987_v13 = vld [vmem:[#allocation35_spill] sm:$0xff]  ;;  %v5989_v56 = vld [vmem:[#allocation36_spill] sm:$0xff]  ;;  %v5991_v23 = vld [vmem:[#allocation37_spill] sm:$0xff] }
 0x156   : > { %5937 = vst [vmem:[#allocation91_spill] sm:$0xff] %v3549_v45  ;;  %v1198_v45 = vmul.f32 %v1182_v48, %v5974_v38  ;;  %v5988_v38 = vperm.slane %v5987_v13, 2 }
 0x157   : > { %5939 = vst [vmem:[#allocation92_spill] sm:$0xff] %v3552_v63  ;;  %v1197_v63 = vmul.f32 %v1182_v48, %v5972_v24  ;;  %v1199_v46 = vmul.f32 %v1182_v48, %v5976_v39  ;;  %v1200_v49 = vmul.f32 %v1182_v48, %v5978_v62  ;;  %v5986_v24 = vperm.slane %v5985_v1, 2 }
 0x158   : > { %5941 = vst [vmem:[#allocation93_spill] sm:$0xff] %v3555_v32  ;;  %v1196_v32 = vmul.f32 %v1182_v48, %v5970_v8  ;;  %v5984_v8 = vperm.slane %v5983_v19, 2  ;;  %v1205_v42 = vmul.f32 %v1182_v48, %v5988_v38  ;;  %v5990_v39 = vperm.slane %v5989_v56, 2 }
 0x159   : > { %5943 = vst [vmem:[#allocation94_spill] sm:$0xff] %v3558_v22  ;;  %v1195_v22 = vmul.f32 %v1182_v48, %v5968_v31  ;;  %v5982_v31 = vperm.slane %v5981_v20, 2  ;;  %v1204_v43 = vmul.f32 %v1182_v48, %v5986_v24  ;;  %v5992_v62 = vperm.slane %v5991_v23, 2 }
 0x15a   : > { %5944 = vst [vmem:[#allocation95_spill] sm:$0xff] %v3561_v18  ;;  %v1194_v18 = vmul.f32 %v1182_v48, %v5966_v61  ;;  %v5980_v61 = vperm.slane %v5979_v21, 2  ;;  %v1203_v53 = vmul.f32 %v1182_v48, %v5984_v8  ;;  %v1206_v55 = vmul.f32 %v1182_v48, %v5990_v39  ;;  %v5993_v21 = vld [vmem:[#allocation38_spill] sm:$0xff] }
 0x15b   : > { %v1202_v50 = vmul.f32 %v1182_v48, %v5982_v31  ;;  %v1207_v4 = vmul.f32 %v1182_v48, %v5992_v62  ;;  %v5995_v31 = vperm.slane %v5741_v17, 2  ;;  %v5996_v8 = vperm.slane %v5742_v16, 2 }
 0x15c   : > { %v1201_v26 = vmul.f32 %v1182_v48, %v5980_v61  ;;  %v5994_v61 = vperm.slane %v5993_v21, 2  ;;  %v5997_v24 = vperm.slane %v5743_v15, 2  ;;  %v5998_v38 = vperm.slane %v5744_v9, 2 }
 0x15d   : > { %v1209_v20 = vmul.f32 %v1182_v48, %v5995_v31  ;;  %v1210_v19 = vmul.f32 %v1182_v48, %v5996_v8  ;;  %v5999_v39 = vperm.slane %v5745_v52, 2  ;;  %v6000_v62 = vperm.slane %v5655_v10, 2 }
 0x15e   : > { %v1208_v29 = vmul.f32 %v1182_v48, %v5994_v61  ;;  %v1211_v1 = vmul.f32 %v1182_v48, %v5997_v24  ;;  %v1212_v13 = vmul.f32 %v1182_v48, %v5998_v38  ;;  %v6001_v61 = vperm.slane %v5656_v27, 2 }
 0x15f   : > { %v1213_v56 = vmul.f32 %v1182_v48, %v5999_v39  ;;  %v1214_v23 = vmul.f32 %v1182_v48, %v6000_v62  ;;  %v3628_v31 = vadd.f32 %v1184_v14, %v3468_v0  ;;  %v3631_v8 = vadd.f32 %v1185_v44, %v3471_v2  ;;  %v6018_v14 = vld [vmem:[#allocation89_spill] sm:$0xff] }
 0x160   : > { %v1215_v21 = vmul.f32 %v1182_v48, %v6001_v61  ;;  %v3634_v24 = vadd.f32 %v1186_v6, %v3474_v34  ;;  %v3637_v38 = vadd.f32 %v1187_v54, %v3477_v5  ;;  %v3640_v39 = vadd.f32 %v1188_v30, %v3480_v33 }
 0x161   : > { %v3643_v62 = vadd.f32 %v1189_v37, %v3483_v58  ;;  %v3646_v48 = vadd.f32 %v1190_v59, %v3486_v40  ;;  %v3649_v0 = vadd.f32 %v1191_v36, %v3489_v28  ;;  %v3652_v2 = vadd.f32 %v1192_v47, %v3492_v12 }
 0x162   : > { %v3655_v34 = vadd.f32 %v1193_v11, %v3495_v3  ;;  %v3658_v5 = vadd.f32 %v1194_v18, %v3498_v51  ;;  %v3661_v33 = vadd.f32 %v1195_v22, %v3501_v7  ;;  %v3664_v58 = vadd.f32 %v1196_v32, %v3504_v25  ;;  %v6002_v51 = vld [vmem:[#allocation81_spill] sm:$0xff]  ;;  %v6004_v7 = vld [vmem:[#allocation82_spill] sm:$0xff]  ;;  %v6006_v25 = vld [vmem:[#allocation83_spill] sm:$0xff] }
 0x163   : > { %v3667_v40 = vadd.f32 %v1197_v63, %v3507_v35  ;;  %v3670_v28 = vadd.f32 %v1198_v45, %v3510_v41  ;;  %v3673_v12 = vadd.f32 %v1199_v46, %v3513_v60  ;;  %v3676_v3 = vadd.f32 %v1200_v49, %v3516_v57  ;;  %v6008_v35 = vld [vmem:[#allocation84_spill] sm:$0xff]  ;;  %v6010_v41 = vld [vmem:[#allocation85_spill] sm:$0xff]  ;;  %v6012_v60 = vld [vmem:[#allocation86_spill] sm:$0xff] }
 0x164   : > { %v3679_v18 = vadd.f32 %v1201_v26, %v6002_v51  ;;  %v3682_v22 = vadd.f32 %v1202_v50, %v6004_v7  ;;  %v3685_v32 = vadd.f32 %v1203_v53, %v6006_v25  ;;  %v3688_v63 = vadd.f32 %v1204_v43, %v6008_v35  ;;  %v6014_v57 = vld [vmem:[#allocation87_spill] sm:$0xff]  ;;  %v6016_v26 = vld [vmem:[#allocation88_spill] sm:$0xff]  ;;  %v1250_v50 = vpop.permute.xlu2 %1249  ;;  %v6020_v53 = vld [vmem:[#allocation90_spill] sm:$0xff] }
 0x165   : > { %v3691_v45 = vadd.f32 %v1205_v42, %v6010_v41  ;;  %v3694_v46 = vadd.f32 %v1206_v55, %v6012_v60  ;;  %v3697_v49 = vadd.f32 %v1207_v4, %v6014_v57  ;;  %v3700_v11 = vadd.f32 %v1208_v29, %v6016_v26  ;;  %v6022_v43 = vld [vmem:[#allocation91_spill] sm:$0xff]  ;;  %v6024_v42 = vld [vmem:[#allocation92_spill] sm:$0xff]  ;;  %v6026_v55 = vld [vmem:[#allocation93_spill] sm:$0xff] }
 0x166   : > { %6003 = vst [vmem:[#allocation81_spill] sm:$0xff] %v3679_v18  ;;  %v3703_v47 = vadd.f32 %v1209_v20, %v6018_v14  ;;  %v3706_v44 = vadd.f32 %v1210_v19, %v6020_v53  ;;  %v3709_v6 = vadd.f32 %v1211_v1, %v6022_v43  ;;  %v3712_v54 = vadd.f32 %v1212_v13, %v6024_v42  ;;  %v6028_v4 = vld [vmem:[#allocation94_spill] sm:$0xff]  ;;  %v6030_v29 = vld [vmem:[#allocation95_spill] sm:$0xff]  ;;  %v6036_v1 = vld [vmem:[#allocation16_spill] sm:$0xff] }
 0x167   : > { %6005 = vst [vmem:[#allocation82_spill] sm:$0xff] %v3682_v22  ;;  %v3715_v30 = vadd.f32 %v1213_v56, %v6026_v55  ;;  %v3718_v37 = vadd.f32 %v1214_v23, %v6028_v4  ;;  %v3721_v59 = vadd.f32 %v1215_v21, %v6030_v29  ;;  %v6032_v20 = vld [vmem:[#allocation14_spill] sm:$0xff]  ;;  %v6034_v19 = vld [vmem:[#allocation15_spill] sm:$0xff]  ;;  %v6037_v25 = vperm.slane %v6036_v1, 3  ;;  %v6038_v13 = vld [vmem:[#allocation17_spill] sm:$0xff] }
 0x168   : > { %6007 = vst [vmem:[#allocation83_spill] sm:$0xff] %v3685_v32  ;;  %v6033_v36 = vperm.slane %v6032_v20, 3  ;;  %v6035_v51 = vperm.slane %v6034_v19, 3  ;;  %v6039_v41 = vperm.slane %v6038_v13, 3  ;;  %v6040_v56 = vld [vmem:[#allocation18_spill] sm:$0xff]  ;;  %v6042_v23 = vld [vmem:[#allocation19_spill] sm:$0xff] }
 0x169   : > { %6009 = vst [vmem:[#allocation84_spill] sm:$0xff] %v3688_v63  ;;  %v1254_v35 = vmul.f32 %v1250_v50, %v6037_v25  ;;  %v6041_v57 = vperm.slane %v6040_v56, 3  ;;  %v6043_v14 = vperm.slane %v6042_v23, 3  ;;  %v6044_v21 = vld [vmem:[#allocation20_spill] sm:$0xff]  ;;  %v6046_v55 = vld [vmem:[#allocation21_spill] sm:$0xff]  ;;  %v6050_v1 = vld [vmem:[#allocation23_spill] sm:$0xff] }
 0x16a   : > { %6011 = vst [vmem:[#allocation85_spill] sm:$0xff] %v3691_v45  ;;  %v1252_v61 = vmul.f32 %v1250_v50, %v6033_v36  ;;  %v1253_v7 = vmul.f32 %v1250_v50, %v6035_v51  ;;  %v1255_v60 = vmul.f32 %v1250_v50, %v6039_v41  ;;  %v6045_v43 = vperm.slane %v6044_v21, 3  ;;  %v6048_v36 = vld [vmem:[#allocation22_spill] sm:$0xff]  ;;  %v6052_v13 = vld [vmem:[#allocation24_spill] sm:$0xff]  ;;  %v6054_v56 = vld [vmem:[#allocation25_spill] sm:$0xff] }
 0x16b   : > { %6013 = vst [vmem:[#allocation86_spill] sm:$0xff] %v3694_v46  ;;  %v1256_v26 = vmul.f32 %v1250_v50, %v6041_v57  ;;  %v1257_v53 = vmul.f32 %v1250_v50, %v6043_v14  ;;  %v6047_v4 = vperm.slane %v6046_v55, 3  ;;  %v6049_v51 = vperm.slane %v6048_v36, 3  ;;  %v6056_v23 = vld [vmem:[#allocation26_spill] sm:$0xff]  ;;  %v6058_v21 = vld [vmem:[#allocation27_spill] sm:$0xff]  ;;  %v6060_v55 = vld [vmem:[#allocation28_spill] sm:$0xff] }
 0x16c   : > { %6015 = vst [vmem:[#allocation87_spill] sm:$0xff] %v3697_v49  ;;  %v1258_v42 = vmul.f32 %v1250_v50, %v6045_v43  ;;  %v6051_v25 = vperm.slane %v6050_v1, 3  ;;  %v6053_v41 = vperm.slane %v6052_v13, 3  ;;  %v6055_v57 = vperm.slane %v6054_v56, 3  ;;  %v6062_v36 = vld [vmem:[#allocation29_spill] sm:$0xff]  ;;  %v6064_v1 = vld [vmem:[#allocation30_spill] sm:$0xff] }
 0x16d   : > { %6017 = vst [vmem:[#allocation88_spill] sm:$0xff] %v3700_v11  ;;  %v1259_v29 = vmul.f32 %v1250_v50, %v6047_v4  ;;  %v1260_v19 = vmul.f32 %v1250_v50, %v6049_v51  ;;  %v6057_v14 = vperm.slane %v6056_v23, 3  ;;  %v6059_v43 = vperm.slane %v6058_v21, 3  ;;  %v6066_v13 = vld [vmem:[#allocation31_spill] sm:$0xff]  ;;  %v6068_v56 = vld [vmem:[#allocation32_spill] sm:$0xff]  ;;  %v6070_v23 = vld [vmem:[#allocation33_spill] sm:$0xff] }
 0x16e   : > { %6019 = vst [vmem:[#allocation89_spill] sm:$0xff] %v3703_v47  ;;  %v1261_v20 = vmul.f32 %v1250_v50, %v6051_v25  ;;  %v6061_v4 = vperm.slane %v6060_v55, 3  ;;  %v6063_v51 = vperm.slane %v6062_v36, 3  ;;  %v6065_v25 = vperm.slane %v6064_v1, 3  ;;  %v6072_v21 = vld [vmem:[#allocation34_spill] sm:$0xff]  ;;  %v6074_v55 = vld [vmem:[#allocation35_spill] sm:$0xff] }
 0x16f   : > { %6021 = vst [vmem:[#allocation90_spill] sm:$0xff] %v3706_v44  ;;  %v6076_v36 = vld [vmem:[#allocation36_spill] sm:$0xff]  ;;  %v6078_v1 = vld [vmem:[#allocation37_spill] sm:$0xff] }
 0x170   : > { %6023 = vst [vmem:[#allocation91_spill] sm:$0xff] %v3709_v6  ;;  %v1266_v6 = vmul.f32 %v1250_v50, %v6061_v4  ;;  %v1267_v44 = vmul.f32 %v1250_v50, %v6063_v51  ;;  %v1268_v47 = vmul.f32 %v1250_v50, %v6065_v25  ;;  %v6075_v4 = vperm.slane %v6074_v55, 3 }
 0x171   : > { %6025 = vst [vmem:[#allocation92_spill] sm:$0xff] %v3712_v54  ;;  %v1265_v54 = vmul.f32 %v1250_v50, %v6059_v43  ;;  %v6073_v43 = vperm.slane %v6072_v21, 3  ;;  %v6077_v51 = vperm.slane %v6076_v36, 3  ;;  %v6079_v25 = vperm.slane %v6078_v1, 3 }
 0x172   : > { %6027 = vst [vmem:[#allocation93_spill] sm:$0xff] %v3715_v30  ;;  %v1264_v30 = vmul.f32 %v1250_v50, %v6057_v14  ;;  %v6071_v14 = vperm.slane %v6070_v23, 3  ;;  %v1273_v63 = vmul.f32 %v1250_v50, %v6075_v4  ;;  %v6085_v4 = vperm.slane %v5744_v9, 3 }
 0x173   : > { %6029 = vst [vmem:[#allocation94_spill] sm:$0xff] %v3718_v37  ;;  %v1263_v37 = vmul.f32 %v1250_v50, %v6055_v57  ;;  %v6069_v57 = vperm.slane %v6068_v56, 3  ;;  %v1272_v45 = vmul.f32 %v1250_v50, %v6073_v43  ;;  %v1274_v32 = vmul.f32 %v1250_v50, %v6077_v51 }
 0x174   : > { %6031 = vst [vmem:[#allocation95_spill] sm:$0xff] %v3721_v59  ;;  %v1262_v59 = vmul.f32 %v1250_v50, %v6053_v41  ;;  %v6067_v41 = vperm.slane %v6066_v13, 3  ;;  %v1271_v46 = vmul.f32 %v1250_v50, %v6071_v14  ;;  %v1275_v22 = vmul.f32 %v1250_v50, %v6079_v25  ;;  %v6080_v13 = vld [vmem:[#allocation38_spill] sm:$0xff] }
 0x175   : > { %v1270_v49 = vmul.f32 %v1250_v50, %v6069_v57  ;;  %v6082_v57 = vperm.slane %v5741_v17, 3  ;;  %v6083_v14 = vperm.slane %v5742_v16, 3  ;;  %v6084_v43 = vperm.slane %v5743_v15, 3 }
 0x176   : > { %v1269_v11 = vmul.f32 %v1250_v50, %v6067_v41  ;;  %v6081_v41 = vperm.slane %v6080_v13, 3  ;;  %v1280_v55 = vmul.f32 %v1250_v50, %v6085_v4  ;;  %v6086_v51 = vperm.slane %v5745_v52, 3 }
 0x177   : > { %v1277_v56 = vmul.f32 %v1250_v50, %v6082_v57  ;;  %v1278_v23 = vmul.f32 %v1250_v50, %v6083_v14  ;;  %v1279_v21 = vmul.f32 %v1250_v50, %v6084_v43  ;;  %v6087_v25 = vperm.slane %v5655_v10, 3 }
 0x178   : > { %v1276_v18 = vmul.f32 %v1250_v50, %v6081_v41  ;;  %v1281_v36 = vmul.f32 %v1250_v50, %v6086_v51  ;;  %v6088_v41 = vperm.slane %v5656_v27, 3  ;;  %v3788_v57 = vadd.f32 %v1252_v61, %v3628_v31 }
 0x179   : > { %v1282_v1 = vmul.f32 %v1250_v50, %v6087_v25  ;;  %v3791_v14 = vadd.f32 %v1253_v7, %v3631_v8  ;;  %v3794_v43 = vadd.f32 %v1254_v35, %v3634_v24  ;;  %v3797_v4 = vadd.f32 %v1255_v60, %v3637_v38 }
 0x17a   : > { %v1283_v13 = vmul.f32 %v1250_v50, %v6088_v41  ;;  %v3800_v51 = vadd.f32 %v1256_v26, %v3640_v39  ;;  %v3803_v25 = vadd.f32 %v1257_v53, %v3643_v62  ;;  %v3806_v50 = vadd.f32 %v1258_v42, %v3646_v48 }
 0x17b   : > { %v3809_v31 = vadd.f32 %v1259_v29, %v3649_v0  ;;  %v3812_v8 = vadd.f32 %v1260_v19, %v3652_v2  ;;  %v3815_v24 = vadd.f32 %v1261_v20, %v3655_v34  ;;  %v3818_v38 = vadd.f32 %v1262_v59, %v3658_v5  ;;  %v1318_v5 = vpop.permute.xlu0 %1317  ;;  %v6089_v59 = vld [vmem:[#allocation81_spill] sm:$0xff] }
 0x17c   : > { %v3821_v39 = vadd.f32 %v1263_v37, %v3661_v33  ;;  %v3824_v62 = vadd.f32 %v1264_v30, %v3664_v58  ;;  %v3827_v48 = vadd.f32 %v1265_v54, %v3667_v40  ;;  %v3830_v0 = vadd.f32 %v1266_v6, %v3670_v28  ;;  %v6091_v33 = vld [vmem:[#allocation82_spill] sm:$0xff]  ;;  %v6093_v58 = vld [vmem:[#allocation83_spill] sm:$0xff]  ;;  %v6095_v40 = vld [vmem:[#allocation84_spill] sm:$0xff] }
 0x17d   : > { %v3833_v2 = vadd.f32 %v1267_v44, %v3673_v12  ;;  %v3836_v34 = vadd.f32 %v1268_v47, %v3676_v3  ;;  %v3839_v20 = vadd.f32 %v1269_v11, %v6089_v59  ;;  %v3842_v37 = vadd.f32 %v1270_v49, %v6091_v33  ;;  %v6097_v28 = vld [vmem:[#allocation85_spill] sm:$0xff]  ;;  %v6099_v12 = vld [vmem:[#allocation86_spill] sm:$0xff]  ;;  %v6101_v3 = vld [vmem:[#allocation87_spill] sm:$0xff] }
 0x17e   : > { %v3845_v30 = vadd.f32 %v1271_v46, %v6093_v58  ;;  %v3848_v54 = vadd.f32 %v1272_v45, %v6095_v40  ;;  %v3851_v6 = vadd.f32 %v1273_v63, %v6097_v28  ;;  %v3854_v44 = vadd.f32 %v1274_v32, %v6099_v12  ;;  %v6103_v11 = vld [vmem:[#allocation88_spill] sm:$0xff]  ;;  %v6105_v49 = vld [vmem:[#allocation89_spill] sm:$0xff]  ;;  %v6107_v46 = vld [vmem:[#allocation90_spill] sm:$0xff] }
 0x17f   : > { %6090 = vst [vmem:[#allocation81_spill] sm:$0xff] %v3839_v20  ;;  %v3857_v47 = vadd.f32 %v1275_v22, %v6101_v3  ;;  %v3860_v61 = vadd.f32 %v1276_v18, %v6103_v11  ;;  %v3863_v19 = vadd.f32 %v1277_v56, %v6105_v49  ;;  %v3866_v7 = vadd.f32 %v1278_v23, %v6107_v46  ;;  %v6109_v45 = vld [vmem:[#allocation91_spill] sm:$0xff]  ;;  %v6111_v63 = vld [vmem:[#allocation92_spill] sm:$0xff]  ;;  %v6113_v32 = vld [vmem:[#allocation93_spill] sm:$0xff] }
 0x180   : > { %6092 = vst [vmem:[#allocation82_spill] sm:$0xff] %v3842_v37  ;;  %v3869_v35 = vadd.f32 %v1279_v21, %v6109_v45  ;;  %v3872_v60 = vadd.f32 %v1280_v55, %v6111_v63  ;;  %v3875_v26 = vadd.f32 %v1281_v36, %v6113_v32  ;;  %v6115_v22 = vld [vmem:[#allocation94_spill] sm:$0xff]  ;;  %v6117_v18 = vld [vmem:[#allocation95_spill] sm:$0xff]  ;;  %v6123_v21 = vld [vmem:[#allocation16_spill] sm:$0xff] }
 0x181   : > { %6094 = vst [vmem:[#allocation83_spill] sm:$0xff] %v3845_v30  ;;  %v3878_v53 = vadd.f32 %v1282_v1, %v6115_v22  ;;  %v3881_v42 = vadd.f32 %v1283_v13, %v6117_v18  ;;  %v6119_v56 = vld [vmem:[#allocation14_spill] sm:$0xff]  ;;  %v6121_v23 = vld [vmem:[#allocation15_spill] sm:$0xff]  ;;  %v6124_v58 = vperm.slane %v6123_v21, 4  ;;  %v6125_v55 = vld [vmem:[#allocation17_spill] sm:$0xff] }
 0x182   : > { %6096 = vst [vmem:[#allocation84_spill] sm:$0xff] %v3848_v54  ;;  %v6120_v29 = vperm.slane %v6119_v56, 4  ;;  %v6122_v59 = vperm.slane %v6121_v23, 4  ;;  %v6126_v28 = vperm.slane %v6125_v55, 4  ;;  %v6127_v36 = vld [vmem:[#allocation18_spill] sm:$0xff]  ;;  %v6129_v1 = vld [vmem:[#allocation19_spill] sm:$0xff] }
 0x183   : > { %6098 = vst [vmem:[#allocation85_spill] sm:$0xff] %v3851_v6  ;;  %v1322_v40 = vmul.f32 %v1318_v5, %v6124_v58  ;;  %v6128_v3 = vperm.slane %v6127_v36, 4  ;;  %v6130_v49 = vperm.slane %v6129_v1, 4  ;;  %v6131_v13 = vld [vmem:[#allocation20_spill] sm:$0xff]  ;;  %v6133_v32 = vld [vmem:[#allocation21_spill] sm:$0xff]  ;;  %v6135_v56 = vld [vmem:[#allocation22_spill] sm:$0xff] }
 0x184   : > { %6100 = vst [vmem:[#allocation86_spill] sm:$0xff] %v3854_v44  ;;  %v1320_v41 = vmul.f32 %v1318_v5, %v6120_v29  ;;  %v1321_v33 = vmul.f32 %v1318_v5, %v6122_v59  ;;  %v1323_v12 = vmul.f32 %v1318_v5, %v6126_v28  ;;  %v6132_v45 = vperm.slane %v6131_v13, 4  ;;  %v6137_v59 = vld [vmem:[#allocation23_spill] sm:$0xff]  ;;  %v6139_v55 = vld [vmem:[#allocation24_spill] sm:$0xff]  ;;  %v6141_v36 = vld [vmem:[#allocation25_spill] sm:$0xff] }
 0x185   : > { %6102 = vst [vmem:[#allocation87_spill] sm:$0xff] %v3857_v47  ;;  %v1324_v11 = vmul.f32 %v1318_v5, %v6128_v3  ;;  %v1325_v46 = vmul.f32 %v1318_v5, %v6130_v49  ;;  %v6134_v22 = vperm.slane %v6133_v32, 4  ;;  %v6136_v29 = vperm.slane %v6135_v56, 4  ;;  %v6143_v1 = vld [vmem:[#allocation26_spill] sm:$0xff]  ;;  %v6145_v13 = vld [vmem:[#allocation27_spill] sm:$0xff]  ;;  %v6147_v32 = vld [vmem:[#allocation28_spill] sm:$0xff] }
 0x186   : > { %6104 = vst [vmem:[#allocation88_spill] sm:$0xff] %v3860_v61  ;;  %v1326_v63 = vmul.f32 %v1318_v5, %v6132_v45  ;;  %v6138_v21 = vperm.slane %v6137_v59, 4  ;;  %v6140_v28 = vperm.slane %v6139_v55, 4  ;;  %v6142_v3 = vperm.slane %v6141_v36, 4  ;;  %v6149_v56 = vld [vmem:[#allocation29_spill] sm:$0xff]  ;;  %v6151_v59 = vld [vmem:[#allocation30_spill] sm:$0xff] }
 0x187   : > { %6106 = vst [vmem:[#allocation89_spill] sm:$0xff] %v3863_v19  ;;  %v1327_v18 = vmul.f32 %v1318_v5, %v6134_v22  ;;  %v1328_v23 = vmul.f32 %v1318_v5, %v6136_v29  ;;  %v6144_v49 = vperm.slane %v6143_v1, 4  ;;  %v6146_v45 = vperm.slane %v6145_v13, 4  ;;  %v6153_v55 = vld [vmem:[#allocation31_spill] sm:$0xff]  ;;  %v6155_v36 = vld [vmem:[#allocation32_spill] sm:$0xff]  ;;  %v6157_v1 = vld [vmem:[#allocation33_spill] sm:$0xff] }
 0x188   : > { %6108 = vst [vmem:[#allocation90_spill] sm:$0xff] %v3866_v7  ;;  %v1329_v58 = vmul.f32 %v1318_v5, %v6138_v21  ;;  %v6148_v22 = vperm.slane %v6147_v32, 4  ;;  %v6150_v29 = vperm.slane %v6149_v56, 4  ;;  %v6152_v21 = vperm.slane %v6151_v59, 4  ;;  %v6159_v13 = vld [vmem:[#allocation34_spill] sm:$0xff]  ;;  %v6161_v32 = vld [vmem:[#allocation35_spill] sm:$0xff] }
 0x189   : > { %6110 = vst [vmem:[#allocation91_spill] sm:$0xff] %v3869_v35  ;;  %v6163_v56 = vld [vmem:[#allocation36_spill] sm:$0xff]  ;;  %v6165_v59 = vld [vmem:[#allocation37_spill] sm:$0xff] }
 0x18a   : > { %6112 = vst [vmem:[#allocation92_spill] sm:$0xff] %v3872_v60  ;;  %v1333_v60 = vmul.f32 %v1318_v5, %v6146_v45  ;;  %v1334_v35 = vmul.f32 %v1318_v5, %v6148_v22  ;;  %v1335_v7 = vmul.f32 %v1318_v5, %v6150_v29  ;;  %v1336_v19 = vmul.f32 %v1318_v5, %v6152_v21 }
 0x18b   : > { %6114 = vst [vmem:[#allocation93_spill] sm:$0xff] %v3875_v26  ;;  %v1332_v26 = vmul.f32 %v1318_v5, %v6144_v49  ;;  %v6158_v49 = vperm.slane %v6157_v1, 4  ;;  %v6160_v45 = vperm.slane %v6159_v13, 4  ;;  %v6162_v22 = vperm.slane %v6161_v32, 4 }
 0x18c   : > { %6116 = vst [vmem:[#allocation94_spill] sm:$0xff] %v3878_v53  ;;  %v1331_v53 = vmul.f32 %v1318_v5, %v6142_v3  ;;  %v6156_v3 = vperm.slane %v6155_v36, 4  ;;  %v6164_v29 = vperm.slane %v6163_v56, 4  ;;  %v6166_v21 = vperm.slane %v6165_v59, 4 }
 0x18d   : > { %6118 = vst [vmem:[#allocation95_spill] sm:$0xff] %v3881_v42  ;;  %v1330_v42 = vmul.f32 %v1318_v5, %v6140_v28  ;;  %v6154_v28 = vperm.slane %v6153_v55, 4  ;;  %v1339_v44 = vmul.f32 %v1318_v5, %v6158_v49  ;;  %v1340_v6 = vmul.f32 %v1318_v5, %v6160_v45  ;;  %v6167_v55 = vld [vmem:[#allocation38_spill] sm:$0xff] }
 0x18e   : > { %v1338_v47 = vmul.f32 %v1318_v5, %v6156_v3  ;;  %v1341_v54 = vmul.f32 %v1318_v5, %v6162_v22  ;;  %v1342_v30 = vmul.f32 %v1318_v5, %v6164_v29  ;;  %v1343_v37 = vmul.f32 %v1318_v5, %v6166_v21 }
 0x18f   : > { %v1337_v61 = vmul.f32 %v1318_v5, %v6154_v28  ;;  %v6168_v28 = vperm.slane %v6167_v55, 4  ;;  %v6169_v36 = vperm.slane %v5741_v17, 4  ;;  %v6170_v1 = vperm.slane %v5742_v16, 4 }
 0x190   : > { %v6171_v13 = vperm.slane %v5743_v15, 4  ;;  %v6172_v32 = vperm.slane %v5744_v9, 4  ;;  %v6173_v56 = vperm.slane %v5745_v52, 4  ;;  %v6174_v59 = vperm.slane %v5655_v10, 4 }
 0x191   : > { %v1344_v20 = vmul.f32 %v1318_v5, %v6168_v28  ;;  %v1345_v3 = vmul.f32 %v1318_v5, %v6169_v36  ;;  %v1346_v49 = vmul.f32 %v1318_v5, %v6170_v1  ;;  %v6175_v55 = vperm.slane %v5656_v27, 4 }
 0x192   : > { %v1347_v45 = vmul.f32 %v1318_v5, %v6171_v13  ;;  %v1348_v22 = vmul.f32 %v1318_v5, %v6172_v32  ;;  %v1349_v29 = vmul.f32 %v1318_v5, %v6173_v56  ;;  %v1350_v21 = vmul.f32 %v1318_v5, %v6174_v59  ;;  %v4128_v59 = vld [vmem:[%s2262_s11 + $0xa8] sm:$0xff]  ;;  %v4132_v56 = vld [vmem:[%s2262_s11 + $0xb0] sm:$0xff]  ;;  %v4136_v32 = vld [vmem:[%s2262_s11 + $0xb8] sm:$0xff] }
 0x193   : > { %v1351_v28 = vmul.f32 %v1318_v5, %v6175_v55  ;;  %v3948_v17 = vadd.f32 %v1320_v41, %v3788_v57  ;;  %v3951_v16 = vadd.f32 %v1321_v33, %v3791_v14  ;;  %v3954_v15 = vadd.f32 %v1322_v40, %v3794_v43  ;;  %v6196_v33 = vld [vmem:[#allocation91_spill] sm:$0xff]  ;;  %v4124_v55 = vld [vmem:[%s2262_s11 + $0xa0] sm:$0xff] }
 0x194   : > { %v3957_v9 = vadd.f32 %v1323_v12, %v3797_v4  ;;  %v3960_v52 = vadd.f32 %v1324_v11, %v3800_v51  ;;  %v3963_v10 = vadd.f32 %v1325_v46, %v3803_v25  ;;  %v3966_v27 = vadd.f32 %v1326_v63, %v3806_v50  ;;  %v6200_v12 = vld [vmem:[#allocation93_spill] sm:$0xff]  ;;  %v6204_v46 = vld [vmem:[#allocation95_spill] sm:$0xff]  ;;  %6226 = vst [vmem:[#allocation91_spill] sm:$0xff] %v4124_v55  ;;  %v4140_v13 = vld [vmem:[%s2262_s11 + $0xc0] sm:$0xff] }
 0x195   : > { %v3969_v57 = vadd.f32 %v1327_v18, %v3809_v31  ;;  %v3972_v14 = vadd.f32 %v1328_v23, %v3812_v8  ;;  %v3975_v43 = vadd.f32 %v1329_v58, %v3815_v24  ;;  %v3978_v4 = vadd.f32 %v1330_v42, %v3818_v38  ;;  %v6176_v38 = vld [vmem:[#allocation81_spill] sm:$0xff]  ;;  %v4044_v18 = vld [vmem:[%s2262_s11] sm:$0xff]  ;;  %6228 = vst [vmem:[#allocation93_spill] sm:$0xff] %v4132_v56  ;;  %v4148_v23 = vld [vmem:[%s2262_s11 + $0xd0] sm:$0xff] }
 0x196   : > { %v3981_v51 = vadd.f32 %v1331_v53, %v3821_v39  ;;  %v3984_v25 = vadd.f32 %v1332_v26, %v3824_v62  ;;  %v3987_v50 = vadd.f32 %v1333_v60, %v3827_v48  ;;  %v3990_v31 = vadd.f32 %v1334_v35, %v3830_v0  ;;  %v6178_v39 = vld [vmem:[#allocation82_spill] sm:$0xff]  ;;  %v6180_v62 = vld [vmem:[#allocation83_spill] sm:$0xff]  ;;  %v6182_v60 = vld [vmem:[#allocation84_spill] sm:$0xff]  ;;  %6206 = vst [vmem:[#allocation29_spill] sm:$0xff] %v4044_v18 }
 0x197   : > { %v3993_v8 = vadd.f32 %v1335_v7, %v3833_v2  ;;  %v3996_v24 = vadd.f32 %v1336_v19, %v3836_v34  ;;  %v3999_v5 = vadd.f32 %v1337_v61, %v6176_v38  ;;  %v4002_v53 = vadd.f32 %v1338_v47, %v6178_v39  ;;  %v6184_v35 = vld [vmem:[#allocation85_spill] sm:$0xff]  ;;  %v6186_v34 = vld [vmem:[#allocation86_spill] sm:$0xff]  ;;  %v6188_v7 = vld [vmem:[#allocation87_spill] sm:$0xff]  ;;  %6230 = vst [vmem:[#allocation95_spill] sm:$0xff] %v4140_v13 }
 0x198   : > { %v4005_v48 = vadd.f32 %v1339_v44, %v6180_v62  ;;  %v4008_v0 = vadd.f32 %v1340_v6, %v6182_v60  ;;  %v4011_v2 = vadd.f32 %v1341_v54, %v6184_v35  ;;  %v4014_v19 = vadd.f32 %v1342_v30, %v6186_v34  ;;  %v6190_v47 = vld [vmem:[#allocation88_spill] sm:$0xff]  ;;  %v6192_v42 = vld [vmem:[#allocation89_spill] sm:$0xff]  ;;  %v6194_v6 = vld [vmem:[#allocation90_spill] sm:$0xff]  ;;  %6232 = vst [vmem:[#allocation98_spill] sm:$0xff] %v4148_v23 }
 0x199   : > { %6177 = vst [vmem:[#allocation14_spill] sm:$0xff] %v3999_v5  ;;  %v4017_v61 = vadd.f32 %v1343_v37, %v6188_v7  ;;  %v4020_v26 = vadd.f32 %v1344_v20, %v6190_v47  ;;  %v4023_v44 = vadd.f32 %v1345_v3, %v6192_v42  ;;  %v4026_v41 = vadd.f32 %v1346_v49, %v6194_v6  ;;  %v6198_v30 = vld [vmem:[#allocation92_spill] sm:$0xff]  ;;  %v6202_v20 = vld [vmem:[#allocation94_spill] sm:$0xff]  ;;  %v4048_v58 = vld [vmem:[%s2262_s11 + $0x8] sm:$0xff] }
 0x19a   : > { %6179 = vst [vmem:[#allocation15_spill] sm:$0xff] %v4002_v53  ;;  %v4029_v54 = vadd.f32 %v1347_v45, %v6196_v33  ;;  %v4032_v40 = vadd.f32 %v1348_v22, %v6198_v30  ;;  %v4035_v37 = vadd.f32 %v1349_v29, %v6200_v12  ;;  %v4038_v11 = vadd.f32 %v1350_v21, %v6202_v20  ;;  %v4052_v3 = vld [vmem:[%s2262_s11 + $0x10] sm:$0xff]  ;;  %v4056_v49 = vld [vmem:[%s2262_s11 + $0x18] sm:$0xff]  ;;  %v4060_v45 = vld [vmem:[%s2262_s11 + $0x20] sm:$0xff] }
 0x19b   : > { %6181 = vst [vmem:[#allocation16_spill] sm:$0xff] %v4005_v48  ;;  %v4041_v63 = vadd.f32 %v1351_v28, %v6204_v46  ;;  %v4064_v22 = vld [vmem:[%s2262_s11 + $0x28] sm:$0xff]  ;;  %v4068_v29 = vld [vmem:[%s2262_s11 + $0x30] sm:$0xff]  ;;  %v4072_v21 = vld [vmem:[%s2262_s11 + $0x38] sm:$0xff]  ;;  %v6239_v1 = vperm.slane %v4048_v58, 5  ;;  %v6240_v36 = vperm.slane %v4052_v3, 5 }
 0x19c   : > { %6183 = vst [vmem:[#allocation17_spill] sm:$0xff] %v4008_v0  ;;  %v4076_v28 = vld [vmem:[%s2262_s11 + $0x40] sm:$0xff]  ;;  %v4080_v39 = vld [vmem:[%s2262_s11 + $0x48] sm:$0xff]  ;;  %v4084_v60 = vld [vmem:[%s2262_s11 + $0x50] sm:$0xff]  ;;  %v6243_v12 = vperm.slane %v4064_v22, 5  ;;  %v6244_v46 = vperm.slane %v4068_v29, 5 }
 0x19d   : > { %6185 = vst [vmem:[#allocation18_spill] sm:$0xff] %v4011_v2  ;;  %v4088_v34 = vld [vmem:[%s2262_s11 + $0x58] sm:$0xff]  ;;  %v4092_v47 = vld [vmem:[%s2262_s11 + $0x60] sm:$0xff]  ;;  %v4096_v6 = vld [vmem:[%s2262_s11 + $0x68] sm:$0xff]  ;;  %v1386_v2 = vpop.permute.xlu1 %1385 }
 0x19e   : > { %6187 = vst [vmem:[#allocation19_spill] sm:$0xff] %v4014_v19  ;;  %v4100_v30 = vld [vmem:[%s2262_s11 + $0x70] sm:$0xff]  ;;  %v4104_v20 = vld [vmem:[%s2262_s11 + $0x78] sm:$0xff]  ;;  %v4108_v7 = vld [vmem:[%s2262_s11 + $0x80] sm:$0xff]  ;;  %v1390_v48 = vmul.f32 %v1386_v2, %v6240_v36  ;;  %v6241_v19 = vperm.slane %v4056_v49, 5  ;;  %v1394_v5 = vmul.f32 %v1386_v2, %v6244_v46  ;;  %v6247_v36 = vperm.slane %v4080_v39, 5 }
 0x19f   : > { %6189 = vst [vmem:[#allocation20_spill] sm:$0xff] %v4017_v61  ;;  %v4112_v35 = vld [vmem:[%s2262_s11 + $0x88] sm:$0xff]  ;;  %v4116_v62 = vld [vmem:[%s2262_s11 + $0x90] sm:$0xff]  ;;  %v4120_v38 = vld [vmem:[%s2262_s11 + $0x98] sm:$0xff]  ;;  %v1389_v61 = vmul.f32 %v1386_v2, %v6239_v1  ;;  %v6246_v1 = vperm.slane %v4076_v28, 5  ;;  %v6251_v46 = vperm.slane %v4096_v6, 5 }
 0x1a0   : > { %6191 = vst [vmem:[#allocation21_spill] sm:$0xff] %v4020_v26  ;;  %v4144_v42 = vld [vmem:[%s2262_s11 + $0xc8] sm:$0xff]  ;;  %v6238_v26 = vperm.slane %v4044_v18, 5  ;;  %v1391_v33 = vmul.f32 %v1386_v2, %v6241_v19  ;;  %v6248_v19 = vperm.slane %v4084_v60, 5 }
 0x1a1   : > { %6193 = vst [vmem:[#allocation22_spill] sm:$0xff] %v4023_v44  ;;  %v1393_v44 = vmul.f32 %v1386_v2, %v6243_v12  ;;  %v6250_v12 = vperm.slane %v4092_v47, 5 }
 0x1a2   : > { %6195 = vst [vmem:[#allocation23_spill] sm:$0xff] %v4026_v41  ;;  %v1388_v0 = vmul.f32 %v1386_v2, %v6238_v26  ;;  %v6242_v41 = vperm.slane %v4060_v45, 5  ;;  %v6245_v26 = vperm.slane %v4072_v21, 5 }
 0x1a3   : > { %6197 = vst [vmem:[#allocation24_spill] sm:$0xff] %v4029_v54  ;;  %v4168_v54 = vld [vmem:[%s2262_s11 + $0xf8] sm:$0xff] }
 0x1a4   : > { %6199 = vst [vmem:[#allocation25_spill] sm:$0xff] %v4032_v40  ;;  %v4164_v40 = vld [vmem:[%s2262_s11 + $0xf0] sm:$0xff]  ;;  %v1392_v53 = vmul.f32 %v1386_v2, %v6242_v41  ;;  %v1395_v18 = vmul.f32 %v1386_v2, %v6245_v26  ;;  %v6249_v41 = vperm.slane %v4088_v34, 5  ;;  %v6252_v26 = vperm.slane %v4100_v30, 5 }
 0x1a5   : > { %6201 = vst [vmem:[#allocation26_spill] sm:$0xff] %v4035_v37  ;;  %v4160_v37 = vld [vmem:[%s2262_s11 + $0xe8] sm:$0xff] }
 0x1a6   : > { %6203 = vst [vmem:[#allocation27_spill] sm:$0xff] %v4038_v11  ;;  %v4156_v11 = vld [vmem:[%s2262_s11 + $0xe0] sm:$0xff] }
 0x1a7   : > { %6205 = vst [vmem:[#allocation28_spill] sm:$0xff] %v4041_v63  ;;  %v4152_v63 = vld [vmem:[%s2262_s11 + $0xd8] sm:$0xff] }
 0x1a8   : > { %6207 = vst [vmem:[#allocation30_spill] sm:$0xff] %v4048_v58  ;;  %v1396_v58 = vmul.f32 %v1386_v2, %v6246_v1  ;;  %v6253_v1 = vperm.slane %v4104_v20, 5 }
 0x1a9   : > { %6208 = vst [vmem:[#allocation31_spill] sm:$0xff] %v4052_v3  ;;  %v1397_v3 = vmul.f32 %v1386_v2, %v6247_v36  ;;  %v6254_v36 = vperm.slane %v4108_v7, 5 }
 0x1aa   : > { %6209 = vst [vmem:[#allocation32_spill] sm:$0xff] %v4056_v49  ;;  %v1398_v49 = vmul.f32 %v1386_v2, %v6248_v19  ;;  %v6255_v19 = vperm.slane %v4112_v35, 5 }
 0x1ab   : > { %6210 = vst [vmem:[#allocation33_spill] sm:$0xff] %v4060_v45  ;;  %v1399_v45 = vmul.f32 %v1386_v2, %v6249_v41  ;;  %v6256_v41 = vperm.slane %v4116_v62, 5 }
 0x1ac   : > { %6211 = vst [vmem:[#allocation34_spill] sm:$0xff] %v4064_v22  ;;  %v1400_v22 = vmul.f32 %v1386_v2, %v6250_v12  ;;  %v6257_v12 = vperm.slane %v4120_v38, 5 }
 0x1ad   : > { %6212 = vst [vmem:[#allocation35_spill] sm:$0xff] %v4068_v29  ;;  %v1401_v29 = vmul.f32 %v1386_v2, %v6251_v46  ;;  %v6258_v46 = vperm.slane %v4124_v55, 5  ;;  %v6265_v55 = vperm.slane %v4148_v23, 5  ;;  %v1421_v23 = vadd.f32 %v1389_v61, %v3951_v16  ;;  %v6283_v61 = vld [vmem:[#allocation21_spill] sm:$0xff] }
 0x1ae   : > { %6213 = vst [vmem:[#allocation36_spill] sm:$0xff] %v4072_v21  ;;  %v1402_v21 = vmul.f32 %v1386_v2, %v6252_v26  ;;  %v6259_v26 = vperm.slane %v4128_v59, 5  ;;  %v4319_v16 = vadd.f32 %v1399_v45, %v3981_v51  ;;  %v6273_v51 = vld [vmem:[#allocation16_spill] sm:$0xff] }
 0x1af   : > { %6214 = vst [vmem:[#allocation37_spill] sm:$0xff] %v4076_v28  ;;  %v1403_v28 = vmul.f32 %v1386_v2, %v6253_v1  ;;  %v6260_v1 = vperm.slane %v4132_v56, 5  ;;  %v6267_v56 = vperm.slane %v4156_v11, 5  ;;  %v6289_v45 = vld [vmem:[#allocation24_spill] sm:$0xff] }
 0x1b0   : > { %6215 = vst [vmem:[#allocation38_spill] sm:$0xff] %v4080_v39  ;;  %v1404_v39 = vmul.f32 %v1386_v2, %v6254_v36  ;;  %v6261_v36 = vperm.slane %v4136_v32, 5 }
 0x1b1   : > { %6216 = vst [vmem:[#allocation81_spill] sm:$0xff] %v4084_v60  ;;  %v1405_v60 = vmul.f32 %v1386_v2, %v6255_v19  ;;  %v6262_v19 = vperm.slane %v4140_v13, 5  ;;  %v6269_v13 = vperm.slane %v4164_v40, 5 }
 0x1b2   : > { %6217 = vst [vmem:[#allocation82_spill] sm:$0xff] %v4088_v34  ;;  %v1406_v34 = vmul.f32 %v1386_v2, %v6256_v41  ;;  %v6264_v41 = vperm.slane %v4144_v42, 5 }
 0x1b3   : > { %6218 = vst [vmem:[#allocation83_spill] sm:$0xff] %v4092_v47  ;;  %v1407_v47 = vmul.f32 %v1386_v2, %v6257_v12 }
 0x1b4   : > { %6219 = vst [vmem:[#allocation84_spill] sm:$0xff] %v4096_v6  ;;  %v1408_v6 = vmul.f32 %v1386_v2, %v6258_v46  ;;  %v1413_v12 = vmul.f32 %v1386_v2, %v6264_v41  ;;  %v1414_v46 = vmul.f32 %v1386_v2, %v6265_v55  ;;  %v1420_v41 = vadd.f32 %v1388_v0, %v3948_v17 }
 0x1b5   : > { %6220 = vst [vmem:[#allocation85_spill] sm:$0xff] %v4100_v30  ;;  %v1409_v30 = vmul.f32 %v1386_v2, %v6259_v26  ;;  %v1422_v55 = vadd.f32 %v1390_v48, %v3954_v15  ;;  %v4316_v17 = vadd.f32 %v1398_v49, %v3978_v4  ;;  %v4322_v15 = vadd.f32 %v1400_v22, %v3984_v25 }
 0x1b6   : > { %6221 = vst [vmem:[#allocation86_spill] sm:$0xff] %v4104_v20  ;;  %v1410_v20 = vmul.f32 %v1386_v2, %v6260_v1  ;;  %v1416_v1 = vmul.f32 %v1386_v2, %v6267_v56  ;;  %v1425_v56 = vadd.f32 %v1393_v44, %v3963_v10  ;;  %v4331_v10 = vadd.f32 %v1403_v28, %v3993_v8  ;;  %v6279_v8 = vld [vmem:[#allocation19_spill] sm:$0xff]  ;;  %v6293_v28 = vld [vmem:[#allocation26_spill] sm:$0xff] }
 0x1b7   : > { %6222 = vst [vmem:[#allocation87_spill] sm:$0xff] %v4108_v7  ;;  %v1411_v7 = vmul.f32 %v1386_v2, %v6261_v36  ;;  %v4343_v25 = vadd.f32 %v1407_v47, %v6273_v51 }
 0x1b8   : > { %6223 = vst [vmem:[#allocation88_spill] sm:$0xff] %v4112_v35  ;;  %v1412_v35 = vmul.f32 %v1386_v2, %v6262_v19  ;;  %v1418_v19 = vmul.f32 %v1386_v2, %v6269_v13  ;;  %v4310_v13 = vadd.f32 %v1396_v58, %v3972_v14  ;;  %v4352_v48 = vadd.f32 %v1410_v20, %v6279_v8  ;;  %v6302_v20 = vld [vmem:[#allocation30_spill] sm:$0xff] }
 0x1b9   : > { %6224 = vst [vmem:[#allocation89_spill] sm:$0xff] %v4116_v62  ;;  %v4285_v62 = vpop.permute.xlu2 %1453 }
 0x1ba   : > { %6225 = vst [vmem:[#allocation90_spill] sm:$0xff] %v4120_v38  ;;  %v6270_v38 = vperm.slane %v4168_v54, 5  ;;  %v4358_v44 = vadd.f32 %v1412_v35, %v6283_v61  ;;  %v6297_v35 = vld [vmem:[#allocation28_spill] sm:$0xff]  ;;  %v6312_v61 = vld [vmem:[#allocation35_spill] sm:$0xff] }
 0x1bb   : > { %6227 = vst [vmem:[#allocation92_spill] sm:$0xff] %v4128_v59  ;;  %v6266_v59 = vperm.slane %v4152_v63, 5 }
 0x1bc   : > { %6229 = vst [vmem:[#allocation94_spill] sm:$0xff] %v4136_v32  ;;  %v6268_v32 = vperm.slane %v4160_v37, 5 }
 0x1bd   : > { %6231 = vst [vmem:[#allocation97_spill] sm:$0xff] %v4144_v42  ;;  %v1415_v26 = vmul.f32 %v1386_v2, %v6266_v59  ;;  %v1423_v59 = vadd.f32 %v1391_v33, %v3957_v9  ;;  %v4325_v9 = vadd.f32 %v1401_v29, %v3987_v50  ;;  %v6275_v50 = vld [vmem:[#allocation17_spill] sm:$0xff] }
 0x1be   : > { %6233 = vst [vmem:[#allocation99_spill] sm:$0xff] %v4152_v63  ;;  %v1417_v36 = vmul.f32 %v1386_v2, %v6268_v32  ;;  %v1426_v32 = vadd.f32 %v1394_v5, %v3966_v27  ;;  %v4334_v27 = vadd.f32 %v1404_v39, %v3996_v24  ;;  %v4346_v5 = vadd.f32 %v1408_v6, %v6275_v50  ;;  %v6281_v24 = vld [vmem:[#allocation20_spill] sm:$0xff]  ;;  %v6291_v29 = vld [vmem:[#allocation25_spill] sm:$0xff]  ;;  %v6295_v39 = vld [vmem:[#allocation27_spill] sm:$0xff] }
 0x1bf   : > { %6234 = vst [vmem:[#allocation100_spill] sm:$0xff] %v4156_v11  ;;  %v1424_v11 = vadd.f32 %v1392_v53, %v3960_v52  ;;  %v4328_v52 = vadd.f32 %v1402_v21, %v3990_v31  ;;  %v6277_v31 = vld [vmem:[#allocation18_spill] sm:$0xff]  ;;  %v4355_v0 = vadd.f32 %v1411_v7, %v6281_v24  ;;  %v4367_v22 = vadd.f32 %v1415_v26, %v6289_v45  ;;  %v6299_v7 = vld [vmem:[#allocation29_spill] sm:$0xff]  ;;  %v6304_v26 = vld [vmem:[#allocation31_spill] sm:$0xff] }
 0x1c0   : > { %6235 = vst [vmem:[#allocation101_spill] sm:$0xff] %v4160_v37  ;;  %v4349_v53 = vadd.f32 %v1409_v30, %v6277_v31  ;;  %v4370_v21 = vadd.f32 %v1416_v1, %v6291_v29  ;;  %v6300_v47 = vperm.slane %v6299_v7, 6  ;;  %v6305_v1 = vperm.slane %v6304_v26, 6  ;;  %v6310_v31 = vld [vmem:[#allocation34_spill] sm:$0xff]  ;;  %v6314_v45 = vld [vmem:[#allocation36_spill] sm:$0xff] }
 0x1c1   : > { %6236 = vst [vmem:[#allocation102_spill] sm:$0xff] %v4164_v40  ;;  %v1427_v40 = vadd.f32 %v1395_v18, %v3969_v57  ;;  %v6271_v57 = vld [vmem:[#allocation14_spill] sm:$0xff]  ;;  %v4384_v30 = vpop.permute.xlu2 %1521  ;;  %v6311_v8 = vperm.slane %v6310_v31, 6  ;;  %v6315_v29 = vperm.slane %v6314_v45, 6 }
 0x1c2   : > { %6237 = vst [vmem:[#allocation103_spill] sm:$0xff] %v4168_v54  ;;  %v4337_v14 = vadd.f32 %v1405_v60, %v6271_v57  ;;  %v6285_v18 = vld [vmem:[#allocation22_spill] sm:$0xff]  ;;  %v4376_v60 = vadd.f32 %v1418_v19, %v6295_v39  ;;  %v6306_v57 = vld [vmem:[#allocation32_spill] sm:$0xff]  ;;  %v6316_v39 = vld [vmem:[#allocation37_spill] sm:$0xff] }
 0x1c3   : > { %6263 = vst [vmem:[#allocation104_spill] sm:$0xff] %v4285_v62  ;;  %v1419_v62 = vmul.f32 %v1386_v2, %v6270_v38  ;;  %v4313_v2 = vadd.f32 %v1397_v3, %v3975_v43  ;;  %v6272_v43 = vld [vmem:[#allocation15_spill] sm:$0xff]  ;;  %v4361_v58 = vadd.f32 %v1413_v12, %v6285_v18  ;;  %v4373_v38 = vadd.f32 %v1417_v36, %v6293_v28  ;;  %v6335_v54 = vld [vmem:[#allocation86_spill] sm:$0xff] }
 0x1c4   : > { %v4340_v4 = vadd.f32 %v1406_v34, %v6272_v43  ;;  %6274 = vst [vmem:[#allocation14_spill] sm:$0xff] %v4343_v25  ;;  %v6287_v3 = vld [vmem:[#allocation23_spill] sm:$0xff]  ;;  %v6303_v12 = vperm.slane %v6302_v20, 6  ;;  %v6307_v19 = vperm.slane %v6306_v57, 6  ;;  %v6313_v18 = vperm.slane %v6312_v61, 6 }
 0x1c5   : > { %6276 = vst [vmem:[#allocation15_spill] sm:$0xff] %v4346_v5  ;;  %v4364_v49 = vadd.f32 %v1414_v46, %v6287_v3  ;;  %v4379_v34 = vadd.f32 %v1419_v62, %v6297_v35  ;;  %v6308_v62 = vld [vmem:[#allocation33_spill] sm:$0xff]  ;;  %v6317_v35 = vperm.slane %v6316_v39, 6  ;;  %v6339_v5 = vld [vmem:[#allocation87_spill] sm:$0xff] }
 0x1c6   : > { %6278 = vst [vmem:[#allocation16_spill] sm:$0xff] %v4349_v53  ;;  %v6309_v51 = vperm.slane %v6308_v62, 6  ;;  %v6338_v53 = vperm.slane %v6312_v61, 7 }
 0x1c7   : > { %6280 = vst [vmem:[#allocation17_spill] sm:$0xff] %v4352_v48 }
 0x1c8   : > { %6282 = vst [vmem:[#allocation18_spill] sm:$0xff] %v4355_v0 }
 0x1c9   : > { %6284 = vst [vmem:[#allocation19_spill] sm:$0xff] %v4358_v44 }
 0x1ca   : > { %6286 = vst [vmem:[#allocation20_spill] sm:$0xff] %v4361_v58  ;;  %v6301_v6 = vld [vmem:[#allocation104_spill] sm:$0xff] }
 0x1cb   : > { %6288 = vst [vmem:[#allocation21_spill] sm:$0xff] %v4364_v49  ;;  %v1456_v33 = vmul.f32 %v6301_v6, %v6300_v47  ;;  %v1457_v46 = vmul.f32 %v6301_v6, %v6303_v12  ;;  %v1458_v36 = vmul.f32 %v6301_v6, %v6305_v1  ;;  %v1459_v43 = vmul.f32 %v6301_v6, %v6307_v19  ;;  %v6318_v12 = vld [vmem:[#allocation38_spill] sm:$0xff] }
 0x1cc   : > { %6290 = vst [vmem:[#allocation22_spill] sm:$0xff] %v4367_v22  ;;  %v1460_v50 = vmul.f32 %v6301_v6, %v6309_v51  ;;  %v1461_v24 = vmul.f32 %v6301_v6, %v6311_v8  ;;  %v1462_v3 = vmul.f32 %v6301_v6, %v6313_v18  ;;  %v1463_v28 = vmul.f32 %v6301_v6, %v6315_v29  ;;  %v6320_v51 = vld [vmem:[#allocation81_spill] sm:$0xff] }
 0x1cd   : > { %6292 = vst [vmem:[#allocation23_spill] sm:$0xff] %v4370_v21  ;;  %v1464_v47 = vmul.f32 %v6301_v6, %v6317_v35  ;;  %v6319_v1 = vperm.slane %v6318_v12, 6  ;;  %v1490_v21 = vadd.f32 %v1458_v36, %v1422_v55  ;;  %v6322_v18 = vperm.slane %v6299_v7, 7  ;;  %v6330_v36 = vld [vmem:[#allocation84_spill] sm:$0xff] }
 0x1ce   : > { %6294 = vst [vmem:[#allocation24_spill] sm:$0xff] %v4373_v38  ;;  %v1489_v38 = vadd.f32 %v1457_v46, %v1421_v23  ;;  %v6323_v29 = vperm.slane %v6302_v20, 7  ;;  %v6324_v35 = vperm.slane %v6304_v26, 7  ;;  %v1491_v55 = vadd.f32 %v1459_v43, %v1423_v59  ;;  %v6332_v26 = vld [vmem:[#allocation85_spill] sm:$0xff] }
 0x1cf   : > { %6296 = vst [vmem:[#allocation25_spill] sm:$0xff] %v4376_v60  ;;  %v1465_v19 = vmul.f32 %v6301_v6, %v6319_v1  ;;  %v1488_v60 = vadd.f32 %v1456_v33, %v1420_v41  ;;  %v1524_v22 = vmul.f32 %v4384_v30, %v6322_v18  ;;  %v6325_v1 = vld [vmem:[#allocation82_spill] sm:$0xff]  ;;  %v6329_v33 = vperm.slane %v6306_v57, 7 }
 0x1d0   : > { %6298 = vst [vmem:[#allocation26_spill] sm:$0xff] %v4379_v34  ;;  %v6321_v34 = vperm.slane %v6320_v51, 6  ;;  %v1525_v49 = vmul.f32 %v4384_v30, %v6323_v29  ;;  %v1526_v58 = vmul.f32 %v4384_v30, %v6324_v35  ;;  %v6326_v44 = vperm.slane %v6325_v1, 6 }
 0x1d1   : > { %v1527_v46 = vmul.f32 %v4384_v30, %v6329_v33  ;;  %v6331_v18 = vperm.slane %v6330_v36, 6  ;;  %v6333_v20 = vperm.slane %v6332_v26, 6  ;;  %v1492_v7 = vadd.f32 %v1460_v50, %v1424_v11 }
 0x1d2   : > { %v1466_v8 = vmul.f32 %v6301_v6, %v6321_v34  ;;  %v1467_v0 = vmul.f32 %v6301_v6, %v6326_v44  ;;  %v6327_v34 = vld [vmem:[#allocation83_spill] sm:$0xff]  ;;  %v6334_v44 = vperm.slane %v6308_v62, 7  ;;  %v1493_v43 = vadd.f32 %v1461_v24, %v1425_v56  ;;  %v6342_v24 = vld [vmem:[#allocation88_spill] sm:$0xff] }
 0x1d3   : > { %v6328_v41 = vperm.slane %v6327_v34, 6  ;;  %v1469_v29 = vmul.f32 %v6301_v6, %v6331_v18  ;;  %v1470_v35 = vmul.f32 %v6301_v6, %v6333_v20  ;;  %v1494_v33 = vadd.f32 %v1462_v3, %v1426_v32 }
 0x1d4   : > { %v1528_v48 = vmul.f32 %v4384_v30, %v6334_v44  ;;  %v6337_v57 = vperm.slane %v6310_v31, 7  ;;  %v1530_v20 = vmul.f32 %v4384_v30, %v6338_v53  ;;  %v1556_v11 = vadd.f32 %v1524_v22, %v1488_v60 }
 0x1d5   : > { %v1468_v23 = vmul.f32 %v6301_v6, %v6328_v41  ;;  %v6336_v41 = vperm.slane %v6335_v54, 6  ;;  %v1557_v50 = vadd.f32 %v1525_v49, %v1489_v38  ;;  %v1558_v62 = vadd.f32 %v1526_v58, %v1490_v21 }
 0x1d6   : > { %v1529_v18 = vmul.f32 %v4384_v30, %v6337_v57  ;;  %v6340_v44 = vperm.slane %v6339_v5, 6  ;;  %v1495_v25 = vadd.f32 %v1463_v28, %v1427_v40  ;;  %v1559_v32 = vadd.f32 %v1527_v46, %v1491_v55  ;;  %1588 = vst [vmem:[%s4466_s19] sm:$0xff] %v1556_v11  ;;  %v6345_v40 = vld [vmem:[#allocation89_spill] sm:$0xff] }
 0x1d7   : > { %v1471_v59 = vmul.f32 %v6301_v6, %v6336_v41  ;;  %v6341_v41 = vperm.slane %v6314_v45, 7  ;;  %v6343_v3 = vperm.slane %v6342_v24, 6  ;;  %v1496_v61 = vadd.f32 %v1464_v47, %v4310_v13  ;;  %1589 = vst [vmem:[%s4466_s19 + $0x8] sm:$0xff] %v1557_v50 }
 0x1d8   : > { %v1472_v37 = vmul.f32 %v6301_v6, %v6340_v44  ;;  %v6344_v53 = vperm.slane %v6316_v39, 7  ;;  %v1560_v49 = vadd.f32 %v1528_v48, %v1492_v7  ;;  %v6346_v22 = vperm.slane %v6345_v40, 6  ;;  %v6348_v48 = vld [vmem:[#allocation90_spill] sm:$0xff]  ;;  %1590 = vst [vmem:[%s4466_s19 + $0x10] sm:$0xff] %v1558_v62 }
 0x1d9   : > { %v1531_v56 = vmul.f32 %v4384_v30, %v6341_v41  ;;  %v1473_v57 = vmul.f32 %v6301_v6, %v6343_v3  ;;  %v1497_v38 = vadd.f32 %v1465_v19, %v4313_v2  ;;  %v6347_v13 = vperm.slane %v6318_v12, 7  ;;  %v6351_v2 = vld [vmem:[#allocation91_spill] sm:$0xff]  ;;  %1591 = vst [vmem:[%s4466_s19 + $0x18] sm:$0xff] %v1559_v32 }
 0x1da   : > { %v1532_v58 = vmul.f32 %v4384_v30, %v6344_v53  ;;  %v1474_v21 = vmul.f32 %v6301_v6, %v6346_v22  ;;  %v1561_v28 = vadd.f32 %v1529_v18, %v1493_v43  ;;  %v6349_v7 = vperm.slane %v6348_v48, 6  ;;  %1592 = vst [vmem:[%s4466_s19 + $0x20] sm:$0xff] %v1560_v49 }
 0x1db   : > { %v1533_v60 = vmul.f32 %v4384_v30, %v6347_v13  ;;  %v1498_v55 = vadd.f32 %v1466_v8, %v4316_v17  ;;  %v6350_v46 = vperm.slane %v6320_v51, 7  ;;  %v1562_v44 = vadd.f32 %v1530_v20, %v1494_v33  ;;  %v6354_v17 = vld [vmem:[#allocation92_spill] sm:$0xff] }
 0x1dc   : > { %v1475_v47 = vmul.f32 %v6301_v6, %v6349_v7  ;;  %v6352_v19 = vperm.slane %v6351_v2, 6  ;;  %v1499_v43 = vadd.f32 %v1467_v0, %v4319_v16  ;;  %v6353_v18 = vperm.slane %v6325_v1, 7  ;;  %v6357_v16 = vld [vmem:[#allocation93_spill] sm:$0xff]  ;;  %1593 = vst [vmem:[%s4466_s19 + $0x28] sm:$0xff] %v1561_v28 }
 0x1dd   : > { %v1534_v11 = vmul.f32 %v4384_v30, %v6350_v46  ;;  %v1563_v3 = vadd.f32 %v1531_v56, %v1495_v25  ;;  %v6355_v8 = vperm.slane %v6354_v17, 6  ;;  %v1500_v33 = vadd.f32 %v1468_v23, %v4322_v15  ;;  %v6360_v15 = vld [vmem:[#allocation94_spill] sm:$0xff]  ;;  %1594 = vst [vmem:[%s4466_s19 + $0x30] sm:$0xff] %v1562_v44 }
 0x1de   : > { %v1476_v41 = vmul.f32 %v6301_v6, %v6352_v19  ;;  %v1535_v50 = vmul.f32 %v4384_v30, %v6353_v18  ;;  %v6356_v62 = vperm.slane %v6327_v34, 7  ;;  %v1564_v22 = vadd.f32 %v1532_v58, %v1496_v61 }
 0x1df   : > { %v1477_v53 = vmul.f32 %v6301_v6, %v6355_v8  ;;  %v6358_v0 = vperm.slane %v6357_v16, 6  ;;  %v1501_v25 = vadd.f32 %v1469_v29, %v4325_v9  ;;  %v6359_v56 = vperm.slane %v6330_v36, 7  ;;  %v6363_v9 = vld [vmem:[#allocation95_spill] sm:$0xff]  ;;  %1595 = vst [vmem:[%s4466_s19 + $0x38] sm:$0xff] %v1563_v3 }
 0x1e0   : > { %v1536_v20 = vmul.f32 %v4384_v30, %v6356_v62  ;;  %v1565_v7 = vadd.f32 %v1533_v60, %v1497_v38  ;;  %v6361_v23 = vperm.slane %v6360_v15, 6  ;;  %v1502_v61 = vadd.f32 %v1470_v35, %v4328_v52  ;;  %1596 = vst [vmem:[%s4466_s19 + $0x40] sm:$0xff] %v1564_v22 }
 0x1e1   : > { %v1478_v13 = vmul.f32 %v6301_v6, %v6358_v0  ;;  %v1537_v32 = vmul.f32 %v4384_v30, %v6359_v56  ;;  %v6362_v58 = vperm.slane %v6332_v26, 7  ;;  %v1566_v19 = vadd.f32 %v1534_v11, %v1498_v55 }
 0x1e2   : > { %v1479_v46 = vmul.f32 %v6301_v6, %v6361_v23  ;;  %v6364_v29 = vperm.slane %v6363_v9, 6  ;;  %v1503_v38 = vadd.f32 %v1471_v59, %v4331_v10  ;;  %v6365_v60 = vperm.slane %v6335_v54, 7  ;;  %v6368_v10 = vld [vmem:[#allocation98_spill] sm:$0xff]  ;;  %1597 = vst [vmem:[%s4466_s19 + $0x48] sm:$0xff] %v1565_v7 }
 0x1e3   : > { %v1538_v49 = vmul.f32 %v4384_v30, %v6362_v58  ;;  %v1567_v8 = vadd.f32 %v1535_v50, %v1499_v43  ;;  %v6366_v52 = vperm.slane %v4144_v42, 6  ;;  %v1504_v55 = vadd.f32 %v1472_v37, %v4334_v27  ;;  %1598 = vst [vmem:[%s4466_s19 + $0x50] sm:$0xff] %v1566_v19 }
 0x1e4   : > { %v1480_v18 = vmul.f32 %v6301_v6, %v6364_v29  ;;  %v1539_v28 = vmul.f32 %v4384_v30, %v6365_v60  ;;  %v6367_v11 = vperm.slane %v6339_v5, 7  ;;  %v1568_v62 = vadd.f32 %v1536_v20, %v1500_v33 }
 0x1e5   : > { %v1481_v35 = vmul.f32 %v6301_v6, %v6366_v52  ;;  %v6369_v59 = vperm.slane %v6368_v10, 6  ;;  %v1505_v43 = vadd.f32 %v1473_v57, %v4337_v14  ;;  %v6370_v50 = vperm.slane %v6342_v24, 7  ;;  %v6373_v14 = vld [vmem:[#allocation100_spill] sm:$0xff]  ;;  %1599 = vst [vmem:[%s4466_s19 + $0x58] sm:$0xff] %v1567_v8 }
 0x1e6   : > { %v1540_v44 = vmul.f32 %v4384_v30, %v6367_v11  ;;  %v1569_v56 = vadd.f32 %v1537_v32, %v1501_v25  ;;  %v6371_v37 = vperm.slane %v4152_v63, 6  ;;  %v1506_v33 = vadd.f32 %v1474_v21, %v4340_v4  ;;  %v6375_v25 = vld [vmem:[#allocation14_spill] sm:$0xff]  ;;  %v6377_v4 = vld [vmem:[#allocation101_spill] sm:$0xff]  ;;  %1600 = vst [vmem:[%s4466_s19 + $0x60] sm:$0xff] %v1568_v62 }
 0x1e7   : > { %v1482_v0 = vmul.f32 %v6301_v6, %v6369_v59  ;;  %v1541_v3 = vmul.f32 %v4384_v30, %v6370_v50  ;;  %v6372_v20 = vperm.slane %v6345_v40, 7  ;;  %v1570_v23 = vadd.f32 %v1538_v49, %v1502_v61  ;;  %v6379_v61 = vld [vmem:[#allocation15_spill] sm:$0xff] }
 0x1e8   : > { %v1483_v27 = vmul.f32 %v6301_v6, %v6371_v37  ;;  %v6374_v57 = vperm.slane %v6373_v14, 6  ;;  %v1507_v32 = vadd.f32 %v1475_v47, %v6375_v25  ;;  %v6376_v7 = vperm.slane %v6348_v48, 7  ;;  %v6381_v47 = vld [vmem:[#allocation102_spill] sm:$0xff]  ;;  %1601 = vst [vmem:[%s4466_s19 + $0x68] sm:$0xff] %v1569_v56 }
 0x1e9   : > { %v1542_v22 = vmul.f32 %v4384_v30, %v6372_v20  ;;  %v1571_v60 = vadd.f32 %v1539_v28, %v1503_v38  ;;  %v6378_v21 = vperm.slane %v6377_v4, 6  ;;  %v1508_v49 = vadd.f32 %v1476_v41, %v6379_v61  ;;  %v6383_v38 = vld [vmem:[#allocation16_spill] sm:$0xff]  ;;  %v6385_v41 = vld [vmem:[#allocation103_spill] sm:$0xff]  ;;  %1602 = vst [vmem:[%s4466_s19 + $0x70] sm:$0xff] %v1570_v23 }
 0x1ea   : > { %v1484_v58 = vmul.f32 %v6301_v6, %v6374_v57  ;;  %v1543_v29 = vmul.f32 %v4384_v30, %v6376_v7  ;;  %v6380_v19 = vperm.slane %v6351_v2, 7  ;;  %v1572_v59 = vadd.f32 %v1540_v44, %v1504_v55  ;;  %v6387_v55 = vld [vmem:[#allocation17_spill] sm:$0xff]  ;;  %v6396_v23 = vld [vmem:[#allocation23_spill] sm:$0xff] }
 0x1eb   : > { %v1485_v52 = vmul.f32 %v6301_v6, %v6378_v21  ;;  %v6382_v50 = vperm.slane %v6381_v47, 6  ;;  %v1509_v28 = vadd.f32 %v1477_v53, %v6383_v38  ;;  %v6384_v8 = vperm.slane %v6354_v17, 7  ;;  %v6389_v53 = vld [vmem:[#allocation18_spill] sm:$0xff]  ;;  %1603 = vst [vmem:[%s4466_s19 + $0x78] sm:$0xff] %v1571_v60  ;;  %v6399_v60 = vld [vmem:[#allocation25_spill] sm:$0xff] }
 0x1ec   : > { %v1544_v11 = vmul.f32 %v4384_v30, %v6380_v19  ;;  %v1573_v57 = vadd.f32 %v1541_v3, %v1505_v43  ;;  %v6386_v25 = vperm.slane %v6385_v41, 6  ;;  %v1510_v44 = vadd.f32 %v1478_v13, %v6387_v55  ;;  %1604 = vst [vmem:[%s4466_s19 + $0x80] sm:$0xff] %v1572_v59 }
 0x1ed   : > { %v1486_v37 = vmul.f32 %v6301_v6, %v6382_v50  ;;  %v1545_v20 = vmul.f32 %v4384_v30, %v6384_v8  ;;  %v6388_v62 = vperm.slane %v6357_v16, 7  ;;  %v1574_v61 = vadd.f32 %v1542_v22, %v1506_v33  ;;  %v6390_v50 = vld [vmem:[#allocation19_spill] sm:$0xff]  ;;  %v6393_v8 = vld [vmem:[#allocation21_spill] sm:$0xff] }
 0x1ee   : > { %v1487_v7 = vmul.f32 %v6301_v6, %v6386_v25  ;;  %v1511_v19 = vadd.f32 %v1479_v46, %v6389_v53  ;;  %v1512_v38 = vadd.f32 %v1480_v18, %v6390_v50  ;;  %v6391_v43 = vperm.slane %v6360_v15, 7  ;;  %v6392_v6 = vld [vmem:[#allocation20_spill] sm:$0xff]  ;;  %v6395_v46 = vld [vmem:[#allocation22_spill] sm:$0xff]  ;;  %1605 = vst [vmem:[%s4466_s19 + $0x88] sm:$0xff] %v1573_v57 }
 0x1ef   : > { %v1546_v21 = vmul.f32 %v4384_v30, %v6388_v62  ;;  %v1575_v56 = vadd.f32 %v1543_v29, %v1507_v32  ;;  %v1513_v13 = vadd.f32 %v1481_v35, %v6392_v6  ;;  %v1514_v25 = vadd.f32 %v1482_v0, %v6393_v8  ;;  %v6398_v35 = vld [vmem:[#allocation24_spill] sm:$0xff]  ;;  %1606 = vst [vmem:[%s4466_s19 + $0x90] sm:$0xff] %v1574_v61 }
 0x1f0   : > { %v1547_v3 = vmul.f32 %v4384_v30, %v6391_v43  ;;  %v6394_v55 = vperm.slane %v6363_v9, 7  ;;  %v1576_v22 = vadd.f32 %v1544_v11, %v1508_v49  ;;  %v1515_v18 = vadd.f32 %v1483_v27, %v6395_v46  ;;  %v6401_v27 = vld [vmem:[#allocation26_spill] sm:$0xff]  ;;  %v6410_v46 = vld [vmem:[#allocation53_spill] sm:$0xff] }
 0x1f1   : > { %v1516_v62 = vadd.f32 %v1484_v58, %v6396_v23  ;;  %v6397_v53 = vperm.slane %v4144_v42, 7  ;;  %v1577_v29 = vadd.f32 %v1545_v20, %v1509_v28  ;;  %v1517_v0 = vadd.f32 %v1485_v52, %v6398_v35  ;;  %1607 = vst [vmem:[%s4466_s19 + $0x98] sm:$0xff] %v1575_v56  ;;  %v6409_v56 = vld [vmem:[#allocation65_spill] sm:$0xff]  ;;  %v6412_v35 = vld [vmem:[#allocation54_spill] sm:$0xff] }
 0x1f2   : > { %v1548_v33 = vmul.f32 %v4384_v30, %v6394_v55  ;;  %v1518_v50 = vadd.f32 %v1486_v37, %v6399_v60  ;;  %v6400_v49 = vperm.slane %v6368_v10, 7  ;;  %v1578_v59 = vadd.f32 %v1546_v21, %v1510_v44  ;;  %1608 = vst [vmem:[%s4466_s19 + $0xa0] sm:$0xff] %v1576_v22  ;;  %v6407_v55 = vld [vmem:[#allocation64_spill] sm:$0xff]  ;;  %v6415_v22 = vld [vmem:[#allocation46_spill] sm:$0xff] }
 0x1f3   : > { %v1549_v32 = vmul.f32 %v4384_v30, %v6397_v53  ;;  %v1519_v58 = vadd.f32 %v1487_v7, %v6401_v27  ;;  %v6402_v43 = vperm.slane %v4152_v63, 7  ;;  %v6403_v20 = vperm.slane %v6373_v14, 7  ;;  %v6411_v53 = vld [vmem:[#allocation44_spill] sm:$0xff]  ;;  %1609 = vst [vmem:[%s4466_s19 + $0xa8] sm:$0xff] %v1577_v29  ;;  %v6422_v29 = vld [vmem:[#allocation59_spill] sm:$0xff] }
 0x1f4   : > { %v1550_v11 = vmul.f32 %v4384_v30, %v6400_v49  ;;  %v1579_v52 = vadd.f32 %v1547_v3, %v1511_v19  ;;  %v6404_v37 = vperm.slane %v6377_v4, 7  ;;  %v6405_v44 = vperm.slane %v6381_v47, 7  ;;  %v6408_v19 = vld [vmem:[#allocation52_spill] sm:$0xff]  ;;  %1610 = vst [vmem:[%s4466_s19 + $0xb0] sm:$0xff] %v1578_v59 }
 0x1f5   : > { %v1551_v28 = vmul.f32 %v4384_v30, %v6402_v43  ;;  %v1552_v57 = vmul.f32 %v4384_v30, %v6403_v20  ;;  %v6406_v7 = vperm.slane %v6385_v41, 7  ;;  %v1580_v8 = vadd.f32 %v1548_v33, %v1512_v38  ;;  %v6414_v38 = vld [vmem:[#allocation55_spill] sm:$0xff]  ;;  %v6416_v27 = vld [vmem:[#allocation56_spill] sm:$0xff] }
 0x1f6   : > { %v1553_v6 = vmul.f32 %v4384_v30, %v6404_v37  ;;  %v1554_v21 = vmul.f32 %v4384_v30, %v6405_v44  ;;  %v4626_v3 = vadd.f32 %v6408_v19, %v6407_v55  ;;  %v4630_v23 = vadd.f32 %v6410_v46, %v6409_v56  ;;  %v6417_v20 = vld [vmem:[#allocation47_spill] sm:$0xff]  ;;  %v6418_v37 = vld [vmem:[#allocation57_spill] sm:$0xff]  ;;  %v6419_v55 = vld [vmem:[#allocation48_spill] sm:$0xff]  ;;  %1611 = vst [vmem:[%s4466_s19 + $0xb8] sm:$0xff] %v1579_v52 }
 0x1f7   : > { %v1555_v61 = vmul.f32 %v4384_v30, %v6406_v7  ;;  %v4634_v60 = vadd.f32 %v6412_v35, %v6411_v53  ;;  %v1581_v49 = vadd.f32 %v1549_v32, %v1513_v13  ;;  %v6413_v30 = vld [vmem:[#allocation45_spill] sm:$0xff]  ;;  %v4643_v43 = vadd.f32 %v6416_v27, %v6415_v22  ;;  %v6420_v19 = vld [vmem:[#allocation58_spill] sm:$0xff]  ;;  %v6424_v53 = vld [vmem:[#allocation60_spill] sm:$0xff]  ;;  %1612 = vst [vmem:[%s4466_s19 + $0xc0] sm:$0xff] %v1580_v8 }
 0x1f8   : > { %v4639_v33 = vadd.f32 %v6414_v38, %v6413_v30  ;;  %v4647_v44 = vadd.f32 %v6418_v37, %v6417_v20  ;;  %v1582_v7 = vadd.f32 %v1550_v11, %v1514_v25  ;;  %v4652_v13 = vadd.f32 %v6420_v19, %v6419_v55  ;;  %v6421_v32 = vld [vmem:[#allocation49_spill] sm:$0xff]  ;;  %v6423_v46 = vld [vmem:[#allocation50_spill] sm:$0xff]  ;;  %v6426_v22 = vld [vmem:[#allocation51_spill] sm:$0xff] }
 0x1f9   : > { %v4656_v56 = vadd.f32 %v6422_v29, %v6421_v32  ;;  %v4660_v35 = vadd.f32 %v6424_v53, %v6423_v46  ;;  %v1583_v30 = vadd.f32 %v1551_v28, %v1515_v18  ;;  %v1584_v25 = vadd.f32 %v1552_v57, %v1516_v62  ;;  %1613 = vst [vmem:[%s4466_s19 + $0xc8] sm:$0xff] %v1581_v49  ;;  %v6427_v27 = vld [vmem:[#allocation29_spill] sm:$0xff]  ;;  %v6429_v28 = vld [vmem:[#allocation30_spill] sm:$0xff]  ;;  %v6431_v55 = vld [vmem:[#allocation31_spill] sm:$0xff] }
 0x1fa   : > { %v1585_v11 = vadd.f32 %v1553_v6, %v1517_v0  ;;  %v1586_v59 = vadd.f32 %v1554_v21, %v1518_v50  ;;  %v1587_v38 = vadd.f32 %v1555_v61, %v1519_v58  ;;  %v6428_v20 = vperm.slane %v6427_v27, 5  ;;  %v6433_v0 = vld [vmem:[#allocation32_spill] sm:$0xff]  ;;  %1614 = vst [vmem:[%s4466_s19 + $0xd0] sm:$0xff] %v1582_v7  ;;  %v6435_v58 = vld [vmem:[#allocation33_spill] sm:$0xff]  ;;  %v6438_v49 = vld [vmem:[#allocation35_spill] sm:$0xff] }
 0x1fb   : > { %6425 = vst [vmem:[#allocation27_spill] sm:$0xff] %v4660_v35  ;;  %v6430_v52 = vperm.slane %v6429_v28, 5  ;;  %v6432_v19 = vperm.slane %v6431_v55, 5  ;;  %v6434_v57 = vperm.slane %v6433_v0, 5  ;;  %v6436_v6 = vperm.slane %v6435_v58, 5 }
 0x1fc   : > { %v779_v18 = vmul.f32 %v6428_v20, %v6426_v22  ;;  %v6437_v61 = vperm.slane %v6310_v31, 5  ;;  %v6439_v32 = vperm.slane %v6438_v49, 5  ;;  %v6440_v46 = vperm.slane %v6314_v45, 5  ;;  %1615 = vst [vmem:[%s4466_s19 + $0xd8] sm:$0xff] %v1583_v30 }
 0x1fd   : > { %v780_v37 = vmul.f32 %v6430_v52, %v6426_v22  ;;  %v781_v62 = vmul.f32 %v6432_v19, %v6426_v22  ;;  %v782_v50 = vmul.f32 %v6434_v57, %v6426_v22  ;;  %v783_v21 = vmul.f32 %v6436_v6, %v6426_v22  ;;  %1616 = vst [vmem:[%s4466_s19 + $0xe0] sm:$0xff] %v1584_v25 }
 0x1fe   : > { %v784_v8 = vmul.f32 %v6437_v61, %v6426_v22  ;;  %v785_v29 = vmul.f32 %v6439_v32, %v6426_v22  ;;  %v786_v53 = vmul.f32 %v6440_v46, %v6426_v22  ;;  %v6441_v7 = vperm.slane %v6316_v39, 5  ;;  %1617 = vst [vmem:[%s4466_s19 + $0xe8] sm:$0xff] %v1585_v11 }
 0x1ff   : > { %v6442_v52 = vperm.slane %v6318_v12, 5  ;;  %v6443_v57 = vperm.slane %v6320_v51, 5  ;;  %v6444_v61 = vperm.slane %v6325_v1, 5  ;;  %v6445_v30 = vperm.slane %v6327_v34, 5  ;;  %1618 = vst [vmem:[%s4466_s19 + $0xf0] sm:$0xff] %v1586_v59 }
 0x200   : > { %v787_v20 = vmul.f32 %v6441_v7, %v6426_v22  ;;  %v6446_v7 = vperm.slane %v6330_v36, 5  ;;  %v6449_v25 = vperm.slane %v6339_v5, 5  ;;  %v6453_v11 = vperm.slane %v6351_v2, 5  ;;  %1619 = vst [vmem:[%s4466_s19 + $0xf8] sm:$0xff] %v1587_v38 }
 0x201   : > { %v788_v19 = vmul.f32 %v6442_v52, %v6426_v22  ;;  %v789_v6 = vmul.f32 %v6443_v57, %v6426_v22  ;;  %v790_v32 = vmul.f32 %v6444_v61, %v6426_v22  ;;  %v791_v46 = vmul.f32 %v6445_v30, %v6426_v22 }
 0x202   : > { %v792_v12 = vmul.f32 %v6446_v7, %v6426_v22  ;;  %v6447_v52 = vperm.slane %v6332_v26, 5  ;;  %v6448_v57 = vperm.slane %v6335_v54, 5  ;;  %v795_v61 = vmul.f32 %v6449_v25, %v6426_v22 }
 0x203   : > { %v6450_v30 = vperm.slane %v6342_v24, 5  ;;  %v6451_v7 = vperm.slane %v6345_v40, 5  ;;  %v6454_v25 = vperm.slane %v6354_v17, 5  ;;  %v6457_v59 = vperm.slane %v6363_v9, 5 }
 0x204   : > { %v793_v39 = vmul.f32 %v6447_v52, %v6426_v22  ;;  %v794_v51 = vmul.f32 %v6448_v57, %v6426_v22  ;;  %v6452_v52 = vperm.slane %v6348_v48, 5  ;;  %v799_v57 = vmul.f32 %v6453_v11, %v6426_v22 }
 0x205   : > { %v796_v34 = vmul.f32 %v6450_v30, %v6426_v22  ;;  %v797_v36 = vmul.f32 %v6451_v7, %v6426_v22  ;;  %v800_v30 = vmul.f32 %v6454_v25, %v6426_v22  ;;  %v6455_v7 = vperm.slane %v6357_v16, 5 }
 0x206   : > { %v798_v26 = vmul.f32 %v6452_v52, %v6426_v22  ;;  %v6456_v52 = vperm.slane %v6360_v15, 5  ;;  %v803_v24 = vmul.f32 %v6457_v59, %v6426_v22  ;;  %v6458_v11 = vperm.slane %v4144_v42, 5 }
 0x207   : > { %v801_v48 = vmul.f32 %v6455_v7, %v6426_v22  ;;  %v6459_v25 = vperm.slane %v6368_v10, 5  ;;  %v6460_v7 = vperm.slane %v4152_v63, 5  ;;  %v6462_v9 = vperm.slane %v6377_v4, 5 }
 0x208   : > { %v802_v40 = vmul.f32 %v6456_v52, %v6426_v22  ;;  %v804_v2 = vmul.f32 %v6458_v11, %v6426_v22  ;;  %v6461_v52 = vperm.slane %v6373_v14, 5  ;;  %v6463_v42 = vperm.slane %v6381_v47, 5 }
 0x209   : > { %v805_v17 = vmul.f32 %v6459_v25, %v6426_v22  ;;  %v806_v16 = vmul.f32 %v6460_v7, %v6426_v22  ;;  %v808_v59 = vmul.f32 %v6462_v9, %v6426_v22  ;;  %v6464_v10 = vperm.slane %v6385_v41, 5 }
 0x20a   : > { %v807_v38 = vmul.f32 %v6461_v52, %v6426_v22  ;;  %v809_v11 = vmul.f32 %v6463_v42, %v6426_v22 }
 0x20b   : > { %v810_v25 = vmul.f32 %v6464_v10, %v6426_v22 }
 0x20c   : > { %2038 = shalt.err (!%p2035_p13)
}
 0x20d   : > { %1822 = dma.vmem_to_hbm [thread:$0]  (%p2233_p4), %s4738_s20, 4096, %s4740_s21, %s1626_s22   ;;  %v6465_v42 = vld [vmem:[#allocation39_spill] sm:$0xff]  ;;  %v6466_v10 = vld [vmem:[#allocation40_spill] sm:$0xff]  ;;  %v6467_v7 = vld [vmem:[#allocation41_spill] sm:$0xff] }
 0x20e   : > { %v811_v9 = vadd.f32 %v779_v18, %v6465_v42  ;;  %v812_v22 = vadd.f32 %v780_v37, %v6466_v10  ;;  %v813_v52 = vadd.f32 %v781_v62, %v6467_v7  ;;  %v6468_v41 = vld [vmem:[#allocation42_spill] sm:$0xff]  ;;  %v6469_v4 = vld [vmem:[#allocation43_spill] sm:$0xff]  ;;  %v6472_v1 = vld [vmem:[#allocation68_spill] sm:$0xff]  ;;  %s4937_s19 = scalar_lea.vmem [#allocation7], %s2258_s30  ;;  %s1639_s5 = scalar_lea.hbm %s5169_s2, %s1813_s23 }
 0x20f   : > { %v814_v47 = vadd.f32 %v782_v50, %v6468_v41  ;;  %v815_v14 = vadd.f32 %v783_v21, %v6469_v4  ;;  %v6470_v63 = vld [vmem:[#allocation66_spill] sm:$0xff]  ;;  %v6471_v5 = vld [vmem:[#allocation67_spill] sm:$0xff]  ;;  %v818_v45 = vadd.f32 %v786_v53, %v6472_v1  ;;  %v6473_v49 = vld [vmem:[#allocation69_spill] sm:$0xff]  ;;  %s1641_s10 = sshll.u32 %s4937_s19, 4  ;;  %s1643_s15 = sshll.u32 %s1639_s5, 4  ;;  %s1642_s10 = int_to_ptr.vmem [resolvable:$true] %s1641_s10  ;;  %s1644_s15 = int_to_ptr.hbm [resolvable:$true] %s1643_s15 }
 0x210   : > { %v816_v15 = vadd.f32 %v784_v8, %v6470_v63  ;;  %v817_v54 = vadd.f32 %v785_v29, %v6471_v5  ;;  %v4803_v31 = vadd.f32 %v787_v20, %v6473_v49  ;;  %v6474_v35 = vld [vmem:[#allocation70_spill] sm:$0xff]  ;;  %v6475_v18 = vld [vmem:[#allocation71_spill] sm:$0xff]  ;;  %v6476_v62 = vld [vmem:[#allocation72_spill] sm:$0xff]  ;;  %s1621_s23 = scalar_lea.sflag [#allocation4], %s2255_s28  ;;  %s2053_s20 = sshra.s32 %s1644_s15, 4  ;;  %s2054_s20 = int_to_ptr.hbm [resolvable:$true] %s2053_s20 }
 0x211   : > { %v4806_v58 = vadd.f32 %v788_v19, %v6474_v35  ;;  %v4809_v37 = vadd.f32 %v789_v6, %v6475_v18  ;;  %v4812_v42 = vadd.f32 %v790_v32, %v6476_v62  ;;  %v6477_v41 = vld [vmem:[#allocation73_spill] sm:$0xff]  ;;  %v6478_v63 = vld [vmem:[#allocation74_spill] sm:$0xff]  ;;  %v6479_v5 = vld [vmem:[#allocation75_spill] sm:$0xff]  ;;  %s2055_s21 = scalar_lea.hbm %s2054_s20, 256  ;;  %s2059_s24 = scalar_lea.hbm %s5169_s2, 512 }
 0x212   : > { %v4815_v4 = vadd.f32 %v791_v46, %v6477_v41  ;;  %v4818_v50 = vadd.f32 %v792_v12, %v6478_v63  ;;  %v4821_v1 = vadd.f32 %v793_v39, %v6479_v5  ;;  %v6480_v21 = vld [vmem:[#allocation76_spill] sm:$0xff]  ;;  %v6481_v35 = vld [vmem:[#allocation77_spill] sm:$0xff]  ;;  %v6482_v29 = vld [vmem:[#allocation78_spill] sm:$0xff]  ;;  %v6496_v5 = vperm.slane %v6427_v27, 7  ;;  %p2056_p0 = scmp.ne.s32.totalorder %s2054_s20, %s2055_s21  ;;  %p2060_p8 = scmp.lt.s32.totalorder %s2054_s20, %s5169_s2 }
 0x213   : > { %v4824_v8 = vadd.f32 %v794_v51, %v6480_v21  ;;  %v4827_v49 = vadd.f32 %v795_v61, %v6481_v35  ;;  %v4830_v53 = vadd.f32 %v796_v34, %v6482_v29  ;;  %v6483_v20 = vld [vmem:[#allocation79_spill] sm:$0xff]  ;;  %v6484_v6 = vld [vmem:[#allocation80_spill] sm:$0xff]  ;;  %v6485_v12 = vld [vmem:[#allocation61_spill] sm:$0xff]  ;;  %v4848_v61 = vadd.f32 %v802_v40, %v4626_v3  ;;  %v4850_v34 = vpop.permute.xlu1 %944  ;;  %p2061_p1 = scmp.lt.s32.totalorder %s2059_s24, %s2055_s21 }
 0x214   : > { %v4833_v19 = vadd.f32 %v797_v36, %v6483_v20  ;;  %v4836_v32 = vadd.f32 %v798_v26, %v6484_v6  ;;  %v4839_v46 = vadd.f32 %v799_v57, %v6485_v12  ;;  %v6486_v39 = vld [vmem:[#allocation62_spill] sm:$0xff]  ;;  %v6487_v51 = vld [vmem:[#allocation63_spill] sm:$0xff]  ;;  %v4853_v36 = vadd.f32 %v803_v24, %v4630_v23  ;;  %v6488_v18 = vld [vmem:[#allocation96_spill] sm:$0xff]  ;;  %p2057_p2 = pnand %p2056_p0, %p2233_p4 }
 0x215   : > { %v4842_v10 = vadd.f32 %v800_v30, %v6486_v39  ;;  %v4845_v7 = vadd.f32 %v801_v48, %v6487_v51  ;;  %v4856_v26 = vadd.f32 %v804_v2, %v4634_v60  ;;  %v4859_v57 = vadd.f32 %v805_v17, %v4639_v33  ;;  %v6495_v41 = vld [vmem:[#allocation27_spill] sm:$0xff]  ;;  %v6499_v35 = vld [vmem:[#allocation34_spill] sm:$0xff]  ;;  %v6503_v39 = vld [vmem:[#allocation36_spill] sm:$0xff]  ;;  %p2062_p3 = por %p2061_p1, %p2060_p8 }
 0x216   : > { %v4862_v30 = vadd.f32 %v806_v16, %v4643_v43  ;;  %v4865_v48 = vadd.f32 %v807_v38, %v4647_v44  ;;  %v6489_v40 = vperm.slane %v6427_v27, 6  ;;  %v6490_v24 = vperm.slane %v6429_v28, 6  ;;  %v6493_v44 = vld [vmem:[#allocation33_spill] sm:$0xff]  ;;  %v6501_v6 = vld [vmem:[#allocation35_spill] sm:$0xff]  ;;  %p2058_p5 = pneg %p2057_p2 }
 0x217   : > { %v6491_v2 = vperm.slane %v6431_v55, 6  ;;  %v4877_v17 = vadd.f32 %v808_v59, %v4652_v13  ;;  %v4880_v16 = vadd.f32 %v809_v11, %v4656_v56  ;;  %v6492_v33 = vperm.slane %v6433_v0, 6 }
 0x218   : > { %v879_v3 = vmul.f32 %v6489_v40, %v6488_v18  ;;  %v880_v23 = vmul.f32 %v6490_v24, %v6488_v18  ;;  %v6494_v38 = vperm.slane %v6493_v44, 6  ;;  %v4889_v63 = vadd.f32 %v810_v25, %v6495_v41  ;;  %v6507_v41 = vld [vmem:[#allocation37_spill] sm:$0xff]  ;;  %p2063_p9 = pnand %p2062_p3, %p2058_p5 }
 0x219   : > { %v881_v60 = vmul.f32 %v6491_v2, %v6488_v18  ;;  %v882_v43 = vmul.f32 %v6492_v33, %v6488_v18  ;;  %v979_v21 = vmul.f32 %v6496_v5, %v4850_v34  ;;  %v6497_v13 = vperm.slane %v6429_v28, 7 }
 0x21a   : > { %v883_v62 = vmul.f32 %v6494_v38, %v6488_v18  ;;  %v6498_v59 = vperm.slane %v6431_v55, 7  ;;  %v6500_v29 = vperm.slane %v6499_v35, 6  ;;  %v6502_v25 = vperm.slane %v6501_v6, 6 }
 0x21b   : > { %v980_v56 = vmul.f32 %v6497_v13, %v4850_v34  ;;  %v6504_v27 = vperm.slane %v6503_v39, 6  ;;  %v6505_v28 = vperm.slane %v6433_v0, 7  ;;  %v911_v24 = vadd.f32 %v879_v3, %v811_v9 }
 0x21c   : > { %v981_v11 = vmul.f32 %v6498_v59, %v4850_v34  ;;  %v884_v20 = vmul.f32 %v6500_v29, %v6488_v18  ;;  %v885_v12 = vmul.f32 %v6502_v25, %v6488_v18  ;;  %v912_v2 = vadd.f32 %v880_v23, %v812_v22  ;;  %v6511_v23 = vld [vmem:[#allocation38_spill] sm:$0xff] }
 0x21d   : > { %v886_v51 = vmul.f32 %v6504_v27, %v6488_v18  ;;  %v982_v40 = vmul.f32 %v6505_v28, %v4850_v34  ;;  %v913_v55 = vadd.f32 %v881_v60, %v813_v52  ;;  %v6506_v33 = vperm.slane %v6493_v44, 7 }
 0x21e   : > { %v6508_v5 = vperm.slane %v6507_v41, 6  ;;  %v914_v59 = vadd.f32 %v882_v43, %v814_v47  ;;  %v915_v29 = vadd.f32 %v883_v62, %v815_v14  ;;  %v6509_v25 = vperm.slane %v6499_v35, 7  ;;  %v6514_v62 = vld [vmem:[#allocation81_spill] sm:$0xff] }
 0x21f   : > { %v983_v38 = vmul.f32 %v6506_v33, %v4850_v34  ;;  %v6510_v0 = vperm.slane %v6501_v6, 7  ;;  %v1011_v22 = vadd.f32 %v979_v21, %v911_v24  ;;  %v1012_v52 = vadd.f32 %v980_v56, %v912_v2  ;;  %v6520_v24 = vld [vmem:[#allocation83_spill] sm:$0xff] }
 0x220   : > { %v887_v13 = vmul.f32 %v6508_v5, %v6488_v18  ;;  %v984_v27 = vmul.f32 %v6509_v25, %v4850_v34  ;;  %v1013_v3 = vadd.f32 %v981_v11, %v913_v55  ;;  %v6512_v60 = vperm.slane %v6511_v23, 6 }
 0x221   : > { %v985_v9 = vmul.f32 %v6510_v0, %v4850_v34  ;;  %v916_v28 = vadd.f32 %v884_v20, %v816_v15  ;;  %v6513_v47 = vperm.slane %v6503_v39, 7  ;;  %v1014_v43 = vadd.f32 %v982_v40, %v914_v59  ;;  %1043 = vst [vmem:[%s4937_s19] sm:$0xff] %v1011_v22  ;;  %v6517_v15 = vld [vmem:[#allocation82_spill] sm:$0xff] }
 0x222   : > { %v888_v44 = vmul.f32 %v6512_v60, %v6488_v18  ;;  %v6515_v35 = vperm.slane %v6514_v62, 6  ;;  %v917_v5 = vadd.f32 %v885_v12, %v817_v54  ;;  %v6516_v21 = vperm.slane %v6507_v41, 7  ;;  %1044 = vst [vmem:[%s4937_s19 + $0x8] sm:$0xff] %v1012_v52 }
 0x223   : > { %v986_v14 = vmul.f32 %v6513_v47, %v4850_v34  ;;  %v1015_v11 = vadd.f32 %v983_v38, %v915_v29  ;;  %v6518_v20 = vperm.slane %v6517_v15, 6  ;;  %v918_v39 = vadd.f32 %v886_v51, %v818_v45  ;;  %1045 = vst [vmem:[%s4937_s19 + $0x10] sm:$0xff] %v1013_v3  ;;  %v6523_v45 = vld [vmem:[#allocation84_spill] sm:$0xff] }
 0x224   : > { %v889_v33 = vmul.f32 %v6515_v35, %v6488_v18  ;;  %v987_v56 = vmul.f32 %v6516_v21, %v4850_v34  ;;  %v6519_v54 = vperm.slane %v6511_v23, 7  ;;  %v1016_v40 = vadd.f32 %v984_v27, %v916_v28  ;;  %1046 = vst [vmem:[%s4937_s19 + $0x18] sm:$0xff] %v1014_v43 }
 0x225   : > { %v890_v6 = vmul.f32 %v6518_v20, %v6488_v18  ;;  %v6521_v2 = vperm.slane %v6520_v24, 6  ;;  %v919_v38 = vadd.f32 %v887_v13, %v4803_v31  ;;  %v6522_v41 = vperm.slane %v6514_v62, 7  ;;  %v6526_v31 = vld [vmem:[#allocation85_spill] sm:$0xff]  ;;  %1047 = vst [vmem:[%s4937_s19 + $0x20] sm:$0xff] %v1015_v11 }
 0x226   : > { %v988_v12 = vmul.f32 %v6519_v54, %v4850_v34  ;;  %v1017_v29 = vadd.f32 %v985_v9, %v917_v5  ;;  %v6524_v51 = vperm.slane %v6523_v45, 6  ;;  %v920_v27 = vadd.f32 %v888_v44, %v4806_v58  ;;  %v6529_v58 = vld [vmem:[#allocation86_spill] sm:$0xff]  ;;  %1048 = vst [vmem:[%s4937_s19 + $0x28] sm:$0xff] %v1016_v40 }
 0x227   : > { %v891_v55 = vmul.f32 %v6521_v2, %v6488_v18  ;;  %v989_v59 = vmul.f32 %v6522_v41, %v4850_v34  ;;  %v6525_v0 = vperm.slane %v6517_v15, 7  ;;  %v1018_v52 = vadd.f32 %v986_v14, %v918_v39 }
 0x228   : > { %v892_v25 = vmul.f32 %v6524_v51, %v6488_v18  ;;  %v6527_v13 = vperm.slane %v6526_v31, 6  ;;  %v921_v9 = vadd.f32 %v889_v33, %v4809_v37  ;;  %v6528_v3 = vperm.slane %v6520_v24, 7  ;;  %v6532_v37 = vld [vmem:[#allocation87_spill] sm:$0xff]  ;;  %1049 = vst [vmem:[%s4937_s19 + $0x30] sm:$0xff] %v1017_v29 }
 0x229   : > { %v990_v22 = vmul.f32 %v6525_v0, %v4850_v34  ;;  %v1019_v28 = vadd.f32 %v987_v56, %v919_v38  ;;  %v6530_v44 = vperm.slane %v6529_v58, 6  ;;  %v922_v14 = vadd.f32 %v890_v6, %v4812_v42  ;;  %v6535_v42 = vld [vmem:[#allocation88_spill] sm:$0xff]  ;;  %1050 = vst [vmem:[%s4937_s19 + $0x38] sm:$0xff] %v1018_v52 }
 0x22a   : > { %v893_v23 = vmul.f32 %v6527_v13, %v6488_v18  ;;  %v991_v60 = vmul.f32 %v6528_v3, %v4850_v34  ;;  %v6531_v43 = vperm.slane %v6523_v45, 7  ;;  %v1020_v35 = vadd.f32 %v988_v12, %v920_v27 }
 0x22b   : > { %v894_v47 = vmul.f32 %v6530_v44, %v6488_v18  ;;  %v6533_v33 = vperm.slane %v6532_v37, 6  ;;  %v923_v21 = vadd.f32 %v891_v55, %v4815_v4  ;;  %v6534_v56 = vperm.slane %v6526_v31, 7  ;;  %v6538_v4 = vld [vmem:[#allocation89_spill] sm:$0xff]  ;;  %1051 = vst [vmem:[%s4937_s19 + $0x40] sm:$0xff] %v1019_v28 }
 0x22c   : > { %v992_v62 = vmul.f32 %v6531_v43, %v4850_v34  ;;  %v1021_v15 = vadd.f32 %v989_v59, %v921_v9  ;;  %v6536_v20 = vperm.slane %v6535_v42, 6  ;;  %v924_v39 = vadd.f32 %v892_v25, %v4818_v50  ;;  %v6541_v50 = vld [vmem:[#allocation90_spill] sm:$0xff]  ;;  %1052 = vst [vmem:[%s4937_s19 + $0x48] sm:$0xff] %v1020_v35 }
 0x22d   : > { %v895_v5 = vmul.f32 %v6533_v33, %v6488_v18  ;;  %v993_v11 = vmul.f32 %v6534_v56, %v4850_v34  ;;  %v6537_v54 = vperm.slane %v6529_v58, 7  ;;  %v1022_v40 = vadd.f32 %v990_v22, %v922_v14 }
 0x22e   : > { %v896_v6 = vmul.f32 %v6536_v20, %v6488_v18  ;;  %v6539_v24 = vperm.slane %v6538_v4, 6  ;;  %v925_v55 = vadd.f32 %v893_v23, %v4821_v1  ;;  %v6540_v38 = vperm.slane %v6532_v37, 7  ;;  %v6544_v1 = vld [vmem:[#allocation91_spill] sm:$0xff]  ;;  %1053 = vst [vmem:[%s4937_s19 + $0x50] sm:$0xff] %v1021_v15 }
 0x22f   : > { %v994_v12 = vmul.f32 %v6537_v54, %v4850_v34  ;;  %v1023_v59 = vadd.f32 %v991_v60, %v923_v21  ;;  %v6542_v29 = vperm.slane %v6541_v50, 6  ;;  %v926_v51 = vadd.f32 %v894_v47, %v4824_v8  ;;  %v6547_v8 = vld [vmem:[#allocation92_spill] sm:$0xff]  ;;  %1054 = vst [vmem:[%s4937_s19 + $0x58] sm:$0xff] %v1022_v40 }
 0x230   : > { %v897_v2 = vmul.f32 %v6539_v24, %v6488_v18  ;;  %v995_v41 = vmul.f32 %v6540_v38, %v4850_v34  ;;  %v6543_v25 = vperm.slane %v6535_v42, 7  ;;  %v1024_v0 = vadd.f32 %v992_v62, %v924_v39 }
 0x231   : > { %v898_v45 = vmul.f32 %v6542_v29, %v6488_v18  ;;  %v6545_v22 = vperm.slane %v6544_v1, 6  ;;  %v927_v31 = vadd.f32 %v895_v5, %v4827_v49  ;;  %v6546_v13 = vperm.slane %v6538_v4, 7  ;;  %v6550_v49 = vld [vmem:[#allocation93_spill] sm:$0xff]  ;;  %1055 = vst [vmem:[%s4937_s19 + $0x60] sm:$0xff] %v1023_v59 }
 0x232   : > { %v996_v27 = vmul.f32 %v6543_v25, %v4850_v34  ;;  %v1025_v9 = vadd.f32 %v993_v11, %v925_v55  ;;  %v6548_v3 = vperm.slane %v6547_v8, 6  ;;  %v928_v28 = vadd.f32 %v896_v6, %v4830_v53  ;;  %v6553_v53 = vld [vmem:[#allocation94_spill] sm:$0xff]  ;;  %1056 = vst [vmem:[%s4937_s19 + $0x68] sm:$0xff] %v1024_v0 }
 0x233   : > { %v899_v52 = vmul.f32 %v6545_v22, %v6488_v18  ;;  %v997_v23 = vmul.f32 %v6546_v13, %v4850_v34  ;;  %v6549_v58 = vperm.slane %v6541_v50, 7  ;;  %v1026_v47 = vadd.f32 %v994_v12, %v926_v51 }
 0x234   : > { %v900_v60 = vmul.f32 %v6548_v3, %v6488_v18  ;;  %v6551_v14 = vperm.slane %v6550_v49, 6  ;;  %v929_v62 = vadd.f32 %v897_v2, %v4833_v19  ;;  %v6552_v35 = vperm.slane %v6544_v1, 7  ;;  %v6556_v19 = vld [vmem:[#allocation95_spill] sm:$0xff]  ;;  %1057 = vst [vmem:[%s4937_s19 + $0x70] sm:$0xff] %v1025_v9 }
 0x235   : > { %v998_v44 = vmul.f32 %v6549_v58, %v4850_v34  ;;  %v1027_v33 = vadd.f32 %v995_v41, %v927_v31  ;;  %v6554_v5 = vperm.slane %v6553_v53, 6  ;;  %v930_v56 = vadd.f32 %v898_v45, %v4836_v32  ;;  %v6559_v32 = vld [vmem:[#allocation97_spill] sm:$0xff]  ;;  %1058 = vst [vmem:[%s4937_s19 + $0x78] sm:$0xff] %v1026_v47 }
 0x236   : > { %v901_v43 = vmul.f32 %v6551_v14, %v6488_v18  ;;  %v999_v37 = vmul.f32 %v6552_v35, %v4850_v34  ;;  %v6555_v11 = vperm.slane %v6547_v8, 7  ;;  %v1028_v42 = vadd.f32 %v996_v27, %v928_v28 }
 0x237   : > { %v902_v21 = vmul.f32 %v6554_v5, %v6488_v18  ;;  %v6557_v20 = vperm.slane %v6556_v19, 6  ;;  %v931_v39 = vadd.f32 %v899_v52, %v4839_v46  ;;  %v6558_v54 = vperm.slane %v6550_v49, 7  ;;  %v6562_v46 = vld [vmem:[#allocation98_spill] sm:$0xff]  ;;  %1059 = vst [vmem:[%s4937_s19 + $0x80] sm:$0xff] %v1027_v33 }
 0x238   : > { %v1000_v15 = vmul.f32 %v6555_v11, %v4850_v34  ;;  %v1029_v40 = vadd.f32 %v997_v23, %v929_v62  ;;  %v6560_v4 = vperm.slane %v6559_v32, 6  ;;  %v932_v2 = vadd.f32 %v900_v60, %v4842_v10  ;;  %v6565_v10 = vld [vmem:[#allocation99_spill] sm:$0xff]  ;;  %1060 = vst [vmem:[%s4937_s19 + $0x88] sm:$0xff] %v1028_v42 }
 0x239   : > { %v903_v6 = vmul.f32 %v6557_v20, %v6488_v18  ;;  %v1001_v12 = vmul.f32 %v6558_v54, %v4850_v34  ;;  %v6561_v55 = vperm.slane %v6553_v53, 7  ;;  %v1030_v41 = vadd.f32 %v998_v44, %v930_v56  ;;  %v6577_v53 = vld [vmem:[#allocation103_spill] sm:$0xff] }
 0x23a   : > { %v904_v24 = vmul.f32 %v6560_v4, %v6488_v18  ;;  %v6563_v59 = vperm.slane %v6562_v46, 6  ;;  %v933_v29 = vadd.f32 %v901_v43, %v4845_v7  ;;  %v6564_v45 = vperm.slane %v6556_v19, 7  ;;  %v6568_v7 = vld [vmem:[#allocation100_spill] sm:$0xff]  ;;  %1061 = vst [vmem:[%s4937_s19 + $0x90] sm:$0xff] %v1029_v40 }
 0x23b   : > { %v1002_v38 = vmul.f32 %v6561_v55, %v4850_v34  ;;  %v1031_v25 = vadd.f32 %v999_v37, %v931_v39  ;;  %v6566_v27 = vperm.slane %v6565_v10, 6  ;;  %v934_v1 = vadd.f32 %v902_v21, %v4848_v61  ;;  %v6571_v61 = vld [vmem:[#allocation101_spill] sm:$0xff]  ;;  %1062 = vst [vmem:[%s4937_s19 + $0x98] sm:$0xff] %v1030_v41 }
 0x23c   : > { %v905_v50 = vmul.f32 %v6563_v59, %v6488_v18  ;;  %v1003_v51 = vmul.f32 %v6564_v45, %v4850_v34  ;;  %v6567_v22 = vperm.slane %v6559_v32, 7  ;;  %v1032_v31 = vadd.f32 %v1000_v15, %v932_v2 }
 0x23d   : > { %v906_v0 = vmul.f32 %v6566_v27, %v6488_v18  ;;  %v6569_v13 = vperm.slane %v6568_v7, 6  ;;  %v935_v9 = vadd.f32 %v903_v6, %v4853_v36  ;;  %v6570_v8 = vperm.slane %v6562_v46, 7  ;;  %v6574_v36 = vld [vmem:[#allocation102_spill] sm:$0xff]  ;;  %1063 = vst [vmem:[%s4937_s19 + $0xa0] sm:$0xff] %v1031_v25 }
 0x23e   : > { %v1004_v52 = vmul.f32 %v6567_v22, %v4850_v34  ;;  %v1033_v60 = vadd.f32 %v1001_v12, %v933_v29  ;;  %v6572_v28 = vperm.slane %v6571_v61, 6  ;;  %v936_v44 = vadd.f32 %v904_v24, %v4856_v26  ;;  %1064 = vst [vmem:[%s4937_s19 + $0xa8] sm:$0xff] %v1032_v31 }
 0x23f   : > { %v907_v23 = vmul.f32 %v6569_v13, %v6488_v18  ;;  %v1005_v3 = vmul.f32 %v6570_v8, %v4850_v34  ;;  %v6573_v47 = vperm.slane %v6565_v10, 7  ;;  %v1034_v14 = vadd.f32 %v1002_v38, %v934_v1 }
 0x240   : > { %v908_v58 = vmul.f32 %v6572_v28, %v6488_v18  ;;  %v6575_v43 = vperm.slane %v6574_v36, 6  ;;  %v937_v35 = vadd.f32 %v905_v50, %v4859_v57  ;;  %v6576_v37 = vperm.slane %v6568_v7, 7  ;;  %1065 = vst [vmem:[%s4937_s19 + $0xb0] sm:$0xff] %v1033_v60 }
 0x241   : > { %v1006_v49 = vmul.f32 %v6573_v47, %v4850_v34  ;;  %v1035_v26 = vadd.f32 %v1003_v51, %v935_v9  ;;  %v6578_v5 = vperm.slane %v6577_v53, 6  ;;  %v938_v56 = vadd.f32 %v906_v0, %v4862_v30  ;;  %1066 = vst [vmem:[%s4937_s19 + $0xb8] sm:$0xff] %v1034_v14 }
 0x242   : > { %v909_v62 = vmul.f32 %v6575_v43, %v6488_v18  ;;  %v1007_v33 = vmul.f32 %v6576_v37, %v4850_v34  ;;  %v6579_v11 = vperm.slane %v6571_v61, 7  ;;  %v1036_v57 = vadd.f32 %v1004_v52, %v936_v44 }
 0x243   : > { %v910_v21 = vmul.f32 %v6578_v5, %v6488_v18  ;;  %v939_v42 = vadd.f32 %v907_v23, %v4865_v48  ;;  %v6580_v19 = vperm.slane %v6574_v36, 7  ;;  %v1037_v6 = vadd.f32 %v1005_v3, %v937_v35  ;;  %1067 = vst [vmem:[%s4937_s19 + $0xc0] sm:$0xff] %v1035_v26 }
 0x244   : > { %v1008_v15 = vmul.f32 %v6579_v11, %v4850_v34  ;;  %v940_v18 = vadd.f32 %v908_v58, %v4877_v17  ;;  %v6581_v30 = vperm.slane %v6577_v53, 7  ;;  %v1038_v54 = vadd.f32 %v1006_v49, %v938_v56  ;;  %1068 = vst [vmem:[%s4937_s19 + $0xc8] sm:$0xff] %v1036_v57 }
 0x245   : > { %v1009_v20 = vmul.f32 %v6580_v19, %v4850_v34  ;;  %v941_v48 = vadd.f32 %v909_v62, %v4880_v16  ;;  %v1039_v12 = vadd.f32 %v1007_v33, %v939_v42  ;;  %v942_v17 = vadd.f32 %v910_v21, %v4889_v63  ;;  %1069 = vst [vmem:[%s4937_s19 + $0xd0] sm:$0xff] %v1037_v6 }
 0x246   : > { %v1010_v39 = vmul.f32 %v6581_v30, %v4850_v34  ;;  %v1040_v40 = vadd.f32 %v1008_v15, %v940_v18  ;;  %1070 = vst [vmem:[%s4937_s19 + $0xd8] sm:$0xff] %v1038_v54 }
 0x247   : > { %v1041_v34 = vadd.f32 %v1009_v20, %v941_v48  ;;  %1071 = vst [vmem:[%s4937_s19 + $0xe0] sm:$0xff] %v1039_v12 }
 0x248   : > { %v1042_v32 = vadd.f32 %v1010_v39, %v942_v17  ;;  %1072 = vst [vmem:[%s4937_s19 + $0xe8] sm:$0xff] %v1040_v40 }
 0x249   : > { %1073 = vst [vmem:[%s4937_s19 + $0xf0] sm:$0xff] %v1041_v34 }
 0x24a   : > { %1074 = vst [vmem:[%s4937_s19 + $0xf8] sm:$0xff] %v1042_v32 }
 0x24b   : > { %2066 = shalt.err (!%p2063_p9)
}
 0x24c   : > { %1821 = dma.vmem_to_hbm [thread:$0]  (%p2233_p4), %s1642_s10, 4096, %s1644_s15, %s1621_s23  }
 0x24d PF: > { %s1672_s28 = sand.u32 1, %s2109_s12   ;;  %p1834_p10 = pnand %p1795_p6, %p2241_p7 }
 0x24e   : > { %s1673_s27 = scalar_lea.sflag [#allocation4], %s1672_s28 }
 0x24f   : > { %p1835_p11 = pneg %p1834_p10 }
 0x251   : > { %2100 = dma.done.wait (%p1835_p11), %s1673_s27, 4096  }
 0x252   : > { %2102 = vsyncadd (%p1835_p11), %s1673_s27, 4294963200  ;;  %s1683_s6 = scalar_lea.sflag [#allocation9], %s1672_s28 }
 0x253   : > { %2104 = dma.done.wait (%p1835_p11), %s1683_s6, 4096  }
 0x254   : > { %2106 = vsyncadd (%p1835_p11), %s1683_s6, 4294963200  ;;  %s24_s17 = sadd.s32 1, %s2129_s17   ;;  %s6582_s12 = smov %s2113_s13 }
 0x255   : > { %p21_p12 = scmp.ge.s32.totalorder %s24_s17, 4   ;;  %s6583_s13 = smov %s2117_s14 }
 0x256   : > { %s6584_s14 = smov %s2239_s8  ;;  %s6585_s15 = smov %s2125_s16 }
 0x257   : > { %s6586_s16 = smov %s6588_s29  ;;  %23 = sbr.rel (!%p21_p12) target bundleno = 9 (0x9), region = 94 }
 0x25c   :  { %1689 = vsyncpa [#allocation3], 1 }
 0x25d   :  { %1691 = vsyncpa [#allocation3 + $0x1], 1 }
 0x25e   :  { %1692 = vsyncpa [#allocation6], 1 }
 0x25f   :  { %1693 = vsyncpa [#allocation4], 1 }
 0x260   :  { %1695 = vsyncpa [#allocation4 + $0x1], 1 }
 0x261   :  { %1696 = vsyncpa [#allocation9], 1 }
 0x262   :  { %1698 = vsyncpa [#allocation9 + $0x1], 1 }

</bundles_post_ra>
